<compile_context>
chip_gen: v5e
topology: v5e:2x2
jax: 0.10.0
libtpu: 0.0.40
codegen_flags: <defaults>
</compile_context>

<pallas_src>
import functools

import jax
import jax.numpy as jnp
from jax import lax
from jax.experimental import pallas as pl
from jax.experimental.pallas import tpu as pltpu

EPS = 1e-5                  # nn.BatchNorm2d default eps
LANE = 128                  # pad Cout to a multiple of the lane width (dense stores)
ACT_DTYPE = jnp.float32     # flip to jnp.bfloat16 on v6e/v7x (loosen test tol to ~5e-2)


def _round_up(x, m):
    return ((x + m - 1) // m) * m


@functools.lru_cache(maxsize=None)
def _vmem_capacity_bytes():
    try:
        cap = int(getattr(pltpu.get_tpu_info(), "vmem_capacity_bytes", 0))
        if cap > 0:
            return cap
    except Exception:
        pass
    return 64 * 1024 * 1024         # conservative fallback (v7x per-core VMEM)


def _vmem_limit_bytes():
    # Leave headroom under the physical capacity (64 MiB v7x, 128 MiB v5e/v6e).
    return int(min(_vmem_capacity_bytes() * 3 // 4, 100 * 1024 * 1024))


def _m_tile_cap():
    # Review: ~1024 rows on v7x (64 MiB VMEM), up to 4096 on v5e/v6e (128 MiB).
    return 4096 if _vmem_capacity_bytes() >= 100 * 1024 * 1024 else 1024


def _pick_row_tile(H, W, Cin, Coutp, esz, budget):
    """Largest divisor TR of H whose *total* per-step VMEM footprint (double-buffered
    input / halo / output blocks, resident weights, window + fused-LHS scratch and the
    f32 matmul result) fits `budget`, preferring >=2 row tiles (pipelining) and
    sublane/halo-friendly tile sizes."""
    lane_in = (W + 2) * Cin

    def cost(tr):
        return (2 * tr * lane_in * esz          # input block (double-buffered)
                + 2 * 8 * lane_in * esz         # halo block (double-buffered)
                + 2 * 9 * Cin * Coutp * esz     # resident weights (2 buffers, worst case)
                + 2 * tr * W * Coutp * esz      # y output block (double-buffered)
                + (tr + 2) * lane_in * esz      # halo-window scratch
                + tr * W * 9 * Cin * esz        # fused im2col LHS scratch
                + 2 * tr * W * Coutp * 4)       # f32 matmul result + store staging

    divisors = [d for d in range(2, H + 1) if H % d == 0] or [H]
    fitting = [d for d in divisors if cost(d) <= budget] or [min(divisors)]
    aligned = [d for d in fitting if (d * W) % 8 == 0 or d == H]
    if aligned:
        fitting = aligned

    def pref(d):
        return (1 if H // d >= 2 else 0,                        # pipelined grid first
                2 if d % 8 == 0 else (1 if d % 2 == 0 else 0),  # sublane / 2-row halo
                d)                                              # then biggest

    return max(fitting, key=pref)


def _pick_m_tile(M, Coutp, esz, budget, gen_cap):
    """Largest sublane-aligned divisor of M under the VMEM budget / generation cap,
    preferring >= 2 tiles so the BN+ReLU pass pipelines."""
    bytes_per_row = Coutp * esz * 4            # in + out blocks, double-buffered
    cap = max(8, min(gen_cap, budget // max(1, bytes_per_row)))
    cand = [d for d in range(1, M + 1)
            if M % d == 0 and d <= cap and (d % 8 == 0 or d == M)]
    if not cand:
        return M
    sub = [d for d in cand if d <= max(1, M // 2)]
    return max(sub) if sub else max(cand)


# ------------- pass 1: halo-tiled conv (bias-free, fused K=9*Cin) + BN stats -------------
def _conv_bn_stats_call(xp, w_mat, *, H, W, Cin, Coutp, TR, HALO, act_dtype, vmem_limit):
    """xp: (N, Hp, W+2, Cin) spatially padded input (Hp >= H+2); w_mat: (9*Cin, Coutp).
    Returns y: (N, H*W, Coutp) conv output (pre-BN), s1/s2: (N, 1, Coutp) per-image
    per-channel sum / sum-of-squares (accumulated across the row-tile axis)."""
    N = xp.shape[0]
    T = H // TR
    K = 9 * Cin

    def kernel(x_ref, xh_ref, w_ref, y_ref, s1_ref, s2_ref, win_ref, lhs_ref):
        t = pl.program_id(1)

        # Assemble the (TR+2, W+2, Cin) halo window in VMEM scratch: TR main rows plus
        # the first 2 rows of the halo block (the next row tile / bottom zero pad).
        win_ref[0:TR] = x_ref[...]
        win_ref[TR:TR + 2] = xh_ref[0:2]
        win = win_ref[...]

        # Build the fused im2col LHS (TR*W, 9*Cin): the 9 shifted windows side by side
        # along lanes -> ONE K=9*Cin MXU matmul instead of 9 K=Cin matmuls.
        for kh in range(3):
            for kw in range(3):
                col = (kh * 3 + kw) * Cin
                piece = win[kh:kh + TR, kw:kw + W, :]           # (TR, W, Cin)
                lhs_ref[:, col:col + Cin] = piece.reshape(TR * W, Cin)

        acc = jnp.dot(lhs_ref[...], w_ref[...],
                      preferred_element_type=jnp.float32)        # (TR*W, Coutp) f32
        y_ref[...] = acc.astype(y_ref.dtype)

        # Per-image BN statistics accumulated across the row-tile ("arbitrary") axis.
        @pl.when(t == 0)
        def _():
            s1_ref[...] = jnp.zeros_like(s1_ref)
            s2_ref[...] = jnp.zeros_like(s2_ref)

        s1_ref[...] += jnp.sum(acc, axis=0, keepdims=True)
        s2_ref[...] += jnp.sum(acc * acc, axis=0, keepdims=True)

    ybytes = N * H * W * Coutp * jnp.dtype(act_dtype).itemsize
    cost = pl.CostEstimate(
        flops=2 * N * H * W * K * Coutp,
        transcendentals=0,
        bytes_accessed=int(xp.size * xp.dtype.itemsize
                           + w_mat.size * w_mat.dtype.itemsize
                           + ybytes + 2 * N * Coutp * 4))

    return pl.pallas_call(
        kernel,
        out_shape=(
            jax.ShapeDtypeStruct((N, H * W, Coutp), act_dtype),
            jax.ShapeDtypeStruct((N, 1, Coutp), jnp.float32),
            jax.ShapeDtypeStruct((N, 1, Coutp), jnp.float32),
        ),
        grid=(N, T),
        in_specs=[
            # Main row tile of the padded image.
            pl.BlockSpec((None, TR, W + 2, Cin), lambda n, t: (n, t, 0, 0)),
            # Halo block supplying the 2 extra rows below the tile (same array).
            pl.BlockSpec((None, HALO, W + 2, Cin),
                         lambda n, t: (n, (t + 1) * (TR // HALO), 0, 0)),
            # Weights resident across the whole grid.
            pl.BlockSpec((K, Coutp), lambda n, t: (0, 0)),
        ],
        out_specs=(
            pl.BlockSpec((None, TR * W, Coutp), lambda n, t: (n, t, 0)),
            pl.BlockSpec((None, 1, Coutp), lambda n, t: (n, 0, 0)),
            pl.BlockSpec((None, 1, Coutp), lambda n, t: (n, 0, 0)),
        ),
        scratch_shapes=[
            pltpu.VMEM((TR + 2, W + 2, Cin), act_dtype),   # halo window
            pltpu.VMEM((TR * W, K), act_dtype),            # fused im2col LHS
        ],
        compiler_params=pltpu.CompilerParams(
            dimension_semantics=("parallel", "arbitrary"),
            vmem_limit_bytes=vmem_limit),
        cost_estimate=cost,
    )(xp, xp, w_mat)


# ------------------- pass 2: normalize + ReLU, lane-dense, row-tiled -------------------
def _bn_relu_call(y2d, scale, shift, *, TM, out_dtype, vmem_limit):
    M, Coutp = y2d.shape

    def kernel(y_ref, sc_ref, sh_ref, o_ref):
        y = y_ref[...].astype(jnp.float32)
        o_ref[...] = jnp.maximum(y * sc_ref[...] + sh_ref[...], 0.0).astype(o_ref.dtype)

    cost = pl.CostEstimate(
        flops=3 * M * Coutp,
        transcendentals=0,
        bytes_accessed=int(y2d.size * y2d.dtype.itemsize
                           + M * Coutp * jnp.dtype(out_dtype).itemsize + 2 * Coutp * 4))

    return pl.pallas_call(
        kernel,
        out_shape=jax.ShapeDtypeStruct((M, Coutp), out_dtype),
        grid=(M // TM,),
        in_specs=[
            pl.BlockSpec((TM, Coutp), lambda i: (i, 0)),
            pl.BlockSpec((1, Coutp), lambda i: (0, 0)),
            pl.BlockSpec((1, Coutp), lambda i: (0, 0)),
        ],
        out_specs=pl.BlockSpec((TM, Coutp), lambda i: (i, 0)),
        compiler_params=pltpu.CompilerParams(
            dimension_semantics=("parallel",),
            vmem_limit_bytes=vmem_limit),
        cost_estimate=cost,
    )(y2d, scale, shift)


def conv_bn_relu_block(x_nhwc, w_oihw, gamma, beta):
    """Conv2d(3x3, pad=1; bias cancelled by train-mode BN) + BatchNorm + ReLU.
    Input channels Cx may already carry lane padding (>= weight in_ch); the output
    keeps its channels lane-padded to Coutp = round_up(Cout, 128)."""
    N, H, W, Cx = x_nhwc.shape
    Cout, Cw = int(w_oihw.shape[0]), int(w_oihw.shape[1])
    assert Cx >= Cw and H >= 2, "halo scheme needs H >= 2 and Cin >= weight in_ch"
    Coutp = _round_up(Cout, LANE)
    M = N * H * W
    act_dtype = x_nhwc.dtype
    esz = jnp.dtype(act_dtype).itemsize
    vmem_limit = _vmem_limit_bytes()

    TR = _pick_row_tile(H, W, Cx, Coutp, esz, budget=int(vmem_limit * 0.6))
    HALO = 2 if TR % 2 == 0 else TR
    Hp = H + (2 if TR % 2 == 0 else TR)

    # (Cout, Cw, 3, 3) -> (3, 3, Cw, Cout), zero-pad in-ch to Cx (extra input channels
    # are zero) and out-ch to Coutp (dense lanes), then flatten to (9*Cx, Coutp).
    w_t = jnp.transpose(w_oihw, (2, 3, 1, 0))
    w_t = jnp.pad(w_t, ((0, 0), (0, 0), (0, Cx - Cw), (0, Coutp - Cout)))
    w_mat = w_t.reshape(9 * Cx, Coutp).astype(act_dtype)

    # Spatial zero pad only (top 1 row, bottom enough rows for the halo blocks).
    # NOTE: for Cin << 128 (only the first conv of the stack) the input blocks are
    # lane-sparse; traffic is tiny there and production in_ch is >= 64, so we skip the
    # merged (W*Cin)-lane layout suggested for that case.
    xp = jnp.pad(x_nhwc, ((0, 0), (1, Hp - H - 1), (1, 1), (0, 0)))

    y, s1, s2 = _conv_bn_stats_call(
        xp, w_mat, H=H, W=W, Cin=Cx, Coutp=Coutp, TR=TR, HALO=HALO,
        act_dtype=act_dtype, vmem_limit=vmem_limit)

    # Fold the partial sums into BN scale/shift (tiny per-channel math in XLA).
    mean = jnp.sum(s1, axis=(0, 1)) / M                               # (Coutp,)
    var = jnp.maximum(jnp.sum(s2, axis=(0, 1)) / M - mean * mean, 0.0)
    inv = lax.rsqrt(var + EPS)
    gamma_p = jnp.pad(gamma.astype(jnp.float32), (0, Coutp - Cout))
    beta_p = jnp.pad(beta.astype(jnp.float32), (0, Coutp - Cout))
    scale = (gamma_p * inv)[None, :]                                  # (1, Coutp)
    shift = (beta_p - mean * gamma_p * inv)[None, :]

    TM = _pick_m_tile(M, Coutp, esz, budget=vmem_limit // 3, gen_cap=_m_tile_cap())
    out2d = _bn_relu_call(y.reshape(M, Coutp), scale, shift,
                          TM=TM, out_dtype=act_dtype, vmem_limit=vmem_limit)
    # Padded channels stay exactly zero (zero weights -> zero stats -> zero scale/shift),
    # so they can flow into the next conv block unchanged (its weight has zero rows).
    return out2d.reshape(N, H, W, Coutp)


def d_conv_layer_forward(x_nchw, params):
    """Pallas D_ConvLayer.forward: (N, in_ch, H, W) -> (N, out_ch, H, W)."""
    out_ch = int(params["w2"].shape[0])
    x = jnp.transpose(x_nchw, (0, 2, 3, 1)).astype(ACT_DTYPE)         # NCHW -> NHWC
    # Conv biases b1/b2 are intentionally unused: training-mode batch-norm cancels
    # them exactly, so adding them in-kernel is dead work.
    h = conv_bn_relu_block(x, params["w1"], params["g1"], params["be1"])
    h = conv_bn_relu_block(h, params["w2"], params["g2"], params["be2"])
    h = h[..., :out_ch]                        # drop lane padding once, at the very end
    return jnp.transpose(h, (0, 3, 1, 2)).astype(jnp.float32)         # NHWC -> NCHW


def init_params(key, in_ch, out_ch):
    """Parameter init matching the module's shapes (PyTorch-style uniform)."""
    k1, k2, k3, k4 = jax.random.split(key, 4)
    bound1 = 1.0 / jnp.sqrt(in_ch * 9)
    bound2 = 1.0 / jnp.sqrt(in_ch * 9)
    return {
        # conv1: in_ch -> in_ch
        "w1": jax.random.uniform(k1, (in_ch, in_ch, 3, 3), jnp.float32, -bound1, bound1),
        "b1": jax.random.uniform(k2, (in_ch,), jnp.float32, -bound1, bound1),
        "g1": jnp.ones((in_ch,), jnp.float32),
        "be1": jnp.zeros((in_ch,), jnp.float32),
        # conv2: in_ch -> out_ch
        "w2": jax.random.uniform(k3, (out_ch, in_ch, 3, 3), jnp.float32, -bound2, bound2),
        "b2": jax.random.uniform(k4, (out_ch,), jnp.float32, -bound2, bound2),
        "g2": jnp.ones((out_ch,), jnp.float32),
        "be2": jnp.zeros((out_ch,), jnp.float32),
    }


# ---------------------------------- pure-JAX reference ----------------------------------
def _ref_block(x_nhwc, w_oihw, b, gamma, beta):
    w_hwio = jnp.transpose(w_oihw, (2, 3, 1, 0))
    y = lax.conv_general_dilated(
        x_nhwc, w_hwio, window_strides=(1, 1), padding="SAME",
        dimension_numbers=("NHWC", "HWIO", "NHWC"))
    y = y + b
    mean = jnp.mean(y, axis=(0, 1, 2), keepdims=True)
    var = jnp.mean((y - mean) ** 2, axis=(0, 1, 2), keepdims=True)
    y = (y - mean) * lax.rsqrt(var + EPS) * gamma + beta
    return jnp.maximum(y, 0.0)


def d_conv_layer_reference(x_nchw, params):
    x = jnp.transpose(x_nchw, (0, 2, 3, 1))
    x = _ref_block(x, params["w1"], params["b1"], params["g1"], params["be1"])
    x = _ref_block(x, params["w2"], params["b2"], params["g2"], params["be2"])
    return jnp.transpose(x, (0, 3, 1, 2))


if __name__ == "__main__":
    key = jax.random.PRNGKey(0)
    kx, kp = jax.random.split(key)

    N, in_ch, out_ch, H, W = 2, 4, 8, 16, 16
    x = jax.random.normal(kx, (N, in_ch, H, W), jnp.float32)
    params = init_params(kp, in_ch, out_ch)

    fwd = jax.jit(d_conv_layer_forward)
    out = jax.block_until_ready(fwd(x, params))
    ref = jax.block_until_ready(d_conv_layer_reference(x, params))

    assert out.shape == (N, out_ch, H, W)
    tol = 5e-4 if jnp.dtype(ACT_DTYPE) == jnp.dtype(jnp.float32) else 5e-2
    assert jnp.allclose(out, ref, atol=tol, rtol=tol), \
        f"max err {jnp.max(jnp.abs(out - ref))}"
    print("KERNEL_OK")
</pallas_src>

<mosaic_0001>
module attributes {stable_mosaic.version = 11 : i64} {
  func.func @kernel(%arg0: i32, %arg1: memref<256x128xf32, #tpu.memory_space<vmem>>, %arg2: memref<1x128xf32, #tpu.memory_space<vmem>>, %arg3: memref<1x128xf32, #tpu.memory_space<vmem>>, %arg4: memref<256x128xf32, #tpu.memory_space<vmem>>) attributes {dimension_semantics = [#tpu.dimension_semantics<parallel>], iteration_bounds = array<i64: 2>, scalar_prefetch = 0 : i64, scratch_operands = 0 : i64, tpu.core_type = #tpu.core_type<tc>, window_params = [{transform_indices = @transform_0, window_bounds = array<i64: 256, 128>}, {pipeline_mode = #tpu.pipeline_mode<synchronous>, transform_indices = @transform_1, window_bounds = array<i64: 1, 128>}, {pipeline_mode = #tpu.pipeline_mode<synchronous>, transform_indices = @transform_2, window_bounds = array<i64: 1, 128>}, {transform_indices = @transform_3, window_bounds = array<i64: 256, 128>}]} {
    %c0 = arith.constant 0 : index
    %c0_0 = arith.constant 0 : index
    %0 = vector.load %arg1[%c0, %c0_0] : memref<256x128xf32, #tpu.memory_space<vmem>>, vector<256x128xf32>
    %c0_1 = arith.constant 0 : index
    %c0_2 = arith.constant 0 : index
    %1 = vector.load %arg2[%c0_1, %c0_2] : memref<1x128xf32, #tpu.memory_space<vmem>>, vector<1x128xf32>
    %2 = vector.broadcast %1 : vector<1x128xf32> to vector<256x128xf32>
    %3 = arith.mulf %0, %2 : vector<256x128xf32>
    %c0_3 = arith.constant 0 : index
    %c0_4 = arith.constant 0 : index
    %4 = vector.load %arg3[%c0_3, %c0_4] : memref<1x128xf32, #tpu.memory_space<vmem>>, vector<1x128xf32>
    %5 = vector.broadcast %4 : vector<1x128xf32> to vector<256x128xf32>
    %6 = arith.addf %3, %5 : vector<256x128xf32>
    %cst = arith.constant 0.000000e+00 : f32
    %7 = vector.broadcast %cst : f32 to vector<256x128xf32>
    %8 = arith.maximumf %6, %7 : vector<256x128xf32>
    %c0_5 = arith.constant 0 : index
    %c0_6 = arith.constant 0 : index
    %9 = vector.load %arg4[%c0_5, %c0_6] : memref<256x128xf32, #tpu.memory_space<vmem>>, vector<256x128xf32>
    tpu.vector_store %arg4[%c0_5, %c0_6], %8 {strides = array<i32>} : memref<256x128xf32, #tpu.memory_space<vmem>>, vector<256x128xf32>,
    return
  }
  func.func @transform_0(%arg0: i32) -> (i32, i32) {
    %c0_i32 = arith.constant 0 : i32
    %c0_i32_0 = arith.constant 0 : i32
    return %arg0, %c0_i32 : i32, i32
  }
  func.func @transform_1(%arg0: i32) -> (i32, i32) {
    %c0_i32 = arith.constant 0 : i32
    %c0_i32_0 = arith.constant 0 : i32
    %c0_i32_1 = arith.constant 0 : i32
    return %c0_i32, %c0_i32_0 : i32, i32
  }
  func.func @transform_2(%arg0: i32) -> (i32, i32) {
    %c0_i32 = arith.constant 0 : i32
    %c0_i32_0 = arith.constant 0 : i32
    %c0_i32_1 = arith.constant 0 : i32
    return %c0_i32, %c0_i32_0 : i32, i32
  }
  func.func @transform_3(%arg0: i32) -> (i32, i32) {
    %c0_i32 = arith.constant 0 : i32
    %c0_i32_0 = arith.constant 0 : i32
    return %arg0, %c0_i32 : i32, i32
  }
}

module attributes {stable_mosaic.version = 11 : i64} {
  func.func @kernel(%arg0: i32, %arg1: i32, %arg2: memref<1x8x18x4xf32, #tpu.memory_space<vmem>>, %arg3: memref<1x2x18x4xf32, #tpu.memory_space<vmem>>, %arg4: memref<36x128xf32, #tpu.memory_space<vmem>>, %arg5: memref<1x128x128xf32, #tpu.memory_space<vmem>>, %arg6: memref<1x1x128xf32, #tpu.memory_space<vmem>>, %arg7: memref<1x1x128xf32, #tpu.memory_space<vmem>>, %arg8: memref<10x18x4xf32, #tpu.memory_space<vmem>>, %arg9: memref<128x36xf32, #tpu.memory_space<vmem>>) attributes {dimension_semantics = [#tpu.dimension_semantics<parallel>, #tpu.dimension_semantics<arbitrary>], iteration_bounds = array<i64: 2, 2>, scalar_prefetch = 0 : i64, scratch_operands = 2 : i64, tpu.core_type = #tpu.core_type<tc>, window_params = [{transform_indices = @transform_0, window_bounds = array<i64: 1, 8, 18, 4>}, {transform_indices = @transform_1, window_bounds = array<i64: 1, 2, 18, 4>}, {pipeline_mode = #tpu.pipeline_mode<synchronous>, transform_indices = @transform_2, window_bounds = array<i64: 36, 128>}, {transform_indices = @transform_3, window_bounds = array<i64: 1, 128, 128>}, {transform_indices = @transform_4, window_bounds = array<i64: 1, 1, 128>}, {transform_indices = @transform_5, window_bounds = array<i64: 1, 1, 128>}]} {
    %c0 = arith.constant 0 : index
    %c0_0 = arith.constant 0 : index
    %c0_1 = arith.constant 0 : index
    %c0_2 = arith.constant 0 : index
    %0 = vector.load %arg2[%c0, %c0_0, %c0_1, %c0_2] : memref<1x8x18x4xf32, #tpu.memory_space<vmem>>, vector<1x8x18x4xf32>
    %1 = vector.shape_cast %0 : vector<1x8x18x4xf32> to vector<8x18x4xf32>
    %c0_3 = arith.constant 0 : index
    %c0_4 = arith.constant 0 : index
    %c0_5 = arith.constant 0 : index
    %2 = vector.load %arg8[%c0_3, %c0_4, %c0_5] : memref<10x18x4xf32, #tpu.memory_space<vmem>>, vector<8x18x4xf32>
    tpu.vector_store %arg8[%c0_3, %c0_4, %c0_5], %1 {strides = array<i32>} : memref<10x18x4xf32, #tpu.memory_space<vmem>>, vector<8x18x4xf32>,
    %c0_6 = arith.constant 0 : index
    %c0_7 = arith.constant 0 : index
    %c0_8 = arith.constant 0 : index
    %c0_9 = arith.constant 0 : index
    %3 = vector.load %arg3[%c0_6, %c0_7, %c0_8, %c0_9] : memref<1x2x18x4xf32, #tpu.memory_space<vmem>>, vector<1x2x18x4xf32>
    %4 = vector.shape_cast %3 : vector<1x2x18x4xf32> to vector<2x18x4xf32>
    %c8 = arith.constant 8 : index
    %c0_10 = arith.constant 0 : index
    %c0_11 = arith.constant 0 : index
    %5 = vector.load %arg8[%c8, %c0_10, %c0_11] : memref<10x18x4xf32, #tpu.memory_space<vmem>>, vector<2x18x4xf32>
    tpu.vector_store %arg8[%c8, %c0_10, %c0_11], %4 {strides = array<i32>} : memref<10x18x4xf32, #tpu.memory_space<vmem>>, vector<2x18x4xf32>,
    %c0_12 = arith.constant 0 : index
    %c0_13 = arith.constant 0 : index
    %c0_14 = arith.constant 0 : index
    %6 = vector.load %arg8[%c0_12, %c0_13, %c0_14] : memref<10x18x4xf32, #tpu.memory_space<vmem>>, vector<10x18x4xf32>
    %7 = vector.extract_strided_slice %6 {offsets = [0, 0, 0], sizes = [8, 16, 4], strides = [1, 1, 1]} : vector<10x18x4xf32> to vector<8x16x4xf32>
    %8 = vector.shape_cast %7 : vector<8x16x4xf32> to vector<128x4xf32>
    %c0_15 = arith.constant 0 : index
    %c0_16 = arith.constant 0 : index
    %9 = vector.load %arg9[%c0_15, %c0_16] : memref<128x36xf32, #tpu.memory_space<vmem>>, vector<128x4xf32>
    tpu.vector_store %arg9[%c0_15, %c0_16], %8 {strides = array<i32>} : memref<128x36xf32, #tpu.memory_space<vmem>>, vector<128x4xf32>,
    %10 = vector.extract_strided_slice %6 {offsets = [0, 1, 0], sizes = [8, 16, 4], strides = [1, 1, 1]} : vector<10x18x4xf32> to vector<8x16x4xf32>
    %11 = vector.shape_cast %10 : vector<8x16x4xf32> to vector<128x4xf32>
    %c0_17 = arith.constant 0 : index
    %c4 = arith.constant 4 : index
    %12 = vector.load %arg9[%c0_17, %c4] : memref<128x36xf32, #tpu.memory_space<vmem>>, vector<128x4xf32>
    tpu.vector_store %arg9[%c0_17, %c4], %11 {strides = array<i32>} : memref<128x36xf32, #tpu.memory_space<vmem>>, vector<128x4xf32>,
    %13 = vector.extract_strided_slice %6 {offsets = [0, 2, 0], sizes = [8, 16, 4], strides = [1, 1, 1]} : vector<10x18x4xf32> to vector<8x16x4xf32>
    %14 = vector.shape_cast %13 : vector<8x16x4xf32> to vector<128x4xf32>
    %c0_18 = arith.constant 0 : index
    %c8_19 = arith.constant 8 : index
    %15 = vector.load %arg9[%c0_18, %c8_19] : memref<128x36xf32, #tpu.memory_space<vmem>>, vector<128x4xf32>
    tpu.vector_store %arg9[%c0_18, %c8_19], %14 {strides = array<i32>} : memref<128x36xf32, #tpu.memory_space<vmem>>, vector<128x4xf32>,
    %16 = vector.extract_strided_slice %6 {offsets = [1, 0, 0], sizes = [8, 16, 4], strides = [1, 1, 1]} : vector<10x18x4xf32> to vector<8x16x4xf32>
    %17 = vector.shape_cast %16 : vector<8x16x4xf32> to vector<128x4xf32>
    %c0_20 = arith.constant 0 : index
    %c12 = arith.constant 12 : index
    %18 = vector.load %arg9[%c0_20, %c12] : memref<128x36xf32, #tpu.memory_space<vmem>>, vector<128x4xf32>
    tpu.vector_store %arg9[%c0_20, %c12], %17 {strides = array<i32>} : memref<128x36xf32, #tpu.memory_space<vmem>>, vector<128x4xf32>,
    %19 = vector.extract_strided_slice %6 {offsets = [1, 1, 0], sizes = [8, 16, 4], strides = [1, 1, 1]} : vector<10x18x4xf32> to vector<8x16x4xf32>
    %20 = vector.shape_cast %19 : vector<8x16x4xf32> to vector<128x4xf32>
    %c0_21 = arith.constant 0 : index
    %c16 = arith.constant 16 : index
    %21 = vector.load %arg9[%c0_21, %c16] : memref<128x36xf32, #tpu.memory_space<vmem>>, vector<128x4xf32>
    tpu.vector_store %arg9[%c0_21, %c16], %20 {strides = array<i32>} : memref<128x36xf32, #tpu.memory_space<vmem>>, vector<128x4xf32>,
    %22 = vector.extract_strided_slice %6 {offsets = [1, 2, 0], sizes = [8, 16, 4], strides = [1, 1, 1]} : vector<10x18x4xf32> to vector<8x16x4xf32>
    %23 = vector.shape_cast %22 : vector<8x16x4xf32> to vector<128x4xf32>
    %c0_22 = arith.constant 0 : index
    %c20 = arith.constant 20 : index
    %24 = vector.load %arg9[%c0_22, %c20] : memref<128x36xf32, #tpu.memory_space<vmem>>, vector<128x4xf32>
    tpu.vector_store %arg9[%c0_22, %c20], %23 {strides = array<i32>} : memref<128x36xf32, #tpu.memory_space<vmem>>, vector<128x4xf32>,
    %25 = vector.extract_strided_slice %6 {offsets = [2, 0, 0], sizes = [8, 16, 4], strides = [1, 1, 1]} : vector<10x18x4xf32> to vector<8x16x4xf32>
    %26 = vector.shape_cast %25 : vector<8x16x4xf32> to vector<128x4xf32>
    %c0_23 = arith.constant 0 : index
    %c24 = arith.constant 24 : index
    %27 = vector.load %arg9[%c0_23, %c24] : memref<128x36xf32, #tpu.memory_space<vmem>>, vector<128x4xf32>
    tpu.vector_store %arg9[%c0_23, %c24], %26 {strides = array<i32>} : memref<128x36xf32, #tpu.memory_space<vmem>>, vector<128x4xf32>,
    %28 = vector.extract_strided_slice %6 {offsets = [2, 1, 0], sizes = [8, 16, 4], strides = [1, 1, 1]} : vector<10x18x4xf32> to vector<8x16x4xf32>
    %29 = vector.shape_cast %28 : vector<8x16x4xf32> to vector<128x4xf32>
    %c0_24 = arith.constant 0 : index
    %c28 = arith.constant 28 : index
    %30 = vector.load %arg9[%c0_24, %c28] : memref<128x36xf32, #tpu.memory_space<vmem>>, vector<128x4xf32>
    tpu.vector_store %arg9[%c0_24, %c28], %29 {strides = array<i32>} : memref<128x36xf32, #tpu.memory_space<vmem>>, vector<128x4xf32>,
    %31 = vector.extract_strided_slice %6 {offsets = [2, 2, 0], sizes = [8, 16, 4], strides = [1, 1, 1]} : vector<10x18x4xf32> to vector<8x16x4xf32>
    %32 = vector.shape_cast %31 : vector<8x16x4xf32> to vector<128x4xf32>
    %c0_25 = arith.constant 0 : index
    %c32 = arith.constant 32 : index
    %33 = vector.load %arg9[%c0_25, %c32] : memref<128x36xf32, #tpu.memory_space<vmem>>, vector<128x4xf32>
    tpu.vector_store %arg9[%c0_25, %c32], %32 {strides = array<i32>} : memref<128x36xf32, #tpu.memory_space<vmem>>, vector<128x4xf32>,
    %c0_26 = arith.constant 0 : index
    %c0_27 = arith.constant 0 : index
    %34 = vector.load %arg9[%c0_26, %c0_27] : memref<128x36xf32, #tpu.memory_space<vmem>>, vector<128x36xf32>
    %c0_28 = arith.constant 0 : index
    %c0_29 = arith.constant 0 : index
    %35 = vector.load %arg4[%c0_28, %c0_29] : memref<36x128xf32, #tpu.memory_space<vmem>>, vector<36x128xf32>
    %cst = arith.constant dense<0.000000e+00> : vector<128x128xf32>
    %36 = tpu.matmul %34, %35, %cst {dimension_numbers = #tpu.dot_dimension_numbers<[1], [0], [0], [1], [0, 0, 1, 1], [], []>} : vector<128x36xf32>, vector<36x128xf32>, vector<128x128xf32> -> vector<128x128xf32>
    %c0_30 = arith.constant 0 : index
    %c0_31 = arith.constant 0 : index
    %c0_32 = arith.constant 0 : index
    %37 = vector.load %arg5[%c0_30, %c0_31, %c0_32] : memref<1x128x128xf32, #tpu.memory_space<vmem>>, vector<1x128x128xf32>
    %38 = vector.shape_cast %37 : vector<1x128x128xf32> to vector<128x128xf32>
    %39 = vector.shape_cast %36 : vector<128x128xf32> to vector<1x128x128xf32>
    tpu.vector_store %arg5[%c0_30, %c0_31, %c0_32], %39 {strides = array<i32>} : memref<1x128x128xf32, #tpu.memory_space<vmem>>, vector<1x128x128xf32>,
    %c0_i32 = arith.constant 0 : i32
    %40 = arith.cmpi eq, %arg1, %c0_i32 : i32
    %41 = arith.extui %40 : i1 to i32
    %c0_i32_33 = arith.constant 0 : i32
    %42 = arith.cmpi ne, %41, %c0_i32_33 : i32
    scf.if %42 {
      %cst_48 = arith.constant 0.000000e+00 : f32
      %60 = vector.broadcast %cst_48 : f32 to vector<1x128xf32>
      %c0_49 = arith.constant 0 : index
      %c0_50 = arith.constant 0 : index
      %c0_51 = arith.constant 0 : index
      %61 = vector.load %arg6[%c0_49, %c0_50, %c0_51] : memref<1x1x128xf32, #tpu.memory_space<vmem>>, vector<1x1x128xf32>
      %62 = vector.shape_cast %61 : vector<1x1x128xf32> to vector<1x128xf32>
      %63 = vector.shape_cast %60 : vector<1x128xf32> to vector<1x1x128xf32>
      tpu.vector_store %arg6[%c0_49, %c0_50, %c0_51], %63 {strides = array<i32>} : memref<1x1x128xf32, #tpu.memory_space<vmem>>, vector<1x1x128xf32>,
      %cst_52 = arith.constant 0.000000e+00 : f32
      %64 = vector.broadcast %cst_52 : f32 to vector<1x128xf32>
      %c0_53 = arith.constant 0 : index
      %c0_54 = arith.constant 0 : index
      %c0_55 = arith.constant 0 : index
      %65 = vector.load %arg7[%c0_53, %c0_54, %c0_55] : memref<1x1x128xf32, #tpu.memory_space<vmem>>, vector<1x1x128xf32>
      %66 = vector.shape_cast %65 : vector<1x1x128xf32> to vector<1x128xf32>
      %67 = vector.shape_cast %64 : vector<1x128xf32> to vector<1x1x128xf32>
      tpu.vector_store %arg7[%c0_53, %c0_54, %c0_55], %67 {strides = array<i32>} : memref<1x1x128xf32, #tpu.memory_space<vmem>>, vector<1x1x128xf32>,
    } else {
    }
    %c0_34 = arith.constant 0 : index
    %c0_35 = arith.constant 0 : index
    %c0_36 = arith.constant 0 : index
    %43 = vector.load %arg6[%c0_34, %c0_35, %c0_36] : memref<1x1x128xf32, #tpu.memory_space<vmem>>, vector<1x1x128xf32>
    %44 = vector.shape_cast %43 : vector<1x1x128xf32> to vector<1x128xf32>
    %cst_37 = arith.constant dense<0.000000e+00> : vector<128xf32>
    %45 = vector.multi_reduction <add>, %36, %cst_37 [0] : vector<128x128xf32> to vector<128xf32>
    %46 = vector.shape_cast %45 : vector<128xf32> to vector<1x128xf32>
    %47 = arith.addf %44, %46 : vector<1x128xf32>
    %c0_38 = arith.constant 0 : index
    %c0_39 = arith.constant 0 : index
    %c0_40 = arith.constant 0 : index
    %48 = vector.load %arg6[%c0_38, %c0_39, %c0_40] : memref<1x1x128xf32, #tpu.memory_space<vmem>>, vector<1x1x128xf32>
    %49 = vector.shape_cast %48 : vector<1x1x128xf32> to vector<1x128xf32>
    %50 = vector.shape_cast %47 : vector<1x128xf32> to vector<1x1x128xf32>
    tpu.vector_store %arg6[%c0_38, %c0_39, %c0_40], %50 {strides = array<i32>} : memref<1x1x128xf32, #tpu.memory_space<vmem>>, vector<1x1x128xf32>,
    %c0_41 = arith.constant 0 : index
    %c0_42 = arith.constant 0 : index
    %c0_43 = arith.constant 0 : index
    %51 = vector.load %arg7[%c0_41, %c0_42, %c0_43] : memref<1x1x128xf32, #tpu.memory_space<vmem>>, vector<1x1x128xf32>
    %52 = vector.shape_cast %51 : vector<1x1x128xf32> to vector<1x128xf32>
    %53 = arith.mulf %36, %36 : vector<128x128xf32>
    %cst_44 = arith.constant dense<0.000000e+00> : vector<128xf32>
    %54 = vector.multi_reduction <add>, %53, %cst_44 [0] : vector<128x128xf32> to vector<128xf32>
    %55 = vector.shape_cast %54 : vector<128xf32> to vector<1x128xf32>
    %56 = arith.addf %52, %55 : vector<1x128xf32>
    %c0_45 = arith.constant 0 : index
    %c0_46 = arith.constant 0 : index
    %c0_47 = arith.constant 0 : index
    %57 = vector.load %arg7[%c0_45, %c0_46, %c0_47] : memref<1x1x128xf32, #tpu.memory_space<vmem>>, vector<1x1x128xf32>
    %58 = vector.shape_cast %57 : vector<1x1x128xf32> to vector<1x128xf32>
    %59 = vector.shape_cast %56 : vector<1x128xf32> to vector<1x1x128xf32>
    tpu.vector_store %arg7[%c0_45, %c0_46, %c0_47], %59 {strides = array<i32>} : memref<1x1x128xf32, #tpu.memory_space<vmem>>, vector<1x1x128xf32>,
    return
  }
  func.func @transform_0(%arg0: i32, %arg1: i32) -> (i32, i32, i32, i32) {
    %c0_i32 = arith.constant 0 : i32
    %c0_i32_0 = arith.constant 0 : i32
    %c0_i32_1 = arith.constant 0 : i32
    return %arg0, %arg1, %c0_i32, %c0_i32_0 : i32, i32, i32, i32
  }
  func.func @transform_1(%arg0: i32, %arg1: i32) -> (i32, i32, i32, i32) {
    %c1_i32 = arith.constant 1 : i32
    %0 = arith.addi %arg1, %c1_i32 : i32
    %c4_i32 = arith.constant 4 : i32
    %1 = arith.muli %0, %c4_i32 : i32
    %c0_i32 = arith.constant 0 : i32
    %c0_i32_0 = arith.constant 0 : i32
    %c0_i32_1 = arith.constant 0 : i32
    return %arg0, %1, %c0_i32, %c0_i32_0 : i32, i32, i32, i32
  }
  func.func @transform_2(%arg0: i32, %arg1: i32) -> (i32, i32) {
    %c0_i32 = arith.constant 0 : i32
    %c0_i32_0 = arith.constant 0 : i32
    %c0_i32_1 = arith.constant 0 : i32
    return %c0_i32, %c0_i32_0 : i32, i32
  }
  func.func @transform_3(%arg0: i32, %arg1: i32) -> (i32, i32, i32) {
    %c0_i32 = arith.constant 0 : i32
    %c0_i32_0 = arith.constant 0 : i32
    return %arg0, %arg1, %c0_i32 : i32, i32, i32
  }
  func.func @transform_4(%arg0: i32, %arg1: i32) -> (i32, i32, i32) {
    %c0_i32 = arith.constant 0 : i32
    %c0_i32_0 = arith.constant 0 : i32
    %c0_i32_1 = arith.constant 0 : i32
    return %arg0, %c0_i32, %c0_i32_0 : i32, i32, i32
  }
  func.func @transform_5(%arg0: i32, %arg1: i32) -> (i32, i32, i32) {
    %c0_i32 = arith.constant 0 : i32
    %c0_i32_0 = arith.constant 0 : i32
    %c0_i32_1 = arith.constant 0 : i32
    return %arg0, %c0_i32, %c0_i32_0 : i32, i32, i32
  }
}

module attributes {stable_mosaic.version = 11 : i64} {
  func.func @kernel(%arg0: i32, %arg1: i32, %arg2: memref<1x8x18x128xf32, #tpu.memory_space<vmem>>, %arg3: memref<1x2x18x128xf32, #tpu.memory_space<vmem>>, %arg4: memref<1152x128xf32, #tpu.memory_space<vmem>>, %arg5: memref<1x128x128xf32, #tpu.memory_space<vmem>>, %arg6: memref<1x1x128xf32, #tpu.memory_space<vmem>>, %arg7: memref<1x1x128xf32, #tpu.memory_space<vmem>>, %arg8: memref<10x18x128xf32, #tpu.memory_space<vmem>>, %arg9: memref<128x1152xf32, #tpu.memory_space<vmem>>) attributes {dimension_semantics = [#tpu.dimension_semantics<parallel>, #tpu.dimension_semantics<arbitrary>], iteration_bounds = array<i64: 2, 2>, scalar_prefetch = 0 : i64, scratch_operands = 2 : i64, tpu.core_type = #tpu.core_type<tc>, window_params = [{transform_indices = @transform_0, window_bounds = array<i64: 1, 8, 18, 128>}, {transform_indices = @transform_1, window_bounds = array<i64: 1, 2, 18, 128>}, {pipeline_mode = #tpu.pipeline_mode<synchronous>, transform_indices = @transform_2, window_bounds = array<i64: 1152, 128>}, {transform_indices = @transform_3, window_bounds = array<i64: 1, 128, 128>}, {transform_indices = @transform_4, window_bounds = array<i64: 1, 1, 128>}, {transform_indices = @transform_5, window_bounds = array<i64: 1, 1, 128>}]} {
    %c0 = arith.constant 0 : index
    %c0_0 = arith.constant 0 : index
    %c0_1 = arith.constant 0 : index
    %c0_2 = arith.constant 0 : index
    %0 = vector.load %arg2[%c0, %c0_0, %c0_1, %c0_2] : memref<1x8x18x128xf32, #tpu.memory_space<vmem>>, vector<1x8x18x128xf32>
    %1 = vector.shape_cast %0 : vector<1x8x18x128xf32> to vector<8x18x128xf32>
    %c0_3 = arith.constant 0 : index
    %c0_4 = arith.constant 0 : index
    %c0_5 = arith.constant 0 : index
    %2 = vector.load %arg8[%c0_3, %c0_4, %c0_5] : memref<10x18x128xf32, #tpu.memory_space<vmem>>, vector<8x18x128xf32>
    tpu.vector_store %arg8[%c0_3, %c0_4, %c0_5], %1 {strides = array<i32>} : memref<10x18x128xf32, #tpu.memory_space<vmem>>, vector<8x18x128xf32>,
    %c0_6 = arith.constant 0 : index
    %c0_7 = arith.constant 0 : index
    %c0_8 = arith.constant 0 : index
    %c0_9 = arith.constant 0 : index
    %3 = vector.load %arg3[%c0_6, %c0_7, %c0_8, %c0_9] : memref<1x2x18x128xf32, #tpu.memory_space<vmem>>, vector<1x2x18x128xf32>
    %4 = vector.shape_cast %3 : vector<1x2x18x128xf32> to vector<2x18x128xf32>
    %c8 = arith.constant 8 : index
    %c0_10 = arith.constant 0 : index
    %c0_11 = arith.constant 0 : index
    %5 = vector.load %arg8[%c8, %c0_10, %c0_11] : memref<10x18x128xf32, #tpu.memory_space<vmem>>, vector<2x18x128xf32>
    tpu.vector_store %arg8[%c8, %c0_10, %c0_11], %4 {strides = array<i32>} : memref<10x18x128xf32, #tpu.memory_space<vmem>>, vector<2x18x128xf32>,
    %c0_12 = arith.constant 0 : index
    %c0_13 = arith.constant 0 : index
    %c0_14 = arith.constant 0 : index
    %6 = vector.load %arg8[%c0_12, %c0_13, %c0_14] : memref<10x18x128xf32, #tpu.memory_space<vmem>>, vector<10x18x128xf32>
    %7 = vector.extract_strided_slice %6 {offsets = [0, 0, 0], sizes = [8, 16, 128], strides = [1, 1, 1]} : vector<10x18x128xf32> to vector<8x16x128xf32>
    %8 = vector.shape_cast %7 : vector<8x16x128xf32> to vector<128x128xf32>
    %c0_15 = arith.constant 0 : index
    %c0_16 = arith.constant 0 : index
    %9 = vector.load %arg9[%c0_15, %c0_16] : memref<128x1152xf32, #tpu.memory_space<vmem>>, vector<128x128xf32>
    tpu.vector_store %arg9[%c0_15, %c0_16], %8 {strides = array<i32>} : memref<128x1152xf32, #tpu.memory_space<vmem>>, vector<128x128xf32>,
    %10 = vector.extract_strided_slice %6 {offsets = [0, 1, 0], sizes = [8, 16, 128], strides = [1, 1, 1]} : vector<10x18x128xf32> to vector<8x16x128xf32>
    %11 = vector.shape_cast %10 : vector<8x16x128xf32> to vector<128x128xf32>
    %c0_17 = arith.constant 0 : index
    %c128 = arith.constant 128 : index
    %12 = vector.load %arg9[%c0_17, %c128] : memref<128x1152xf32, #tpu.memory_space<vmem>>, vector<128x128xf32>
    tpu.vector_store %arg9[%c0_17, %c128], %11 {strides = array<i32>} : memref<128x1152xf32, #tpu.memory_space<vmem>>, vector<128x128xf32>,
    %13 = vector.extract_strided_slice %6 {offsets = [0, 2, 0], sizes = [8, 16, 128], strides = [1, 1, 1]} : vector<10x18x128xf32> to vector<8x16x128xf32>
    %14 = vector.shape_cast %13 : vector<8x16x128xf32> to vector<128x128xf32>
    %c0_18 = arith.constant 0 : index
    %c256 = arith.constant 256 : index
    %15 = vector.load %arg9[%c0_18, %c256] : memref<128x1152xf32, #tpu.memory_space<vmem>>, vector<128x128xf32>
    tpu.vector_store %arg9[%c0_18, %c256], %14 {strides = array<i32>} : memref<128x1152xf32, #tpu.memory_space<vmem>>, vector<128x128xf32>,
    %16 = vector.extract_strided_slice %6 {offsets = [1, 0, 0], sizes = [8, 16, 128], strides = [1, 1, 1]} : vector<10x18x128xf32> to vector<8x16x128xf32>
    %17 = vector.shape_cast %16 : vector<8x16x128xf32> to vector<128x128xf32>
    %c0_19 = arith.constant 0 : index
    %c384 = arith.constant 384 : index
    %18 = vector.load %arg9[%c0_19, %c384] : memref<128x1152xf32, #tpu.memory_space<vmem>>, vector<128x128xf32>
    tpu.vector_store %arg9[%c0_19, %c384], %17 {strides = array<i32>} : memref<128x1152xf32, #tpu.memory_space<vmem>>, vector<128x128xf32>,
    %19 = vector.extract_strided_slice %6 {offsets = [1, 1, 0], sizes = [8, 16, 128], strides = [1, 1, 1]} : vector<10x18x128xf32> to vector<8x16x128xf32>
    %20 = vector.shape_cast %19 : vector<8x16x128xf32> to vector<128x128xf32>
    %c0_20 = arith.constant 0 : index
    %c512 = arith.constant 512 : index
    %21 = vector.load %arg9[%c0_20, %c512] : memref<128x1152xf32, #tpu.memory_space<vmem>>, vector<128x128xf32>
    tpu.vector_store %arg9[%c0_20, %c512], %20 {strides = array<i32>} : memref<128x1152xf32, #tpu.memory_space<vmem>>, vector<128x128xf32>,
    %22 = vector.extract_strided_slice %6 {offsets = [1, 2, 0], sizes = [8, 16, 128], strides = [1, 1, 1]} : vector<10x18x128xf32> to vector<8x16x128xf32>
    %23 = vector.shape_cast %22 : vector<8x16x128xf32> to vector<128x128xf32>
    %c0_21 = arith.constant 0 : index
    %c640 = arith.constant 640 : index
    %24 = vector.load %arg9[%c0_21, %c640] : memref<128x1152xf32, #tpu.memory_space<vmem>>, vector<128x128xf32>
    tpu.vector_store %arg9[%c0_21, %c640], %23 {strides = array<i32>} : memref<128x1152xf32, #tpu.memory_space<vmem>>, vector<128x128xf32>,
    %25 = vector.extract_strided_slice %6 {offsets = [2, 0, 0], sizes = [8, 16, 128], strides = [1, 1, 1]} : vector<10x18x128xf32> to vector<8x16x128xf32>
    %26 = vector.shape_cast %25 : vector<8x16x128xf32> to vector<128x128xf32>
    %c0_22 = arith.constant 0 : index
    %c768 = arith.constant 768 : index
    %27 = vector.load %arg9[%c0_22, %c768] : memref<128x1152xf32, #tpu.memory_space<vmem>>, vector<128x128xf32>
    tpu.vector_store %arg9[%c0_22, %c768], %26 {strides = array<i32>} : memref<128x1152xf32, #tpu.memory_space<vmem>>, vector<128x128xf32>,
    %28 = vector.extract_strided_slice %6 {offsets = [2, 1, 0], sizes = [8, 16, 128], strides = [1, 1, 1]} : vector<10x18x128xf32> to vector<8x16x128xf32>
    %29 = vector.shape_cast %28 : vector<8x16x128xf32> to vector<128x128xf32>
    %c0_23 = arith.constant 0 : index
    %c896 = arith.constant 896 : index
    %30 = vector.load %arg9[%c0_23, %c896] : memref<128x1152xf32, #tpu.memory_space<vmem>>, vector<128x128xf32>
    tpu.vector_store %arg9[%c0_23, %c896], %29 {strides = array<i32>} : memref<128x1152xf32, #tpu.memory_space<vmem>>, vector<128x128xf32>,
    %31 = vector.extract_strided_slice %6 {offsets = [2, 2, 0], sizes = [8, 16, 128], strides = [1, 1, 1]} : vector<10x18x128xf32> to vector<8x16x128xf32>
    %32 = vector.shape_cast %31 : vector<8x16x128xf32> to vector<128x128xf32>
    %c0_24 = arith.constant 0 : index
    %c1024 = arith.constant 1024 : index
    %33 = vector.load %arg9[%c0_24, %c1024] : memref<128x1152xf32, #tpu.memory_space<vmem>>, vector<128x128xf32>
    tpu.vector_store %arg9[%c0_24, %c1024], %32 {strides = array<i32>} : memref<128x1152xf32, #tpu.memory_space<vmem>>, vector<128x128xf32>,
    %c0_25 = arith.constant 0 : index
    %c0_26 = arith.constant 0 : index
    %34 = vector.load %arg9[%c0_25, %c0_26] : memref<128x1152xf32, #tpu.memory_space<vmem>>, vector<128x1152xf32>
    %c0_27 = arith.constant 0 : index
    %c0_28 = arith.constant 0 : index
    %35 = vector.load %arg4[%c0_27, %c0_28] : memref<1152x128xf32, #tpu.memory_space<vmem>>, vector<1152x128xf32>
    %cst = arith.constant dense<0.000000e+00> : vector<128x128xf32>
    %36 = tpu.matmul %34, %35, %cst {dimension_numbers = #tpu.dot_dimension_numbers<[1], [0], [0], [1], [0, 0, 1, 1], [], []>} : vector<128x1152xf32>, vector<1152x128xf32>, vector<128x128xf32> -> vector<128x128xf32>
    %c0_29 = arith.constant 0 : index
    %c0_30 = arith.constant 0 : index
    %c0_31 = arith.constant 0 : index
    %37 = vector.load %arg5[%c0_29, %c0_30, %c0_31] : memref<1x128x128xf32, #tpu.memory_space<vmem>>, vector<1x128x128xf32>
    %38 = vector.shape_cast %37 : vector<1x128x128xf32> to vector<128x128xf32>
    %39 = vector.shape_cast %36 : vector<128x128xf32> to vector<1x128x128xf32>
    tpu.vector_store %arg5[%c0_29, %c0_30, %c0_31], %39 {strides = array<i32>} : memref<1x128x128xf32, #tpu.memory_space<vmem>>, vector<1x128x128xf32>,
    %c0_i32 = arith.constant 0 : i32
    %40 = arith.cmpi eq, %arg1, %c0_i32 : i32
    %41 = arith.extui %40 : i1 to i32
    %c0_i32_32 = arith.constant 0 : i32
    %42 = arith.cmpi ne, %41, %c0_i32_32 : i32
    scf.if %42 {
      %cst_47 = arith.constant 0.000000e+00 : f32
      %60 = vector.broadcast %cst_47 : f32 to vector<1x128xf32>
      %c0_48 = arith.constant 0 : index
      %c0_49 = arith.constant 0 : index
      %c0_50 = arith.constant 0 : index
      %61 = vector.load %arg6[%c0_48, %c0_49, %c0_50] : memref<1x1x128xf32, #tpu.memory_space<vmem>>, vector<1x1x128xf32>
      %62 = vector.shape_cast %61 : vector<1x1x128xf32> to vector<1x128xf32>
      %63 = vector.shape_cast %60 : vector<1x128xf32> to vector<1x1x128xf32>
      tpu.vector_store %arg6[%c0_48, %c0_49, %c0_50], %63 {strides = array<i32>} : memref<1x1x128xf32, #tpu.memory_space<vmem>>, vector<1x1x128xf32>,
      %cst_51 = arith.constant 0.000000e+00 : f32
      %64 = vector.broadcast %cst_51 : f32 to vector<1x128xf32>
      %c0_52 = arith.constant 0 : index
      %c0_53 = arith.constant 0 : index
      %c0_54 = arith.constant 0 : index
      %65 = vector.load %arg7[%c0_52, %c0_53, %c0_54] : memref<1x1x128xf32, #tpu.memory_space<vmem>>, vector<1x1x128xf32>
      %66 = vector.shape_cast %65 : vector<1x1x128xf32> to vector<1x128xf32>
      %67 = vector.shape_cast %64 : vector<1x128xf32> to vector<1x1x128xf32>
      tpu.vector_store %arg7[%c0_52, %c0_53, %c0_54], %67 {strides = array<i32>} : memref<1x1x128xf32, #tpu.memory_space<vmem>>, vector<1x1x128xf32>,
    } else {
    }
    %c0_33 = arith.constant 0 : index
    %c0_34 = arith.constant 0 : index
    %c0_35 = arith.constant 0 : index
    %43 = vector.load %arg6[%c0_33, %c0_34, %c0_35] : memref<1x1x128xf32, #tpu.memory_space<vmem>>, vector<1x1x128xf32>
    %44 = vector.shape_cast %43 : vector<1x1x128xf32> to vector<1x128xf32>
    %cst_36 = arith.constant dense<0.000000e+00> : vector<128xf32>
    %45 = vector.multi_reduction <add>, %36, %cst_36 [0] : vector<128x128xf32> to vector<128xf32>
    %46 = vector.shape_cast %45 : vector<128xf32> to vector<1x128xf32>
    %47 = arith.addf %44, %46 : vector<1x128xf32>
    %c0_37 = arith.constant 0 : index
    %c0_38 = arith.constant 0 : index
    %c0_39 = arith.constant 0 : index
    %48 = vector.load %arg6[%c0_37, %c0_38, %c0_39] : memref<1x1x128xf32, #tpu.memory_space<vmem>>, vector<1x1x128xf32>
    %49 = vector.shape_cast %48 : vector<1x1x128xf32> to vector<1x128xf32>
    %50 = vector.shape_cast %47 : vector<1x128xf32> to vector<1x1x128xf32>
    tpu.vector_store %arg6[%c0_37, %c0_38, %c0_39], %50 {strides = array<i32>} : memref<1x1x128xf32, #tpu.memory_space<vmem>>, vector<1x1x128xf32>,
    %c0_40 = arith.constant 0 : index
    %c0_41 = arith.constant 0 : index
    %c0_42 = arith.constant 0 : index
    %51 = vector.load %arg7[%c0_40, %c0_41, %c0_42] : memref<1x1x128xf32, #tpu.memory_space<vmem>>, vector<1x1x128xf32>
    %52 = vector.shape_cast %51 : vector<1x1x128xf32> to vector<1x128xf32>
    %53 = arith.mulf %36, %36 : vector<128x128xf32>
    %cst_43 = arith.constant dense<0.000000e+00> : vector<128xf32>
    %54 = vector.multi_reduction <add>, %53, %cst_43 [0] : vector<128x128xf32> to vector<128xf32>
    %55 = vector.shape_cast %54 : vector<128xf32> to vector<1x128xf32>
    %56 = arith.addf %52, %55 : vector<1x128xf32>
    %c0_44 = arith.constant 0 : index
    %c0_45 = arith.constant 0 : index
    %c0_46 = arith.constant 0 : index
    %57 = vector.load %arg7[%c0_44, %c0_45, %c0_46] : memref<1x1x128xf32, #tpu.memory_space<vmem>>, vector<1x1x128xf32>
    %58 = vector.shape_cast %57 : vector<1x1x128xf32> to vector<1x128xf32>
    %59 = vector.shape_cast %56 : vector<1x128xf32> to vector<1x1x128xf32>
    tpu.vector_store %arg7[%c0_44, %c0_45, %c0_46], %59 {strides = array<i32>} : memref<1x1x128xf32, #tpu.memory_space<vmem>>, vector<1x1x128xf32>,
    return
  }
  func.func @transform_0(%arg0: i32, %arg1: i32) -> (i32, i32, i32, i32) {
    %c0_i32 = arith.constant 0 : i32
    %c0_i32_0 = arith.constant 0 : i32
    %c0_i32_1 = arith.constant 0 : i32
    return %arg0, %arg1, %c0_i32, %c0_i32_0 : i32, i32, i32, i32
  }
  func.func @transform_1(%arg0: i32, %arg1: i32) -> (i32, i32, i32, i32) {
    %c1_i32 = arith.constant 1 : i32
    %0 = arith.addi %arg1, %c1_i32 : i32
    %c4_i32 = arith.constant 4 : i32
    %1 = arith.muli %0, %c4_i32 : i32
    %c0_i32 = arith.constant 0 : i32
    %c0_i32_0 = arith.constant 0 : i32
    %c0_i32_1 = arith.constant 0 : i32
    return %arg0, %1, %c0_i32, %c0_i32_0 : i32, i32, i32, i32
  }
  func.func @transform_2(%arg0: i32, %arg1: i32) -> (i32, i32) {
    %c0_i32 = arith.constant 0 : i32
    %c0_i32_0 = arith.constant 0 : i32
    %c0_i32_1 = arith.constant 0 : i32
    return %c0_i32, %c0_i32_0 : i32, i32
  }
  func.func @transform_3(%arg0: i32, %arg1: i32) -> (i32, i32, i32) {
    %c0_i32 = arith.constant 0 : i32
    %c0_i32_0 = arith.constant 0 : i32
    return %arg0, %arg1, %c0_i32 : i32, i32, i32
  }
  func.func @transform_4(%arg0: i32, %arg1: i32) -> (i32, i32, i32) {
    %c0_i32 = arith.constant 0 : i32
    %c0_i32_0 = arith.constant 0 : i32
    %c0_i32_1 = arith.constant 0 : i32
    return %arg0, %c0_i32, %c0_i32_0 : i32, i32, i32
  }
  func.func @transform_5(%arg0: i32, %arg1: i32) -> (i32, i32, i32) {
    %c0_i32 = arith.constant 0 : i32
    %c0_i32_0 = arith.constant 0 : i32
    %c0_i32_1 = arith.constant 0 : i32
    return %arg0, %c0_i32, %c0_i32_0 : i32, i32, i32
  }
}

</mosaic_0001>

<bundles_post_ra>
// kernel: d_conv_layer_forward.5
= control target key start
LH: loop header
LB: loop body
LE: loop exit
PB: predicated region body
PF: predicated region fallthrough
CT: control target
= control target key end

     0   :  { %s447_s12 = smov 0   ;;  %s606_s0 = inlined_call_operand.vmem [shape: f32[512,128], index: 0, kind: input, shape index: {}]   ;;  %s607_s1 = inlined_call_operand.vmem [shape: f32[1,128], index: 1, kind: input, shape index: {}]   ;;  %s608_s2 = inlined_call_operand.vmem [shape: f32[1,128], index: 2, kind: input, shape index: {}]   ;;  %s609_s3 = inlined_call_operand.vmem [shape: f32[512,128], index: 3, kind: output, shape index: {}]  }
   0x1 LB: > { %s398_s13 = sadd.s32 4294967295, %s425_s12   ;;  %p402_p0 = scmp.ge.s32.totalorder %s425_s12, 1  ;;  %s425_s12 = sphi %s447_s12, %s13_s12  }
   0x2   : > { %p138_p1 = scmp.lt.s32.totalorder %s425_s12, 3 }
   0x4   : > { %p139_p2 = pnand %p402_p0, %p138_p1 }
   0x5   : > { %s403_s14 = sshll.u32 (!%p139_p2), %s398_s13, 5 }
   0x6   : > { %142 = sbr.rel (%p139_p2) target bundleno = 53 (0x35), region = 32  ;;  %p163_p3 = scmp.lt.s32.totalorder (!%p139_p2), %s403_s14, 63 }
   0xb   : > { %s611_s14 = smov (!%p163_p3, %s403_s14), 63  ;;  %v458_v0 = vld [vmem:[%s607_s1] ss:$0 sm:$0xff] }
   0xc   : > { %s404_s17 = sshll.u32 %s611_s14, 3  ;;  %v468_v1 = vld [vmem:[%s608_s2] ss:$0 sm:$0xff] }
   0xd   : > { %s463_s20 = scalar_lea.vmem %s606_s0, %s404_s17  ;;  %s491_s25 = scalar_lea.vmem %s609_s3, %s404_s17 }
   0xe   : > { %v174_v2 = vld [vmem:[%s463_s20] sm:$0xff]  ;;  %v175_v3 = vld [vmem:[%s463_s20 + $0x8] sm:$0xff]  ;;  %v176_v4 = vld [vmem:[%s463_s20 + $0x10] sm:$0xff] }
   0xf   : > { %v210_v5 = vmul.f32 %v458_v0, %v174_v2  ;;  %v211_v6 = vmul.f32 %v458_v0, %v175_v3  ;;  %v212_v7 = vmul.f32 %v458_v0, %v176_v4  ;;  %v177_v8 = vld [vmem:[%s463_s20 + $0x18] sm:$0xff]  ;;  %v178_v9 = vld [vmem:[%s463_s20 + $0x20] sm:$0xff]  ;;  %v179_v10 = vld [vmem:[%s463_s20 + $0x28] sm:$0xff] }
  0x10   : > { %v213_v11 = vmul.f32 %v458_v0, %v177_v8  ;;  %v214_v12 = vmul.f32 %v458_v0, %v178_v9  ;;  %v215_v13 = vmul.f32 %v458_v0, %v179_v10  ;;  %v180_v14 = vld [vmem:[%s463_s20 + $0x30] sm:$0xff]  ;;  %v181_v15 = vld [vmem:[%s463_s20 + $0x38] sm:$0xff]  ;;  %v182_v24 = vld [vmem:[%s463_s20 + $0x40] sm:$0xff] }
  0x11   : > { %v246_v16 = vadd.f32 %v468_v1, %v210_v5  ;;  %v247_v17 = vadd.f32 %v468_v1, %v211_v6  ;;  %v248_v18 = vadd.f32 %v468_v1, %v212_v7  ;;  %v216_v19 = vmul.f32 %v458_v0, %v180_v14  ;;  %v183_v25 = vld [vmem:[%s463_s20 + $0x48] sm:$0xff]  ;;  %v184_v26 = vld [vmem:[%s463_s20 + $0x50] sm:$0xff]  ;;  %v185_v31 = vld [vmem:[%s463_s20 + $0x58] sm:$0xff] }
  0x12   : > { %v249_v20 = vadd.f32 %v468_v1, %v213_v11  ;;  %v250_v21 = vadd.f32 %v468_v1, %v214_v12  ;;  %v251_v22 = vadd.f32 %v468_v1, %v215_v13  ;;  %v217_v23 = vmul.f32 %v458_v0, %v181_v15  ;;  %v186_v32 = vld [vmem:[%s463_s20 + $0x60] sm:$0xff]  ;;  %v187_v33 = vld [vmem:[%s463_s20 + $0x68] sm:$0xff]  ;;  %v188_v37 = vld [vmem:[%s463_s20 + $0x70] sm:$0xff] }
  0x13   : > { %v278_v27 = vmax.f32 %v246_v16, 0.0  ;;  %v279_v28 = vmax.f32 %v247_v17, 0.0  ;;  %v280_v29 = vmax.f32 %v248_v18, 0.0  ;;  %v252_v30 = vadd.f32 %v468_v1, %v216_v19  ;;  %v189_v42 = vld [vmem:[%s463_s20 + $0x78] sm:$0xff]  ;;  %v190_v54 = vld [vmem:[%s463_s20 + $0x80] sm:$0xff]  ;;  %v191_v55 = vld [vmem:[%s463_s20 + $0x88] sm:$0xff] }
  0x14   : > { %v281_v34 = vmax.f32 %v249_v20, 0.0  ;;  %v282_v35 = vmax.f32 %v250_v21, 0.0  ;;  %v253_v36 = vadd.f32 %v468_v1, %v217_v23  ;;  %v283_v38 = vmax.f32 %v251_v22, 0.0  ;;  %v192_v56 = vld [vmem:[%s463_s20 + $0x90] sm:$0xff]  ;;  %v193_v59 = vld [vmem:[%s463_s20 + $0x98] sm:$0xff]  ;;  %v194_v63 = vld [vmem:[%s463_s20 + $0xa0] sm:$0xff] }
  0x15   : > { %310 = vst [vmem:[%s491_s25] sm:$0xff] %v278_v27  ;;  %v218_v39 = vmul.f32 %v458_v0, %v182_v24  ;;  %v219_v40 = vmul.f32 %v458_v0, %v183_v25  ;;  %v220_v41 = vmul.f32 %v458_v0, %v184_v26  ;;  %v284_v43 = vmax.f32 %v252_v30, 0.0  ;;  %v195_v6 = vld [vmem:[%s463_s20 + $0xa8] sm:$0xff]  ;;  %v196_v10 = vld [vmem:[%s463_s20 + $0xb0] sm:$0xff]  ;;  %v197_v14 = vld [vmem:[%s463_s20 + $0xb8] sm:$0xff] }
  0x16   : > { %311 = vst [vmem:[%s491_s25 + $0x8] sm:$0xff] %v279_v28  ;;  %v221_v44 = vmul.f32 %v458_v0, %v185_v31  ;;  %v222_v45 = vmul.f32 %v458_v0, %v186_v32  ;;  %v223_v46 = vmul.f32 %v458_v0, %v187_v33  ;;  %v224_v50 = vmul.f32 %v458_v0, %v188_v37  ;;  %v198_v18 = vld [vmem:[%s463_s20 + $0xc0] sm:$0xff]  ;;  %v199_v22 = vld [vmem:[%s463_s20 + $0xc8] sm:$0xff]  ;;  %v200_v26 = vld [vmem:[%s463_s20 + $0xd0] sm:$0xff] }
  0x17   : > { %312 = vst [vmem:[%s491_s25 + $0x10] sm:$0xff] %v280_v29  ;;  %v254_v47 = vadd.f32 %v468_v1, %v218_v39  ;;  %v255_v48 = vadd.f32 %v468_v1, %v219_v40  ;;  %v256_v49 = vadd.f32 %v468_v1, %v220_v41  ;;  %v285_v51 = vmax.f32 %v253_v36, 0.0  ;;  %v201_v30 = vld [vmem:[%s463_s20 + $0xd8] sm:$0xff] }
  0x18   : > { %313 = vst [vmem:[%s491_s25 + $0x18] sm:$0xff] %v281_v34  ;;  %v257_v52 = vadd.f32 %v468_v1, %v221_v44  ;;  %v225_v53 = vmul.f32 %v458_v0, %v189_v42  ;;  %v258_v58 = vadd.f32 %v468_v1, %v222_v45  ;;  %v259_v62 = vadd.f32 %v468_v1, %v223_v46  ;;  %v202_v34 = vld [vmem:[%s463_s20 + $0xe0] sm:$0xff]  ;;  %v204_v42 = vld [vmem:[%s463_s20 + $0xf0] sm:$0xff]  ;;  %v205_v46 = vld [vmem:[%s463_s20 + $0xf8] sm:$0xff] }
  0x19   : > { %314 = vst [vmem:[%s491_s25 + $0x20] sm:$0xff] %v282_v35  ;;  %v286_v57 = vmax.f32 %v254_v47, 0.0  ;;  %v287_v60 = vmax.f32 %v255_v48, 0.0  ;;  %v288_v61 = vmax.f32 %v256_v49, 0.0  ;;  %v260_v2 = vadd.f32 %v468_v1, %v224_v50 }
  0x1a   : > { %315 = vst [vmem:[%s491_s25 + $0x28] sm:$0xff] %v283_v38  ;;  %v226_v3 = vmul.f32 %v458_v0, %v190_v54  ;;  %v227_v4 = vmul.f32 %v458_v0, %v191_v55  ;;  %v228_v5 = vmul.f32 %v458_v0, %v192_v56  ;;  %v289_v7 = vmax.f32 %v257_v52, 0.0  ;;  %v203_v38 = vld [vmem:[%s463_s20 + $0xe8] sm:$0xff] }
  0x1b   : > { %316 = vst [vmem:[%s491_s25 + $0x30] sm:$0xff] %v284_v43  ;;  %v261_v8 = vadd.f32 %v468_v1, %v225_v53  ;;  %v229_v9 = vmul.f32 %v458_v0, %v193_v59  ;;  %v290_v11 = vmax.f32 %v258_v58, 0.0  ;;  %v230_v13 = vmul.f32 %v458_v0, %v194_v63 }
  0x1c   : > { %317 = vst [vmem:[%s491_s25 + $0x38] sm:$0xff] %v285_v51  ;;  %v262_v12 = vadd.f32 %v468_v1, %v226_v3  ;;  %v291_v15 = vmax.f32 %v259_v62, 0.0  ;;  %v263_v16 = vadd.f32 %v468_v1, %v227_v4  ;;  %v231_v17 = vmul.f32 %v458_v0, %v195_v6 }
  0x1d   : > { %318 = vst [vmem:[%s491_s25 + $0x40] sm:$0xff] %v286_v57  ;;  %v292_v19 = vmax.f32 %v260_v2, 0.0  ;;  %v264_v20 = vadd.f32 %v468_v1, %v228_v5  ;;  %v232_v21 = vmul.f32 %v458_v0, %v196_v10  ;;  %v293_v23 = vmax.f32 %v261_v8, 0.0 }
  0x1e   : > { %319 = vst [vmem:[%s491_s25 + $0x48] sm:$0xff] %v287_v60  ;;  %v265_v24 = vadd.f32 %v468_v1, %v229_v9  ;;  %v233_v25 = vmul.f32 %v458_v0, %v197_v14  ;;  %v294_v27 = vmax.f32 %v262_v12, 0.0  ;;  %v266_v28 = vadd.f32 %v468_v1, %v230_v13 }
  0x1f   : > { %320 = vst [vmem:[%s491_s25 + $0x50] sm:$0xff] %v288_v61  ;;  %v234_v29 = vmul.f32 %v458_v0, %v198_v18  ;;  %v295_v31 = vmax.f32 %v263_v16, 0.0  ;;  %v267_v32 = vadd.f32 %v468_v1, %v231_v17  ;;  %v235_v33 = vmul.f32 %v458_v0, %v199_v22 }
  0x20   : > { %321 = vst [vmem:[%s491_s25 + $0x58] sm:$0xff] %v289_v7  ;;  %v296_v35 = vmax.f32 %v264_v20, 0.0  ;;  %v268_v36 = vadd.f32 %v468_v1, %v232_v21  ;;  %v236_v37 = vmul.f32 %v458_v0, %v200_v26  ;;  %v297_v39 = vmax.f32 %v265_v24, 0.0 }
  0x21   : > { %322 = vst [vmem:[%s491_s25 + $0x60] sm:$0xff] %v290_v11  ;;  %v269_v40 = vadd.f32 %v468_v1, %v233_v25  ;;  %v237_v41 = vmul.f32 %v458_v0, %v201_v30  ;;  %v298_v43 = vmax.f32 %v266_v28, 0.0  ;;  %v270_v44 = vadd.f32 %v468_v1, %v234_v29 }
  0x22   : > { %323 = vst [vmem:[%s491_s25 + $0x68] sm:$0xff] %v291_v15  ;;  %v238_v45 = vmul.f32 %v458_v0, %v202_v34  ;;  %v299_v47 = vmax.f32 %v267_v32, 0.0  ;;  %v271_v48 = vadd.f32 %v468_v1, %v235_v33  ;;  %v239_v49 = vmul.f32 %v458_v0, %v203_v38 }
  0x23   : > { %324 = vst [vmem:[%s491_s25 + $0x70] sm:$0xff] %v292_v19  ;;  %v300_v50 = vmax.f32 %v268_v36, 0.0  ;;  %v272_v51 = vadd.f32 %v468_v1, %v236_v37  ;;  %v240_v52 = vmul.f32 %v458_v0, %v204_v42  ;;  %v301_v53 = vmax.f32 %v269_v40, 0.0 }
  0x24   : > { %325 = vst [vmem:[%s491_s25 + $0x78] sm:$0xff] %v293_v23  ;;  %v273_v54 = vadd.f32 %v468_v1, %v237_v41  ;;  %v241_v55 = vmul.f32 %v458_v0, %v205_v46  ;;  %v302_v56 = vmax.f32 %v270_v44, 0.0  ;;  %v274_v57 = vadd.f32 %v468_v1, %v238_v45 }
  0x25   : > { %326 = vst [vmem:[%s491_s25 + $0x80] sm:$0xff] %v294_v27  ;;  %v303_v58 = vmax.f32 %v271_v48, 0.0  ;;  %v275_v59 = vadd.f32 %v468_v1, %v239_v49  ;;  %v304_v60 = vmax.f32 %v272_v51, 0.0  ;;  %v276_v61 = vadd.f32 %v468_v1, %v240_v52 }
  0x26   : > { %327 = vst [vmem:[%s491_s25 + $0x88] sm:$0xff] %v295_v31  ;;  %v305_v0 = vmax.f32 %v273_v54, 0.0  ;;  %v277_v62 = vadd.f32 %v468_v1, %v241_v55  ;;  %v306_v63 = vmax.f32 %v274_v57, 0.0 }
  0x27   : > { %328 = vst [vmem:[%s491_s25 + $0x90] sm:$0xff] %v296_v35  ;;  %v307_v2 = vmax.f32 %v275_v59, 0.0  ;;  %v308_v3 = vmax.f32 %v276_v61, 0.0 }
  0x28   : > { %329 = vst [vmem:[%s491_s25 + $0x98] sm:$0xff] %v297_v39  ;;  %v309_v4 = vmax.f32 %v277_v62, 0.0 }
  0x29   : > { %330 = vst [vmem:[%s491_s25 + $0xa0] sm:$0xff] %v298_v43 }
  0x2a   : > { %331 = vst [vmem:[%s491_s25 + $0xa8] sm:$0xff] %v299_v47 }
  0x2b   : > { %332 = vst [vmem:[%s491_s25 + $0xb0] sm:$0xff] %v300_v50 }
  0x2c   : > { %333 = vst [vmem:[%s491_s25 + $0xb8] sm:$0xff] %v301_v53 }
  0x2d   : > { %334 = vst [vmem:[%s491_s25 + $0xc0] sm:$0xff] %v302_v56 }
  0x2e   : > { %335 = vst [vmem:[%s491_s25 + $0xc8] sm:$0xff] %v303_v58 }
  0x2f   : > { %336 = vst [vmem:[%s491_s25 + $0xd0] sm:$0xff] %v304_v60 }
  0x30   : > { %337 = vst [vmem:[%s491_s25 + $0xd8] sm:$0xff] %v305_v0 }
  0x31   : > { %338 = vst [vmem:[%s491_s25 + $0xe0] sm:$0xff] %v306_v63 }
  0x32   : > { %339 = vst [vmem:[%s491_s25 + $0xe8] sm:$0xff] %v307_v2 }
  0x33   : > { %340 = vst [vmem:[%s491_s25 + $0xf0] sm:$0xff] %v308_v3 }
  0x34   : > { %341 = vst [vmem:[%s491_s25 + $0xf8] sm:$0xff] %v309_v4 }
  0x35 PF: > { %s13_s12 = sadd.s32 1, %s425_s12  }
  0x36   : > { %p10_p4 = scmp.ge.s32.totalorder %s13_s12, 4  }
  0x38   :  { %12 = sbr.rel (!%p10_p4) target bundleno = 1 (0x1), region = 62 }

// kernel: d_conv_layer_forward.4
= control target key start
LH: loop header
LB: loop body
LE: loop exit
PB: predicated region body
PF: predicated region fallthrough
CT: control target
= control target key end

     0   :  { %s1702_s18 = smov 0   ;;  %s1704_s19 = smov 0   ;;  %s2545_s0 = inlined_call_operand.vmem [shape: f32[2,18,18,4], index: 0, kind: input, shape index: {}, may-alias: {0,1}]   ;;  %s2546_s1 = inlined_call_operand.vmem [shape: f32[2,18,18,4], index: 1, kind: input, shape index: {}, may-alias: {0,1}]   ;;  %s2547_s2 = inlined_call_operand.vmem [shape: f32[36,128], index: 2, kind: input, shape index: {}]   ;;  %s2548_s3 = inlined_call_operand.vmem [shape: f32[2,256,128], index: 3, kind: output, shape index: {0}]   ;;  %s2549_s4 = inlined_call_operand.vmem [shape: f32[2,1,128], index: 4, kind: output, shape index: {1}]   ;;  %s2550_s5 = inlined_call_operand.vmem [shape: f32[2,1,128], index: 5, kind: output, shape index: {2}]  }
   0x1   :  { %s1706_s20 = smov 0   ;;  %s1708_s21 = smov 0  }
   0x2   :  { %s1710_s22 = smov 0  }
   0x3 LB: > { %s25_s23 = sadd.s32 1, %s1653_s20  ;;  %s28_s24 = sadd.s32 1, %s1657_s21  ;;  %s1661_s22 = sphi %s1710_s22, %s16_s22   ;;  %s1657_s21 = sphi %s1708_s21, %s2554_s21   ;;  %s1653_s20 = sphi %s1706_s20, %s2553_s20   ;;  %s1649_s19 = sphi %s1704_s19, %s2552_s19   ;;  %s1645_s18 = sphi %s1702_s18, %s2551_s18  }
   0x4   : > { %p26_p0 = scmp.ge.s32.totalorder %s25_s23, 2  ;;  %p1518_p1 = scmp.ge.s32.totalorder %s1661_s22, 1 }
   0x5   : > { %p250_p2 = scmp.lt.s32.totalorder %s1661_s22, 5 }
   0x6   : > { %s2556_s23 = smov (%p26_p0, %s25_s23), 0  ;;  %s2558_s24 = smov (!%p26_p0, %s28_s24), %s1657_s21 }
   0x7   : > { %p251_p3 = pnand %p1518_p1, %p250_p2  ;;  %p30_p4 = scmp.ge.s32.totalorder %s2558_s24, 2 }
   0x8   : > { %s1519_s25 = sshll.u32 (!%p251_p3), %s1645_s18, 3  ;;  %p316_p5 = scmp.lt.s32.totalorder (!%p251_p3), %s1649_s19, 1 }
   0x9   : > { %s2560_s24 = smov (%p30_p4, %s2558_s24), 0  ;;  %254 = sbr.rel (%p251_p3) target bundleno = 673 (0x2a1), region = 32 }
   0xa   : > { %p318_p6 = scmp.lt.s32.totalorder (!%p251_p3), %s1519_s25, 17  ;;  %s1555_s11 = sadd.s32 (!%p251_p3), 8, %s1519_s25 }
   0xb   : > { %p336_p7 = scmp.lt.s32.totalorder (!%p251_p3), %s1555_s11, 17  ;;  %s1665_s7 = smov (!%p251_p3), 12  }
   0xc   : > { %s1666_s8 = smov (!%p251_p3), 16   ;;  %s1670_s13 = smov (!%p251_p3), 32  }
   0xd   : > { %p1544_p9 = scmp.ne.s32.totalorder (!%p251_p3), %s1645_s18, 0 }
   0xe   : > { %s2562_s19 = smov (!%p316_p5, %s1649_s19), 1  ;;  %vm386_vm0 = vcmask 31744   ;;  %s2564_s11 = smov (!%p336_p7, %s1555_s11), 17  ;;  %vm389_vm1 = vcmask 25600   ;;  %vm495_vm2 = vcmask 1046528   ;;  %vm601_vm3 = vcmask 1045504  }
   0xf   : > { %s319_s26 = scalar_select %p318_p6, %s1519_s25, 17  ;;  %vm584_vm4 = vcmask 64544   ;;  %vm690_vm5 = vcmask 97344   ;;  %vm757_vm6 = vcmask 130144   ;;  %vm828_vm7 = vcmask 162944  }
  0x10   : > { %s1572_s27 = smul.u32 54, %s2562_s19  ;;  %s1742_s30 = scalar_lea.vmem %s2549_s4, %s2562_s19  ;;  %vm1193_vm8 = vcmask 1043456   ;;  %vm898_vm9 = vcmask 195744   ;;  %vm965_vm10 = vcmask 228544   ;;  %vm1036_vm11 = vcmask 261344  }
  0x11   : > { %s1571_s6 = smul.u32 3, %s319_s26  ;;  %s1748_s9 = scalar_lea.vmem %s2550_s5, %s2562_s19  ;;  %vm1106_vm12 = vcmask 294144   ;;  %vm1144_vm13 = vcmask 293888  }
  0x12   : > { %s1573_s16 = smul.u32 3, %s2564_s11  ;;  %s1663_s25 = smov 4  }
  0x13   : > { %s322_s10 = sadd.s32 %s1572_s27, %s1571_s6  ;;  %s1664_s26 = smov 8  }
  0x14   : > { %s1520_s12 = sshll.u32 %s322_s10, 3  ;;  %s1766_s17 = sadd.s32 %s1573_s16, %s1572_s27 }
  0x15   : > { %s1753_s15 = scalar_lea.vmem %s2545_s0, %s1520_s12  ;;  %s1523_s27 = sshll.u32 %s1766_s17, 3 }
  0x16   : > { %v365_v0 = vld [vmem:[%s1753_s15 + $0x18] sm:$0xff]  ;;  %v366_v1 = vld [vmem:[%s1753_s15 + $0x20] sm:$0xff]  ;;  %v363_v3 = vld [vmem:[%s1753_s15 + $0x8] sm:$0xff]  ;;  %s2059_s6 = scalar_lea.vmem %s2546_s1, %s1523_s27  ;;  %s1667_s10 = smov 20  }
  0x17   : > { %v362_v2 = vld [vmem:[%s1753_s15] sm:$0xff]  ;;  %391 = vst.msk [vmem:[#allocation2 + $0x18] sm:$0xff] %vm386_vm0, %v365_v0  ;;  %v367_v4 = vld [vmem:[%s1753_s15 + $0x28] sm:$0x3]  ;;  %v364_v5 = vld [vmem:[%s1753_s15 + $0x10] sm:$0x3] }
  0x18   : > { %392 = vst.msk [vmem:[#allocation2 + $0x20] sm:$0xff] %vm386_vm0, %v366_v1  ;;  %v372_v6 = vld [vmem:[%s1753_s15 + $0x50] sm:$0xff]  ;;  %v373_v7 = vld [vmem:[%s1753_s15 + $0x58] sm:$0x3]  ;;  %v371_v13 = vld [vmem:[%s1753_s15 + $0x48] sm:$0xff]  ;;  %s1668_s11 = smov 28  }
  0x19   : > { %387 = vst.msk [vmem:[#allocation2] sm:$0xff] %vm386_vm0, %v362_v2  ;;  %v377_v16 = vld [vmem:[%s1753_s15 + $0x78] sm:$0xff]  ;;  %v378_v21 = vld [vmem:[%s1753_s15 + $0x80] sm:$0xff]  ;;  %v375_v25 = vld [vmem:[%s1753_s15 + $0x68] sm:$0xff]  ;;  %s1669_s12 = smov 24  }
  0x1a   : > { %388 = vst.msk [vmem:[#allocation2 + $0x8] sm:$0xff] %vm386_vm0, %v363_v3  ;;  %v376_v26 = vld [vmem:[%s1753_s15 + $0x70] sm:$0x3]  ;;  %v369_v29 = vld [vmem:[%s1753_s15 + $0x38] sm:$0xff]  ;;  %v382_v39 = vld [vmem:[%s1753_s15 + $0xa0] sm:$0x3] }
  0x1b   : > { %393 = vst.msk [vmem:[#allocation2 + $0x28] sm:$0x3] %vm389_vm1, %v367_v4  ;;  %v368_v28 = vld [vmem:[%s1753_s15 + $0x30] sm:$0xff]  ;;  %v381_v34 = vld [vmem:[%s1753_s15 + $0x98] sm:$0xff]  ;;  %v370_v47 = vld [vmem:[%s1753_s15 + $0x40] sm:$0x3] }
  0x1c   : > { %390 = vst.msk [vmem:[#allocation2 + $0x10] sm:$0x3] %vm389_vm1, %v364_v5  ;;  %v380_v44 = vld [vmem:[%s1753_s15 + $0x90] sm:$0xff]  ;;  %v385_v52 = vld [vmem:[%s1753_s15 + $0xb8] sm:$0x3]  ;;  %v374_v57 = vld [vmem:[%s1753_s15 + $0x60] sm:$0xff] }
  0x1d   : > { %398 = vst.msk [vmem:[#allocation2 + $0x50] sm:$0xff] %vm386_vm0, %v372_v6  ;;  %v384_v51 = vld [vmem:[%s1753_s15 + $0xb0] sm:$0xff]  ;;  %v379_v60 = vld [vmem:[%s1753_s15 + $0x88] sm:$0x3] }
  0x1e   : > { %v1772_v8 = vld [vmem:[#allocation2 + $0x18] sm:$0xff]  ;;  %399 = vst.msk [vmem:[#allocation2 + $0x58] sm:$0x3] %vm389_vm1, %v373_v7  ;;  %v383_v62 = vld [vmem:[%s1753_s15 + $0xa8] sm:$0xff] }
  0x1f   : > { %v1775_v9 = vld [vmem:[#allocation2 + $0x20] sm:$0xff]  ;;  %v501_v10 = vrot.slane %v1772_v8, 1  ;;  %457 = vst.msk [vmem:[#allocation3 + $0x10] sm:$0xff] %vm386_vm0, %v1772_v8 }
  0x20   : > { %v502_v11 = vrot.slane %v1775_v9, 1  ;;  %458 = vst.msk [vmem:[#allocation3 + $0x18] sm:$0xff] %vm386_vm0, %v1775_v9  ;;  %v1783_v12 = vld [vmem:[#allocation2] sm:$0xff] }
  0x21   : > { %v1786_v14 = vld [vmem:[#allocation2 + $0x8] sm:$0xff]  ;;  %v496_v15 = vrot.slane %v1783_v12, 1  ;;  %455 = vst.msk [vmem:[#allocation3] sm:$0xff] %vm386_vm0, %v1783_v12 }
  0x22   : > { %v1793_v17 = vsel %vm495_vm2, %v501_v10, %v502_v11  ;;  %v497_v18 = vrot.slane %v1786_v14, 1  ;;  %456 = vst.msk [vmem:[#allocation3 + $0x8] sm:$0xff] %vm386_vm0, %v1786_v14  ;;  %v1798_v19 = vld [vmem:[#allocation2 + $0x28] sm:$0x3] }
  0x23   : > { %540 = vrot.lane.b32.xlu1 %v1793_v17, %s1663_s25  ;;  %v1802_v20 = vld [vmem:[#allocation2 + $0x10] sm:$0x3]  ;;  %397 = vst.msk [vmem:[#allocation2 + $0x48] sm:$0xff] %vm386_vm0, %v371_v13  ;;  %v504_v23 = vrot.slane %v1798_v19, 1 }
  0x24   : > { %v498_v22 = vsel %vm495_vm2, %v496_v15, %v497_v18  ;;  %v1808_v24 = vld [vmem:[#allocation2 + $0x50] sm:$0xff]  ;;  %403 = vst.msk [vmem:[#allocation2 + $0x78] sm:$0xff] %vm386_vm0, %v377_v16  ;;  %v499_v27 = vrot.slane %v1802_v20, 1 }
  0x25   : > { %536 = vrot.lane.b32.xlu0 %v498_v22, %s1663_s25  ;;  %462 = vst.msk [vmem:[#allocation3 + $0x38] sm:$0xff] %vm386_vm0, %v1808_v24  ;;  %v1822_v30 = vsel %vm495_vm2, %v502_v11, %v504_v23  ;;  %v1825_v31 = vld [vmem:[#allocation2 + $0x58] sm:$0x3]  ;;  %v512_v36 = vrot.slane %v1808_v24, 1  ;;  %v602_v22 = vrot.slane %v1783_v12, 2  ;;  %v603_v23 = vrot.slane %v1786_v14, 2 }
  0x26   : > { %404 = vst.msk [vmem:[#allocation2 + $0x80] sm:$0xff] %vm386_vm0, %v378_v21  ;;  %v500_v32 = vsel %vm495_vm2, %v497_v18, %v499_v27  ;;  %v514_v37 = vrot.slane %v1825_v31, 1 }
  0x27   : > { %401 = vst.msk [vmem:[#allocation2 + $0x68] sm:$0xff] %vm386_vm0, %v375_v25 }
  0x28   : > { %402 = vst.msk [vmem:[#allocation2 + $0x70] sm:$0x3] %vm389_vm1, %v376_v26  ;;  %v1856_v42 = vsel %vm495_vm2, %v512_v36, %v514_v37  ;;  %v607_v37 = vrot.slane %v1772_v8, 2 }
  0x29   : > { %394 = vst.msk [vmem:[#allocation2 + $0x30] sm:$0xff] %vm386_vm0, %v368_v28 }
  0x2a   : > { %v1829_v33 = vld [vmem:[#allocation2 + $0x48] sm:$0xff]  ;;  %395 = vst.msk [vmem:[#allocation2 + $0x38] sm:$0xff] %vm386_vm0, %v369_v29  ;;  %v604_v29 = vsel %vm601_vm3, %v602_v22, %v603_v23  ;;  %v620_v22 = vrot.slane %v1825_v31, 2 }
  0x2b   : > { %542 = vrot.lane.b32.xlu1 %v1822_v30, %s1663_s25  ;;  %461 = vst.msk [vmem:[#allocation3 + $0x30] sm:$0xff] %vm386_vm0, %v1829_v33  ;;  %v1837_v35 = vld [vmem:[#allocation2 + $0x78] sm:$0xff]  ;;  %v511_v40 = vrot.slane %v1829_v33, 1 }
  0x2c   : > { %465 = vst.msk [vmem:[#allocation3 + $0x50] sm:$0xff] %vm386_vm0, %v1837_v35  ;;  %v521_v53 = vrot.slane %v1837_v35, 1 }
  0x2d   : > { %538 = vrot.lane.b32.xlu0 %v500_v32, %s1663_s25  ;;  %v1844_v38 = vld [vmem:[#allocation2 + $0x80] sm:$0xff]  ;;  %407 = vst.msk [vmem:[#allocation2 + $0x98] sm:$0xff] %vm386_vm0, %v381_v34  ;;  %v1869_v48 = vsel %vm495_vm2, %v511_v40, %v512_v36  ;;  %v608_v32 = vrot.slane %v1775_v9, 2  ;;  %v610_v34 = vrot.slane %v1798_v19, 2  ;;  %v617_v19 = vrot.slane %v1829_v33, 2 }
  0x2e   : > { %466 = vst.msk [vmem:[#allocation3 + $0x58] sm:$0xff] %vm386_vm0, %v1844_v38  ;;  %v1851_v41 = vld [vmem:[#allocation2 + $0x68] sm:$0xff]  ;;  %v522_v54 = vrot.slane %v1844_v38, 1 }
  0x2f   : > { %464 = vst.msk [vmem:[#allocation3 + $0x48] sm:$0xff] %vm386_vm0, %v1851_v41  ;;  %v1876_v50 = vld [vmem:[#allocation2 + $0x70] sm:$0x3]  ;;  %v517_v58 = vrot.slane %v1851_v41, 1 }
  0x30   : > { %v1858_v43 = vld [vmem:[#allocation2 + $0x30] sm:$0xff]  ;;  %408 = vst.msk [vmem:[#allocation2 + $0xa0] sm:$0x3] %vm389_vm1, %v382_v39  ;;  %v519_v59 = vrot.slane %v1876_v50, 1  ;;  %v1902_v61 = vsel %vm495_vm2, %v521_v53, %v522_v54  ;;  %v1979_v39 = vsel %vm601_vm3, %v608_v32, %v610_v34  ;;  %v605_v53 = vrot.slane %v1802_v20, 2  ;;  %v412_v34 = vld [vmem:[%s2059_s6] sm:$0xff] }
  0x31   : > { %v1862_v45 = vld [vmem:[#allocation2 + $0x38] sm:$0xff]  ;;  %v506_v46 = vrot.slane %v1858_v43, 1  ;;  %459 = vst.msk [vmem:[#allocation3 + $0x20] sm:$0xff] %vm386_vm0, %v1858_v43 }
  0x32   : > { %v507_v49 = vrot.slane %v1862_v45, 1  ;;  %460 = vst.msk [vmem:[#allocation3 + $0x28] sm:$0xff] %vm386_vm0, %v1862_v45  ;;  %v1910_v0 = vsel %vm495_vm2, %v517_v58, %v519_v59  ;;  %v606_v59 = vsel %vm601_vm3, %v603_v23, %v605_v53 }
  0x33   : > { %550 = vrot.lane.b32.xlu1 %v1856_v42, %s1663_s25  ;;  %406 = vst.msk [vmem:[#allocation2 + $0x90] sm:$0xff] %vm386_vm0, %v380_v44  ;;  %v1983_v44 = vsel %vm601_vm3, %v607_v37, %v608_v32 }
  0x34   : > { %v1884_v55 = vsel %vm495_vm2, %v506_v46, %v507_v49  ;;  %v1886_v56 = vld [vmem:[#allocation2 + $0x98] sm:$0xff]  ;;  %396 = vst.msk [vmem:[#allocation2 + $0x40] sm:$0x3] %vm389_vm1, %v370_v47  ;;  %v618_v46 = vrot.slane %v1808_v24, 2 }
  0x35   : > { %548 = vrot.lane.b32.xlu0 %v1869_v48, %s1663_s25  ;;  %544 = vrot.lane.b32.xlu2 %v1884_v55, %s1663_s25  ;;  %468 = vst.msk [vmem:[#allocation3 + $0x68] sm:$0xff] %vm386_vm0, %v1886_v56  ;;  %v527_v3 = vrot.slane %v1886_v56, 1 }
  0x36   : > { %410 = vst.msk [vmem:[#allocation2 + $0xb0] sm:$0xff] %vm386_vm0, %v384_v51 }
  0x37   : > { %411 = vst.msk [vmem:[#allocation2 + $0xb8] sm:$0x3] %vm389_vm1, %v385_v52  ;;  %v1906_v63 = vld [vmem:[#allocation2 + $0xa0] sm:$0x3]  ;;  %v1998_v52 = vsel %vm601_vm3, %v617_v19, %v618_v46 }
  0x38   : > { %400 = vst.msk [vmem:[#allocation2 + $0x60] sm:$0xff] %vm386_vm0, %v374_v57  ;;  %v529_v4 = vrot.slane %v1906_v63, 1  ;;  %v623_v57 = vrot.slane %v1851_v41, 2  ;;  %v635_v37 = vrot.slane %v1906_v63, 2  ;;  %v413_v63 = vld [vmem:[%s2059_s6 + $0x8] sm:$0xff] }
  0x39   : > { %405 = vst.msk [vmem:[#allocation2 + $0x88] sm:$0x3] %vm389_vm1, %v379_v60 }
  0x3a   : > { %v1912_v1 = vld [vmem:[#allocation2 + $0x90] sm:$0xff]  ;;  %409 = vst.msk [vmem:[#allocation2 + $0xa8] sm:$0xff] %vm386_vm0, %v383_v62  ;;  %v1936_v13 = vsel %vm495_vm2, %v527_v3, %v529_v4  ;;  %v612_v62 = vrot.slane %v1858_v43, 2 }
  0x3b   : > { %556 = vrot.lane.b32.xlu1 %v1902_v61, %s1663_s25  ;;  %467 = vst.msk [vmem:[#allocation3 + $0x60] sm:$0xff] %vm386_vm0, %v1912_v1  ;;  %v433_v2 = vld [vmem:[#allocation2 + $0x40] sm:$0x3]  ;;  %v526_v7 = vrot.slane %v1912_v1, 1 }
  0x3c   : > { %v509_v5 = vrot.slane %v433_v2, 1  ;;  %v615_v51 = vrot.slane %v433_v2, 2  ;;  %419 = vst.msk [vmem:[#allocation2 + $0xc0] sm:$0xff] %vm386_vm0, %v412_v34 }
  0x3d   : > { %554 = vrot.lane.b32.xlu0 %v1910_v0, %s1663_s25  ;;  %v1923_v6 = vld [vmem:[#allocation2 + $0xb0] sm:$0xff]  ;;  %v1944_v18 = vsel %vm495_vm2, %v526_v7, %v527_v3  ;;  %v633_v3 = vrot.slane %v1886_v56, 2  ;;  %420 = vst.msk [vmem:[#allocation2 + $0xc8] sm:$0xff] %vm386_vm0, %v413_v63 }
  0x3e   : > { %v1927_v10 = vsel %vm495_vm2, %v507_v49, %v509_v5  ;;  %470 = vst.msk [vmem:[#allocation3 + $0x78] sm:$0xff] %vm386_vm0, %v1923_v6  ;;  %v1950_v21 = vld [vmem:[#allocation2 + $0xb8] sm:$0x3]  ;;  %v532_v27 = vrot.slane %v1923_v6, 1  ;;  %v613_v49 = vrot.slane %v1862_v45, 2  ;;  %v628_v5 = vrot.slane %v1844_v38, 2 }
  0x3f   : > { %546 = vrot.lane.b32.xlu2 %v1927_v10, %s1663_s25  ;;  %v1933_v11 = vld [vmem:[#allocation2 + $0x60] sm:$0xff]  ;;  %v534_v28 = vrot.slane %v1950_v21, 1 }
  0x40   : > { %v516_v15 = vrot.slane %v1933_v11, 1  ;;  %463 = vst.msk [vmem:[#allocation3 + $0x40] sm:$0xff] %vm386_vm0, %v1933_v11  ;;  %v442_v26 = vld [vmem:[#allocation2 + $0x88] sm:$0x3]  ;;  %v622_v60 = vrot.slane %v1933_v11, 2  ;;  %v2025_v4 = vsel %vm601_vm3, %v612_v62, %v613_v49 }
  0x41   : > { %v1941_v16 = vld [vmem:[#allocation2 + $0xa8] sm:$0xff]  ;;  %v524_v12 = vrot.slane %v442_v26, 1  ;;  %v1965_v14 = vsel %vm495_vm2, %v532_v27, %v534_v28  ;;  %v630_v7 = vrot.slane %v442_v26, 2  ;;  %v640_v28 = vrot.slane %v1950_v21, 2 }
  0x42   : > { %469 = vst.msk [vmem:[#allocation3 + $0x70] sm:$0xff] %vm386_vm0, %v1941_v16  ;;  %v1955_v25 = vsel %vm495_vm2, %v516_v15, %v517_v58  ;;  %v531_v40 = vrot.slane %v1941_v16, 1  ;;  %v625_v58 = vrot.slane %v1876_v50, 2  ;;  %v2018_v2 = vsel %vm601_vm3, %v622_v60, %v623_v57 }
  0x43   : > { %562 = vrot.lane.b32.xlu1 %v1936_v13, %s1663_s25  ;;  %v1971_v36 = vsel %vm495_vm2, %v522_v54, %v524_v12  ;;  %v2002_v54 = vsel %vm601_vm3, %v613_v49, %v615_v51  ;;  %v632_v50 = vrot.slane %v1912_v1, 2  ;;  %v2037_v23 = vsel %vm601_vm3, %v628_v5, %v630_v7 }
  0x44   : > { %v1990_v47 = vsel %vm495_vm2, %v531_v40, %v532_v27  ;;  %v2014_v20 = vsel %vm601_vm3, %v623_v57, %v625_v58  ;;  %v638_v27 = vrot.slane %v1923_v6, 2  ;;  %v2044_v26 = vsel %vm601_vm3, %v618_v46, %v620_v22  ;;  %v2108_v46 = vld [vmem:[#allocation2 + $0xc0] sm:$0xff]  ;;  %v2131_v62 = vld [vmem:[#allocation2 + $0xc8] sm:$0xff] }
  0x45   : > { %560 = vrot.lane.b32.xlu0 %v1944_v18, %s1663_s25  ;;  %v2033_v15 = vsel %vm601_vm3, %v632_v50, %v633_v3  ;;  %v627_v12 = vrot.slane %v1837_v35, 2  ;;  %v2079_v40 = vsel %vm601_vm3, %v633_v3, %v635_v37  ;;  %v845_v37 = vrot.slane %v2108_v46, 2 }
  0x46   : > { %v2053_v31 = vsel %vm601_vm3, %v638_v27, %v640_v28 }
  0x47   : > { %552 = vrot.lane.b32.xlu2 %v1955_v25, %s1663_s25  ;;  %v2067_v32 = vsel %vm601_vm3, %v627_v12, %v628_v5 }
  0x4b   : > { %642 = vrot.lane.b32.xlu1 %v604_v29, %s1664_s26  ;;  %v637_v29 = vrot.slane %v1941_v16, 2 }
  0x4d   : > { %566 = vrot.lane.b32.xlu0 %v1965_v14, %s1663_s25  ;;  %v2062_v21 = vsel %vm601_vm3, %v637_v29, %v638_v27 }
  0x4f   : > { %558 = vrot.lane.b32.xlu2 %v1971_v36, %s1663_s25 }
  0x53   : > { %648 = vrot.lane.b32.xlu1 %v1979_v39, %s1664_s26 }
  0x55   : > { %646 = vrot.lane.b32.xlu0 %v1983_v44, %s1664_s26 }
  0x57   : > { %564 = vrot.lane.b32.xlu2 %v1990_v47, %s1663_s25 }
  0x5b   : > { %654 = vrot.lane.b32.xlu1 %v1998_v52, %s1664_s26 }
  0x5d   : > { %652 = vrot.lane.b32.xlu0 %v2002_v54, %s1664_s26 }
  0x5f   : > { %644 = vrot.lane.b32.xlu2 %v606_v59, %s1664_s26 }
  0x63   : > { %660 = vrot.lane.b32.xlu1 %v2014_v20, %s1664_s26 }
  0x65   : > { %658 = vrot.lane.b32.xlu0 %v2018_v2, %s1664_s26 }
  0x67   : > { %650 = vrot.lane.b32.xlu2 %v2025_v4, %s1664_s26 }
  0x6b   : > { %666 = vrot.lane.b32.xlu1 %v2033_v15, %s1664_s26 }
  0x6d   : > { %664 = vrot.lane.b32.xlu0 %v2037_v23, %s1664_s26 }
  0x6f   : > { %656 = vrot.lane.b32.xlu2 %v2044_v26, %s1664_s26 }
  0x73   : > { %672 = vrot.lane.b32.xlu1 %v2053_v31, %s1664_s26 }
  0x75   : > { %670 = vrot.lane.b32.xlu0 %v2062_v21, %s1664_s26 }
  0x77   : > { %662 = vrot.lane.b32.xlu2 %v2067_v32, %s1664_s26 }
  0x7b   : > { %713 = vrot.lane.b32.xlu1 %v1858_v43, %s1665_s7 }
  0x7d   : > { %711 = vrot.lane.b32.xlu0 %v1775_v9, %s1665_s7 }
  0x7f   : > { %668 = vrot.lane.b32.xlu2 %v2079_v40, %s1664_s26 }
  0x83   : > { %719 = vrot.lane.b32.xlu1 %v1808_v24, %s1665_s7 }
  0x85   : > { %717 = vrot.lane.b32.xlu0 %v1829_v33, %s1665_s7 }
  0x87   : > { %709 = vrot.lane.b32.xlu2 %v1772_v8, %s1665_s7 }
  0x8b   : > { %725 = vrot.lane.b32.xlu1 %v1837_v35, %s1665_s7 }
  0x8d   : > { %723 = vrot.lane.b32.xlu0 %v1851_v41, %s1665_s7 }
  0x8f   : > { %715 = vrot.lane.b32.xlu2 %v1862_v45, %s1665_s7  ;;  %v545_v9 = vpop.permute.xlu2 %544 }
  0x90   : > { %589 = vst.msk [vmem:[#allocation3 + $0x20] sm:$0xff] %vm584_vm4, %v545_v9  ;;  %v846_v9 = vrot.slane %v2131_v62, 2 }
  0x93   : > { %731 = vrot.lane.b32.xlu1 %v1886_v56, %s1665_s7 }
  0x95   : > { %729 = vrot.lane.b32.xlu0 %v1912_v1, %s1665_s7  ;;  %v541_v8 = vpop.permute.xlu1 %540 }
  0x96   : > { %587 = vst.msk [vmem:[#allocation3 + $0x10] sm:$0xff] %vm584_vm4, %v541_v8 }
  0x97   : > { %v537_v19 = vpop.permute.xlu0 %536  ;;  %721 = vrot.lane.b32.xlu2 %v1933_v11, %s1665_s7 }
  0x98   : > { %585 = vst.msk [vmem:[#allocation3] sm:$0xff] %vm584_vm4, %v537_v19 }
  0x99   : > { %v547_v49 = vpop.permute.xlu2 %546 }
  0x9a   : > { %590 = vst.msk [vmem:[#allocation3 + $0x28] sm:$0xff] %vm584_vm4, %v547_v49  ;;  %v414_v49 = vld [vmem:[%s2059_s6 + $0x10] sm:$0x3] }
  0x9b   : > { %737 = vrot.lane.b32.xlu1 %v2108_v46, %s1665_s7  ;;  %421 = vst.msk [vmem:[#allocation2 + $0xd0] sm:$0x3] %vm389_vm1, %v414_v49 }
  0x9d   : > { %735 = vrot.lane.b32.xlu0 %v1923_v6, %s1665_s7  ;;  %v543_v51 = vpop.permute.xlu1 %542 }
  0x9e   : > { %588 = vst.msk [vmem:[#allocation3 + $0x18] sm:$0xff] %vm584_vm4, %v543_v51 }
  0x9f   : > { %v539_v53 = vpop.permute.xlu0 %538  ;;  %727 = vrot.lane.b32.xlu2 %v1844_v38, %s1665_s7 }
  0xa0   : > { %586 = vst.msk [vmem:[#allocation3 + $0x8] sm:$0xff] %vm584_vm4, %v539_v53 }
  0xa1   : > { %v553_v57 = vpop.permute.xlu2 %552 }
  0xa2   : > { %593 = vst.msk [vmem:[#allocation3 + $0x40] sm:$0xff] %vm584_vm4, %v553_v57  ;;  %v775_v57 = vrot.slane %v2108_v46, 1 }
  0xa3   : > { %782 = vrot.lane.b32.xlu1 %v1822_v30, %s1666_s8 }
  0xa5   : > { %780 = vrot.lane.b32.xlu0 %v1793_v17, %s1666_s8  ;;  %v551_v58 = vpop.permute.xlu1 %550 }
  0xa6   : > { %592 = vst.msk [vmem:[#allocation3 + $0x38] sm:$0xff] %vm584_vm4, %v551_v58  ;;  %v776_v58 = vrot.slane %v2131_v62, 1 }
  0xa7   : > { %v549_v59 = vpop.permute.xlu0 %548  ;;  %733 = vrot.lane.b32.xlu2 %v1941_v16, %s1665_s7 }
  0xa8   : > { %591 = vst.msk [vmem:[#allocation3 + $0x30] sm:$0xff] %vm584_vm4, %v549_v59 }
  0xa9   : > { %v559_v60 = vpop.permute.xlu2 %558 }
  0xaa   : > { %596 = vst.msk [vmem:[#allocation3 + $0x58] sm:$0xff] %vm584_vm4, %v559_v60  ;;  %v2199_v60 = vsel %vm495_vm2, %v775_v57, %v776_v58 }
  0xab   : > { %788 = vrot.lane.b32.xlu1 %v1869_v48, %s1666_s8 }
  0xad   : > { %786 = vrot.lane.b32.xlu0 %v1927_v10, %s1666_s8  ;;  %v557_v17 = vpop.permute.xlu1 %556 }
  0xae   : > { %595 = vst.msk [vmem:[#allocation3 + $0x50] sm:$0xff] %vm584_vm4, %v557_v17 }
  0xaf   : > { %v555_v30 = vpop.permute.xlu0 %554  ;;  %739 = vrot.lane.b32.xlu2 %v2131_v62, %s1665_s7 }
  0xb0   : > { %594 = vst.msk [vmem:[#allocation3 + $0x48] sm:$0xff] %vm584_vm4, %v555_v30 }
  0xb1   : > { %v565_v50 = vpop.permute.xlu2 %564 }
  0xb2   : > { %599 = vst.msk [vmem:[#allocation3 + $0x70] sm:$0xff] %vm584_vm4, %v565_v50 }
  0xb3   : > { %794 = vrot.lane.b32.xlu1 %v1910_v0, %s1666_s8 }
  0xb5   : > { %792 = vrot.lane.b32.xlu0 %v1955_v25, %s1666_s8  ;;  %v563_v3 = vpop.permute.xlu1 %562 }
  0xb6   : > { %598 = vst.msk [vmem:[#allocation3 + $0x68] sm:$0xff] %vm584_vm4, %v563_v3 }
  0xb7   : > { %v561_v5 = vpop.permute.xlu0 %560  ;;  %784 = vrot.lane.b32.xlu2 %v1884_v55, %s1666_s8 }
  0xb8   : > { %597 = vst.msk [vmem:[#allocation3 + $0x60] sm:$0xff] %vm584_vm4, %v561_v5 }
  0xb9   : > { %v645_v7 = vpop.permute.xlu2 %644 }
  0xba   : > { %692 = vst.msk [vmem:[#allocation3 + $0x8] sm:$0xff] %vm690_vm5, %v645_v7 }
  0xbb   : > { %800 = vrot.lane.b32.xlu1 %v1944_v18, %s1666_s8 }
  0xbd   : > { %798 = vrot.lane.b32.xlu0 %v1971_v36, %s1666_s8  ;;  %v643_v22 = vpop.permute.xlu1 %642 }
  0xbe   : > { %691 = vst.msk [vmem:[#allocation3] sm:$0xff] %vm690_vm5, %v643_v22 }
  0xbf   : > { %v567_v27 = vpop.permute.xlu0 %566  ;;  %790 = vrot.lane.b32.xlu2 %v1856_v42, %s1666_s8 }
  0xc0   : > { %600 = vst.msk [vmem:[#allocation3 + $0x78] sm:$0xff] %vm584_vm4, %v567_v27 }
  0xc1   : > { %v651_v28 = vpop.permute.xlu2 %650 }
  0xc2   : > { %695 = vst.msk [vmem:[#allocation3 + $0x20] sm:$0xff] %vm690_vm5, %v651_v28 }
  0xc3   : > { %874 = vrot.lane.b32.xlu1 %v2062_v21, %s1667_s10 }
  0xc5   : > { %866 = vrot.lane.b32.xlu0 %v2067_v32, %s1667_s10  ;;  %v649_v29 = vpop.permute.xlu1 %648 }
  0xc6   : > { %694 = vst.msk [vmem:[#allocation3 + $0x18] sm:$0xff] %vm690_vm5, %v649_v29 }
  0xc7   : > { %v647_v12 = vpop.permute.xlu0 %646  ;;  %796 = vrot.lane.b32.xlu2 %v1902_v61, %s1666_s8 }
  0xc8   : > { %693 = vst.msk [vmem:[#allocation3 + $0x10] sm:$0xff] %vm690_vm5, %v647_v12 }
  0xc9   : > { %v657_v34 = vpop.permute.xlu2 %656 }
  0xca   : > { %698 = vst.msk [vmem:[#allocation3 + $0x38] sm:$0xff] %vm690_vm5, %v657_v34 }
  0xcb   : > { %1004 = vrot.lane.b32.xlu1 %v1944_v18, %s1668_s11  ;;  %v2180_v18 = vsel %vm601_vm3, %v845_v37, %v846_v9  ;;  %v415_v37 = vld [vmem:[%s2059_s6 + $0x18] sm:$0xff] }
  0xcc   : > { %422 = vst.msk [vmem:[#allocation2 + $0xd8] sm:$0xff] %vm386_vm0, %v415_v37 }
  0xcd   : > { %941 = vrot.lane.b32.xlu0 %v2108_v46, %s1669_s12  ;;  %v655_v63 = vpop.permute.xlu1 %654 }
  0xce   : > { %697 = vst.msk [vmem:[#allocation3 + $0x30] sm:$0xff] %vm690_vm5, %v655_v63  ;;  %v416_v63 = vld [vmem:[%s2059_s6 + $0x20] sm:$0xff] }
  0xcf   : > { %v653_v8 = vpop.permute.xlu0 %652  ;;  %804 = vrot.lane.b32.xlu2 %v1990_v47, %s1666_s8  ;;  %423 = vst.msk [vmem:[#allocation2 + $0xe0] sm:$0xff] %vm386_vm0, %v416_v63 }
  0xd0   : > { %696 = vst.msk [vmem:[#allocation3 + $0x28] sm:$0xff] %vm690_vm5, %v653_v8 }
  0xd1   : > { %v663_v19 = vpop.permute.xlu2 %662 }
  0xd2   : > { %701 = vst.msk [vmem:[#allocation3 + $0x50] sm:$0xff] %vm690_vm5, %v663_v19 }
  0xd3   : > { %1082 = vrot.lane.b32.xlu1 %v2180_v18, %s1670_s13 }
  0xd5   : > { %1074 = vrot.lane.b32.xlu0 %v2033_v15, %s1670_s13  ;;  %v661_v51 = vpop.permute.xlu1 %660 }
  0xd6   : > { %700 = vst.msk [vmem:[#allocation3 + $0x48] sm:$0xff] %vm690_vm5, %v661_v51 }
  0xd7   : > { %v659_v53 = vpop.permute.xlu0 %658  ;;  %933 = vrot.lane.b32.xlu2 %v1912_v1, %s1669_s12 }
  0xd8   : > { %699 = vst.msk [vmem:[#allocation3 + $0x40] sm:$0xff] %vm690_vm5, %v659_v53 }
  0xd9   : > { %v669_v59 = vpop.permute.xlu2 %668 }
  0xda   : > { %704 = vst.msk [vmem:[#allocation3 + $0x68] sm:$0xff] %vm690_vm5, %v669_v59 }
  0xdb   : > { %806 = vrot.lane.b32.xlu1 %v1965_v14, %s1666_s8 }
  0xdd   : > { %858 = vrot.lane.b32.xlu0 %v1998_v52, %s1667_s10  ;;  %v667_v17 = vpop.permute.xlu1 %666 }
  0xde   : > { %703 = vst.msk [vmem:[#allocation3 + $0x60] sm:$0xff] %vm690_vm5, %v667_v17 }
  0xdf   : > { %v665_v1 = vpop.permute.xlu0 %664  ;;  %1012 = vrot.lane.b32.xlu2 %v2199_v60, %s1668_s11 }
  0xe0   : > { %702 = vst.msk [vmem:[#allocation3 + $0x58] sm:$0xff] %vm690_vm5, %v665_v1  ;;  %v1142_v1 = vld [vmem:[%s2547_s2 + $0x18] sm:$0xff] }
  0xe1   : > { %v710_v46 = vpop.permute.xlu2 %709 }
  0xe2   : > { %758 = vst.msk [vmem:[#allocation3] sm:$0xff] %vm757_vm6, %v710_v46  ;;  %v1141_v46 = vld [vmem:[%s2547_s2 + $0x10] sm:$0xff] }
  0xe3   : > { %868 = vrot.lane.b32.xlu1 %v2037_v23, %s1667_s10 }
  0xe5   : > { %925 = vrot.lane.b32.xlu0 %v1933_v11, %s1669_s12  ;;  %v673_v30 = vpop.permute.xlu1 %672 }
  0xe6   : > { %706 = vst.msk [vmem:[#allocation3 + $0x78] sm:$0xff] %vm690_vm5, %v673_v30 }
  0xe7   : > { %v671_v50 = vpop.permute.xlu0 %670  ;;  %850 = vrot.lane.b32.xlu2 %v1983_v44, %s1667_s10  ;;  %v451_v44 = vld [vmem:[#allocation2 + $0xd0] sm:$0x3] }
  0xe8   : > { %705 = vst.msk [vmem:[#allocation3 + $0x70] sm:$0xff] %vm690_vm5, %v671_v50  ;;  %v848_v29 = vrot.slane %v451_v44, 2 }
  0xe9   : > { %v716_v3 = vpop.permute.xlu2 %715 }
  0xea   : > { %761 = vst.msk [vmem:[#allocation3 + $0x18] sm:$0xff] %vm757_vm6, %v716_v3  ;;  %v2251_v8 = vsel %vm601_vm3, %v846_v9, %v848_v29 }
  0xeb   : > { %996 = vrot.lane.b32.xlu1 %v1955_v25, %s1668_s11  ;;  %v778_v25 = vrot.slane %v451_v44, 1  ;;  %v417_v44 = vld [vmem:[%s2059_s6 + $0x28] sm:$0x3]  ;;  %s1524_s6 = sshll.u32 %s1645_s18, 4 }
  0xec   : > { %424 = vst.msk [vmem:[#allocation2 + $0xe8] sm:$0x3] %vm389_vm1, %v417_v44  ;;  %p349_p8 = scmp.lt.s32.totalorder %s1524_s6, 31 }
  0xed   : > { %988 = vrot.lane.b32.xlu0 %v1884_v55, %s1668_s11  ;;  %v714_v5 = vpop.permute.xlu1 %713 }
  0xee   : > { %760 = vst.msk [vmem:[#allocation3 + $0x10] sm:$0xff] %vm757_vm6, %v714_v5  ;;  %v1139_v5 = vld [vmem:[%s2547_s2] sm:$0xff]  ;;  %s2566_s6 = smov (!%p349_p8, %s1524_s6), 31 }
  0xef   : > { %v712_v11 = vpop.permute.xlu0 %711  ;;  %917 = vrot.lane.b32.xlu2 %v1858_v43, %s1669_s12  ;;  %v2235_v43 = vsel %vm495_vm2, %v776_v58, %v778_v25  ;;  %v2294_v58 = vld [vmem:[#allocation2 + $0xd8] sm:$0xff] }
  0xf0   : > { %759 = vst.msk [vmem:[#allocation3 + $0x8] sm:$0xff] %vm757_vm6, %v712_v11  ;;  %v983_v59 = vrot.slane %v2294_v58, 1 }
  0xf1   : > { %v722_v7 = vpop.permute.xlu2 %721 }
  0xf2   : > { %764 = vst.msk [vmem:[#allocation3 + $0x30] sm:$0xff] %vm757_vm6, %v722_v7 }
  0xf3   : > { %1058 = vrot.lane.b32.xlu1 %v2025_v4, %s1670_s13 }
  0xf5   : > { %943 = vrot.lane.b32.xlu0 %v2131_v62, %s1669_s12  ;;  %v720_v55 = vpop.permute.xlu1 %719 }
  0xf6   : > { %763 = vst.msk [vmem:[#allocation3 + $0x28] sm:$0xff] %vm757_vm6, %v720_v55  ;;  %v1053_v55 = vrot.slane %v2294_v58, 2 }
  0xf7   : > { %v718_v22 = vpop.permute.xlu0 %717  ;;  %876 = vrot.lane.b32.xlu2 %v2053_v31, %s1667_s10 }
  0xf8   : > { %762 = vst.msk [vmem:[#allocation3 + $0x20] sm:$0xff] %vm757_vm6, %v718_v22 }
  0xf9   : > { %v728_v27 = vpop.permute.xlu2 %727 }
  0xfa   : > { %767 = vst.msk [vmem:[#allocation3 + $0x48] sm:$0xff] %vm757_vm6, %v728_v27 }
  0xfb   : > { %1014 = vrot.lane.b32.xlu1 %v2235_v43, %s1668_s11 }
  0xfd   : > { %1006 = vrot.lane.b32.xlu0 %v1936_v13, %s1668_s11  ;;  %v726_v28 = vpop.permute.xlu1 %725 }
  0xfe   : > { %766 = vst.msk [vmem:[#allocation3 + $0x40] sm:$0xff] %vm757_vm6, %v726_v28 }
  0xff   : > { %v724_v12 = vpop.permute.xlu0 %723  ;;  %935 = vrot.lane.b32.xlu2 %v1886_v56, %s1669_s12 }
 0x100   : > { %765 = vst.msk [vmem:[#allocation3 + $0x38] sm:$0xff] %vm757_vm6, %v724_v12 }
 0x101   : > { %v734_v34 = vpop.permute.xlu2 %733 }
 0x102   : > { %770 = vst.msk [vmem:[#allocation3 + $0x60] sm:$0xff] %vm757_vm6, %v734_v34 }
 0x103   : > { %852 = vrot.lane.b32.xlu1 %v1979_v39, %s1667_s10 }
 0x105   : > { %1084 = vrot.lane.b32.xlu0 %v2251_v8, %s1670_s13  ;;  %v732_v56 = vpop.permute.xlu1 %731 }
 0x106   : > { %769 = vst.msk [vmem:[#allocation3 + $0x58] sm:$0xff] %vm757_vm6, %v732_v56 }
 0x107   : > { %v730_v19 = vpop.permute.xlu0 %729  ;;  %1066 = vrot.lane.b32.xlu2 %v2018_v2, %s1670_s13 }
 0x108   : > { %768 = vst.msk [vmem:[#allocation3 + $0x50] sm:$0xff] %vm757_vm6, %v730_v19 }
 0x109   : > { %v740_v62 = vpop.permute.xlu2 %739 }
 0x10a   : > { %773 = vst.msk [vmem:[#allocation3 + $0x78] sm:$0xff] %vm757_vm6, %v740_v62 }
 0x10b   : > { %919 = vrot.lane.b32.xlu1 %v1862_v45, %s1669_s12 }
 0x10d   : > { %808 = vrot.lane.b32.xlu0 %v2199_v60, %s1666_s8  ;;  %v738_v39 = vpop.permute.xlu1 %737 }
 0x10e   : > { %772 = vst.msk [vmem:[#allocation3 + $0x70] sm:$0xff] %vm757_vm6, %v738_v39 }
 0x10f   : > { %v736_v9 = vpop.permute.xlu0 %735  ;;  %1076 = vrot.lane.b32.xlu2 %v2079_v40, %s1670_s13 }
 0x110   : > { %771 = vst.msk [vmem:[#allocation3 + $0x68] sm:$0xff] %vm757_vm6, %v736_v9 }
 0x111   : > { %v785_v49 = vpop.permute.xlu2 %784 }
 0x112   : > { %831 = vst.msk [vmem:[#allocation3 + $0x10] sm:$0xff] %vm828_vm7, %v785_v49 }
 0x113   : > { %878 = vrot.lane.b32.xlu1 %v2180_v18, %s1667_s10 }
 0x115   : > { %870 = vrot.lane.b32.xlu0 %v2033_v15, %s1667_s10  ;;  %v783_v45 = vpop.permute.xlu1 %782 }
 0x116   : > { %830 = vst.msk [vmem:[#allocation3 + $0x8] sm:$0xff] %vm828_vm7, %v783_v45 }
 0x117   : > { %v781_v51 = vpop.permute.xlu0 %780  ;;  %860 = vrot.lane.b32.xlu2 %v2044_v26, %s1667_s10 }
 0x118   : > { %829 = vst.msk [vmem:[#allocation3] sm:$0xff] %vm828_vm7, %v781_v51 }
 0x119   : > { %v791_v53 = vpop.permute.xlu2 %790 }
 0x11a   : > { %834 = vst.msk [vmem:[#allocation3 + $0x28] sm:$0xff] %vm828_vm7, %v791_v53 }
 0x11b   : > { %937 = vrot.lane.b32.xlu1 %v1941_v16, %s1669_s12  ;;  %v2296_v16 = vld [vmem:[#allocation2 + $0xe0] sm:$0xff] }
 0x11c   : > { %v984_v60 = vrot.slane %v2296_v16, 1 }
 0x11d   : > { %998 = vrot.lane.b32.xlu0 %v1910_v0, %s1668_s11  ;;  %v789_v18 = vpop.permute.xlu1 %788 }
 0x11e   : > { %833 = vst.msk [vmem:[#allocation3 + $0x20] sm:$0xff] %vm828_vm7, %v789_v18  ;;  %v985_v50 = vsel %vm495_vm2, %v983_v59, %v984_v60 }
 0x11f   : > { %v787_v15 = vpop.permute.xlu0 %786  ;;  %927 = vrot.lane.b32.xlu2 %v1851_v41, %s1669_s12  ;;  %v1143_v41 = vld [vmem:[%s2547_s2 + $0x20] sm:$0xf] }
 0x120   : > { %832 = vst.msk [vmem:[#allocation3 + $0x18] sm:$0xff] %vm828_vm7, %v787_v15  ;;  %1557 = vmatpush.msk.msra.mxu2 %vm1193_vm8, %v1143_v41  ;;  %1558 = vmatpush.msk.msra.mxu3 %vm1193_vm8, %v1143_v41 }
 0x121   : > { %v797_v57 = vpop.permute.xlu2 %796  ;;  %1527 = vmatpush.msk.msra.mxu0 %vm1193_vm8, %v1143_v41  ;;  %1556 = vmatpush.msk.msra.mxu1 %vm1193_vm8, %v1143_v41 }
 0x122   : > { %837 = vst.msk [vmem:[#allocation3 + $0x40] sm:$0xff] %vm828_vm7, %v797_v57  ;;  %1560 = vmatpush.msra.mxu2 %v1142_v1  ;;  %1561 = vmatpush.msra.mxu3 %v1142_v1 }
 0x123   : > { %1068 = vrot.lane.b32.xlu1 %v2014_v20, %s1670_s13  ;;  %1209 = vmatpush.msra.mxu0 %v1142_v1 }
 0x124   : > { %1559 = vmatpush.msra.mxu1 %v1142_v1  ;;  %1563 = vmatpush.msra.mxu2 %v1141_v46 }
 0x125   : > { %1060 = vrot.lane.b32.xlu0 %v2002_v54, %s1670_s13  ;;  %v795_v0 = vpop.permute.xlu1 %794  ;;  %1564 = vmatpush.msra.mxu3 %v1141_v46 }
 0x126   : > { %836 = vst.msk [vmem:[#allocation3 + $0x38] sm:$0xff] %vm828_vm7, %v795_v0  ;;  %1210 = vmatpush.msra.mxu0 %v1141_v46  ;;  %1562 = vmatpush.msra.mxu1 %v1141_v46 }
 0x127   : > { %v793_v17 = vpop.permute.xlu0 %792  ;;  %990 = vrot.lane.b32.xlu2 %v1927_v10, %s1668_s11  ;;  %v1140_v10 = vld [vmem:[%s2547_s2 + $0x8] sm:$0xff] }
 0x128   : > { %835 = vst.msk [vmem:[#allocation3 + $0x30] sm:$0xff] %vm828_vm7, %v793_v17  ;;  %1566 = vmatpush.msra.mxu2 %v1140_v10  ;;  %1567 = vmatpush.msra.mxu3 %v1140_v10 }
 0x129   : > { %v805_v30 = vpop.permute.xlu2 %804  ;;  %1211 = vmatpush.msra.mxu0 %v1140_v10  ;;  %1565 = vmatpush.msra.mxu1 %v1140_v10 }
 0x12a   : > { %841 = vst.msk [vmem:[#allocation3 + $0x60] sm:$0xff] %vm828_vm7, %v805_v30  ;;  %1569 = vmatpush.msra.mxu2 %v1139_v5  ;;  %1570 = vmatpush.msra.mxu3 %v1139_v5 }
 0x12b   : > { %1078 = vrot.lane.b32.xlu1 %v2062_v21, %s1670_s13  ;;  %1212 = vmatpush.msra.mxu0 %v1139_v5 }
 0x12c   : > { %1568 = vmatpush.msra.mxu1 %v1139_v5 }
 0x12d   : > { %1016 = vrot.lane.b32.xlu0 %v985_v50, %s1668_s11  ;;  %v801_v3 = vpop.permute.xlu1 %800 }
 0x12e   : > { %839 = vst.msk [vmem:[#allocation3 + $0x50] sm:$0xff] %vm828_vm7, %v801_v3 }
 0x12f   : > { %v799_v11 = vpop.permute.xlu0 %798  ;;  %945 = vrot.lane.b32.xlu2 %v2294_v58, %s1669_s12 }
 0x130   : > { %838 = vst.msk [vmem:[#allocation3 + $0x48] sm:$0xff] %vm828_vm7, %v799_v11 }
 0x131   : > { %v934_v21 = vpop.permute.xlu2 %933 }
 0x133   : > { %862 = vrot.lane.b32.xlu1 %v2018_v2, %s1667_s10  ;;  %v1054_v2 = vrot.slane %v2296_v16, 2 }
 0x135   : > { %854 = vrot.lane.b32.xlu0 %v2025_v4, %s1667_s10  ;;  %v875_v7 = vpop.permute.xlu1 %874  ;;  %v1055_v4 = vsel %vm601_vm3, %v1053_v55, %v1054_v2 }
 0x136   : > { %911 = vst.msk [vmem:[#allocation3 + $0x60] sm:$0xff] %vm898_vm9, %v875_v7 }
 0x137   : > { %v867_v25 = vpop.permute.xlu0 %866  ;;  %1008 = vrot.lane.b32.xlu2 %v1990_v47, %s1668_s11 }
 0x138   : > { %907 = vst.msk [vmem:[#allocation3 + $0x40] sm:$0xff] %vm898_vm9, %v867_v25 }
 0x139   : > { %974 = vst.msk [vmem:[#allocation3 + $0x40] sm:$0xff] %vm965_vm10, %v934_v21  ;;  %v1013_v22 = vpop.permute.xlu2 %1012 }
 0x13b   : > { %921 = vrot.lane.b32.xlu1 %v1829_v33, %s1669_s12 }
 0x13d   : > { %810 = vrot.lane.b32.xlu0 %v2235_v43, %s1666_s8  ;;  %v1005_v47 = vpop.permute.xlu1 %1004 }
 0x13e   : > { %1045 = vst.msk [vmem:[#allocation3 + $0x40] sm:$0xff] %vm1036_vm11, %v1005_v47 }
 0x13f   : > { %v942_v27 = vpop.permute.xlu0 %941  ;;  %1086 = vrot.lane.b32.xlu2 %v1055_v4, %s1670_s13 }
 0x140   : > { %978 = vst.msk [vmem:[#allocation3 + $0x60] sm:$0xff] %vm965_vm10, %v942_v27 }
 0x141   : > { %1049 = vst.msk [vmem:[#allocation3 + $0x60] sm:$0xff] %vm1036_vm11, %v1013_v22  ;;  %v851_v28 = vpop.permute.xlu2 %850 }
 0x142   : > { %899 = vst.msk [vmem:[#allocation3] sm:$0xff] %vm898_vm9, %v851_v28 }
 0x143   : > { %880 = vrot.lane.b32.xlu1 %v2251_v8, %s1667_s10 }
 0x145   : > { %872 = vrot.lane.b32.xlu0 %v2079_v40, %s1667_s10  ;;  %v1083_v33 = vpop.permute.xlu1 %1082 }
 0x146   : > { %1119 = vst.msk [vmem:[#allocation3 + $0x60] sm:$0xff] %vm1106_vm12, %v1083_v33 }
 0x147   : > { %v1075_v43 = vpop.permute.xlu0 %1074  ;;  %802 = vrot.lane.b32.xlu2 %v1936_v13, %s1666_s8  ;;  %s1525_s8 = sshll.u32 %s2562_s19, 5 }
 0x148   : > { %1115 = vst.msk [vmem:[#allocation3 + $0x40] sm:$0xff] %vm1106_vm12, %v1075_v43 }
 0x149   : > { %v918_v29 = vpop.permute.xlu2 %917 }
 0x14a   : > { %966 = vst.msk [vmem:[#allocation3] sm:$0xff] %vm965_vm10, %v918_v29 }
 0x14b   : > { %939 = vrot.lane.b32.xlu1 %v1923_v6, %s1669_s12 }
 0x14d   : > { %1000 = vrot.lane.b32.xlu0 %v1902_v61, %s1668_s11  ;;  %v807_v40 = vpop.permute.xlu1 %806  ;;  %v1135_v12 = vld [vmem:[#allocation3 + $0x60] sm:$0xff]  ;;  %v454_v61 = vld [vmem:[#allocation2 + $0xe8] sm:$0x3] }
 0x14e   : > { %842 = vst.msk [vmem:[#allocation3 + $0x68] sm:$0xff] %vm828_vm7, %v807_v40  ;;  %1540 = vmatmul.msk.f32.vlgmr.msra.gmra.mxu3 %vm1144_vm13, %v1135_v12  ;;  %v986_v63 = vrot.slane %v454_v61, 1  ;;  %v1056_v62 = vrot.slane %v454_v61, 2 }
 0x14f   : > { %v859_v34 = vpop.permute.xlu0 %858  ;;  %v1131_v13 = vld [vmem:[#allocation3 + $0x40] sm:$0xff]  ;;  %929 = vrot.lane.b32.xlu2 %v1837_v35, %s1669_s12 }
 0x150   : > { %903 = vst.msk [vmem:[#allocation3 + $0x20] sm:$0xff] %vm898_vm9, %v859_v34  ;;  %1536 = vmatmul.msk.f32.vlgmr.msra.gmra.mxu2 %vm1144_vm13, %v1131_v13  ;;  %v987_v56 = vsel %vm495_vm2, %v984_v60, %v986_v63 }
 0x151   : > { %v877_v6 = vpop.permute.xlu2 %876 }
 0x152   : > { %912 = vst.msk [vmem:[#allocation3 + $0x68] sm:$0xff] %vm898_vm9, %v877_v6 }
 0x153   : > { %1070 = vrot.lane.b32.xlu1 %v2067_v32, %s1670_s13 }
 0x155   : > { %1062 = vrot.lane.b32.xlu0 %v1998_v52, %s1670_s13  ;;  %v869_v37 = vpop.permute.xlu1 %868 }
 0x156   : > { %908 = vst.msk [vmem:[#allocation3 + $0x48] sm:$0xff] %vm898_vm9, %v869_v37 }
 0x157   : > { %v926_v8 = vpop.permute.xlu0 %925  ;;  %992 = vrot.lane.b32.xlu2 %v1869_v48, %s1668_s11 }
 0x158   : > { %970 = vst.msk [vmem:[#allocation3 + $0x20] sm:$0xff] %vm965_vm10, %v926_v8 }
 0x159   : > { %v936_v35 = vpop.permute.xlu2 %935 }
 0x15a   : > { %975 = vst.msk [vmem:[#allocation3 + $0x48] sm:$0xff] %vm965_vm10, %v936_v35 }
 0x15b   : > { %1080 = vrot.lane.b32.xlu1 %v2053_v31, %s1670_s13 }
 0x15d   : > { %1018 = vrot.lane.b32.xlu0 %v987_v56, %s1668_s11  ;;  %v997_v52 = vpop.permute.xlu1 %996 }
 0x15e   : > { %1041 = vst.msk [vmem:[#allocation3 + $0x20] sm:$0xff] %vm1036_vm11, %v997_v52 }
 0x15f   : > { %v989_v32 = vpop.permute.xlu0 %988  ;;  %947 = vrot.lane.b32.xlu2 %v2296_v16, %s1669_s12 }
 0x160   : > { %1037 = vst.msk [vmem:[#allocation3] sm:$0xff] %vm1036_vm11, %v989_v32 }
 0x161   : > { %v1067_v48 = vpop.permute.xlu2 %1066 }
 0x162   : > { %1111 = vst.msk [vmem:[#allocation3 + $0x20] sm:$0xff] %vm1106_vm12, %v1067_v48 }
 0x163   : > { %864 = vrot.lane.b32.xlu1 %v2014_v20, %s1667_s10 }
 0x165   : > { %856 = vrot.lane.b32.xlu0 %v2002_v54, %s1667_s10  ;;  %v1059_v31 = vpop.permute.xlu1 %1058  ;;  %v1057_v54 = vsel %vm601_vm3, %v1054_v2, %v1056_v62  ;;  %s352_s10 = sadd.s32 %s1525_s8, %s2566_s6 }
 0x166   : > { %1107 = vst.msk [vmem:[#allocation3] sm:$0xff] %vm1106_vm12, %v1059_v31 }
 0x167   : > { %v944_v19 = vpop.permute.xlu0 %943  ;;  %1010 = vrot.lane.b32.xlu2 %v1965_v14, %s1668_s11 }
 0x168   : > { %979 = vst.msk [vmem:[#allocation3 + $0x68] sm:$0xff] %vm965_vm10, %v944_v19 }
 0x169   : > { %v1077_v39 = vpop.permute.xlu2 %1076  ;;  %v1127_v9 = vld [vmem:[#allocation3 + $0x20] sm:$0xff] }
 0x16a   : > { %1532 = vmatmul.msk.f32.vlgmr.msra.gmra.mxu1 %vm1144_vm13, %v1127_v9 }
 0x16b   : > { %994 = vrot.lane.b32.xlu1 %v1856_v42, %s1668_s11 }
 0x16d   : > { %931 = vrot.lane.b32.xlu0 %v1844_v38, %s1669_s12  ;;  %v1015_v20 = vpop.permute.xlu1 %1014  ;;  %v1123_v49 = vld [vmem:[#allocation3] sm:$0xff] }
 0x16e   : > { %1050 = vst.msk [vmem:[#allocation3 + $0x68] sm:$0xff] %vm1036_vm11, %v1015_v20  ;;  %1528 = vmatmul.msk.f32.vlgmr.msra.gmra.mxu0 %vm1144_vm13, %v1123_v49 }
 0x16f   : > { %v1007_v14 = vpop.permute.xlu0 %1006  ;;  %1088 = vrot.lane.b32.xlu2 %v1057_v54, %s1670_s13 }
 0x170   : > { %1046 = vst.msk [vmem:[#allocation3 + $0x48] sm:$0xff] %vm1036_vm11, %v1007_v14 }
 0x171   : > { %1116 = vst.msk [vmem:[#allocation3 + $0x48] sm:$0xff] %vm1106_vm12, %v1077_v39  ;;  %v861_v42 = vpop.permute.xlu2 %860 }
 0x172   : > { %904 = vst.msk [vmem:[#allocation3 + $0x28] sm:$0xff] %vm898_vm9, %v861_v42 }
 0x173   : > { %1072 = vrot.lane.b32.xlu1 %v2037_v23, %s1670_s13 }
 0x175   : > { %1064 = vrot.lane.b32.xlu0 %v2044_v26, %s1670_s13  ;;  %v853_v38 = vpop.permute.xlu1 %852 }
 0x176   : > { %900 = vst.msk [vmem:[#allocation3 + $0x8] sm:$0xff] %vm898_vm9, %v853_v38 }
 0x177   : > { %v1085_v45 = vpop.permute.xlu0 %1084  ;;  %923 = vrot.lane.b32.xlu2 %v1808_v24, %s1669_s12 }
 0x178   : > { %1120 = vst.msk [vmem:[#allocation3 + $0x68] sm:$0xff] %vm1106_vm12, %v1085_v45  ;;  %v1132_v51 = vld [vmem:[#allocation3 + $0x48] sm:$0xff] }
 0x179   : > { %1537 = vmatmul.msk.f32.gmra.mxu2 %vm1144_vm13, %v1132_v51  ;;  %v928_v53 = vpop.permute.xlu2 %927 }
 0x17a   : > { %971 = vst.msk [vmem:[#allocation3 + $0x28] sm:$0xff] %vm965_vm10, %v928_v53 }
 0x17d   : > { %v920_v18 = vpop.permute.xlu1 %919 }
 0x17e   : > { %967 = vst.msk [vmem:[#allocation3 + $0x8] sm:$0xff] %vm965_vm10, %v920_v18 }
 0x17f   : > { %v809_v23 = vpop.permute.xlu0 %808  ;;  %v1136_v26 = vld [vmem:[#allocation3 + $0x68] sm:$0xff]  ;;  %1002 = vrot.lane.b32.xlu2 %v1971_v36, %s1668_s11  ;;  %s1526_s11 = sshll.u32 %s352_s10, 3 }
 0x180   : > { %843 = vst.msk [vmem:[#allocation3 + $0x70] sm:$0xff] %vm828_vm7, %v809_v23  ;;  %1541 = vmatmul.msk.f32.gmra.mxu3 %vm1144_vm13, %v1136_v26  ;;  %s2472_s14 = scalar_lea.vmem %s2548_s3, %s1526_s11 }
 0x181   : > { %v991_v24 = vpop.permute.xlu2 %990 }
 0x182   : > { %1038 = vst.msk [vmem:[#allocation3 + $0x8] sm:$0xff] %vm1036_vm11, %v991_v24 }
 0x185   : > { %v879_v15 = vpop.permute.xlu1 %878 }
 0x186   : > { %913 = vst.msk [vmem:[#allocation3 + $0x70] sm:$0xff] %vm898_vm9, %v879_v15 }
 0x187   : > { %v871_v57 = vpop.permute.xlu0 %870 }
 0x188   : > { %909 = vst.msk [vmem:[#allocation3 + $0x50] sm:$0xff] %vm898_vm9, %v871_v57 }
 0x189   : > { %v946_v58 = vpop.permute.xlu2 %945 }
 0x18a   : > { %980 = vst.msk [vmem:[#allocation3 + $0x70] sm:$0xff] %vm965_vm10, %v946_v58 }
 0x18d   : > { %v938_v16 = vpop.permute.xlu1 %937 }
 0x18e   : > { %976 = vst.msk [vmem:[#allocation3 + $0x50] sm:$0xff] %vm965_vm10, %v938_v16 }
 0x18f   : > { %v999_v36 = vpop.permute.xlu0 %998 }
 0x190   : > { %1042 = vst.msk [vmem:[#allocation3 + $0x28] sm:$0xff] %vm1036_vm11, %v999_v36 }
 0x191   : > { %v1009_v0 = vpop.permute.xlu2 %1008 }
 0x192   : > { %1047 = vst.msk [vmem:[#allocation3 + $0x50] sm:$0xff] %vm1036_vm11, %v1009_v0 }
 0x195   : > { %v1069_v41 = vpop.permute.xlu1 %1068 }
 0x196   : > { %1112 = vst.msk [vmem:[#allocation3 + $0x28] sm:$0xff] %vm1106_vm12, %v1069_v41 }
 0x197   : > { %v1061_v59 = vpop.permute.xlu0 %1060 }
 0x198   : > { %1108 = vst.msk [vmem:[#allocation3 + $0x8] sm:$0xff] %vm1106_vm12, %v1061_v59 }
 0x199   : > { %v1087_v60 = vpop.permute.xlu2 %1086 }
 0x19d   : > { %v1079_v17 = vpop.permute.xlu1 %1078  ;;  %v1128_v1 = vld [vmem:[#allocation3 + $0x28] sm:$0xff] }
 0x19e   : > { %1117 = vst.msk [vmem:[#allocation3 + $0x50] sm:$0xff] %vm1106_vm12, %v1079_v17  ;;  %1533 = vmatmul.msk.f32.gmra.mxu1 %vm1144_vm13, %v1128_v1 }
 0x19f   : > { %v1017_v46 = vpop.permute.xlu0 %1016  ;;  %v1124_v30 = vld [vmem:[#allocation3 + $0x8] sm:$0xff] }
 0x1a0   : > { %1051 = vst.msk [vmem:[#allocation3 + $0x70] sm:$0xff] %vm1036_vm11, %v1017_v46  ;;  %1529 = vmatmul.msk.f32.gmra.mxu0 %vm1144_vm13, %v1124_v30 }
 0x1a1   : > { %1121 = vst.msk [vmem:[#allocation3 + $0x70] sm:$0xff] %vm1106_vm12, %v1087_v60  ;;  %v803_v50 = vpop.permute.xlu2 %802 }
 0x1a2   : > { %840 = vst.msk [vmem:[#allocation3 + $0x58] sm:$0xff] %vm828_vm7, %v803_v50 }
 0x1a5   : > { %v863_v10 = vpop.permute.xlu1 %862  ;;  %v1133_v3 = vld [vmem:[#allocation3 + $0x50] sm:$0xff] }
 0x1a6   : > { %905 = vst.msk [vmem:[#allocation3 + $0x30] sm:$0xff] %vm898_vm9, %v863_v10  ;;  %1538 = vmatmul.msk.f32.gmra.mxu2 %vm1144_vm13, %v1133_v3 }
 0x1a7   : > { %v855_v5 = vpop.permute.xlu0 %854 }
 0x1a8   : > { %901 = vst.msk [vmem:[#allocation3 + $0x10] sm:$0xff] %vm898_vm9, %v855_v5  ;;  %v1137_v11 = vld [vmem:[#allocation3 + $0x70] sm:$0xff] }
 0x1a9   : > { %1542 = vmatmul.msk.f32.gmra.mxu3 %vm1144_vm13, %v1137_v11  ;;  %v930_v21 = vpop.permute.xlu2 %929 }
 0x1aa   : > { %972 = vst.msk [vmem:[#allocation3 + $0x30] sm:$0xff] %vm965_vm10, %v930_v21 }
 0x1ad   : > { %v922_v44 = vpop.permute.xlu1 %921 }
 0x1ae   : > { %968 = vst.msk [vmem:[#allocation3 + $0x10] sm:$0xff] %vm965_vm10, %v922_v44 }
 0x1af   : > { %v811_v7 = vpop.permute.xlu0 %810 }
 0x1b0   : > { %844 = vst.msk [vmem:[#allocation3 + $0x78] sm:$0xff] %vm828_vm7, %v811_v7 }
 0x1b1   : > { %v993_v25 = vpop.permute.xlu2 %992 }
 0x1b2   : > { %1039 = vst.msk [vmem:[#allocation3 + $0x10] sm:$0xff] %vm1036_vm11, %v993_v25 }
 0x1b5   : > { %v881_v55 = vpop.permute.xlu1 %880 }
 0x1b6   : > { %914 = vst.msk [vmem:[#allocation3 + $0x78] sm:$0xff] %vm898_vm9, %v881_v55 }
 0x1b7   : > { %v873_v2 = vpop.permute.xlu0 %872 }
 0x1b8   : > { %910 = vst.msk [vmem:[#allocation3 + $0x58] sm:$0xff] %vm898_vm9, %v873_v2 }
 0x1b9   : > { %v948_v22 = vpop.permute.xlu2 %947 }
 0x1ba   : > { %981 = vst.msk [vmem:[#allocation3 + $0x78] sm:$0xff] %vm965_vm10, %v948_v22 }
 0x1bd   : > { %v940_v4 = vpop.permute.xlu1 %939 }
 0x1be   : > { %977 = vst.msk [vmem:[#allocation3 + $0x58] sm:$0xff] %vm965_vm10, %v940_v4 }
 0x1bf   : > { %v1001_v47 = vpop.permute.xlu0 %1000 }
 0x1c0   : > { %1043 = vst.msk [vmem:[#allocation3 + $0x30] sm:$0xff] %vm1036_vm11, %v1001_v47 }
 0x1c1   : > { %v1011_v27 = vpop.permute.xlu2 %1010 }
 0x1c2   : > { %1048 = vst.msk [vmem:[#allocation3 + $0x58] sm:$0xff] %vm1036_vm11, %v1011_v27 }
 0x1c5   : > { %v1071_v28 = vpop.permute.xlu1 %1070 }
 0x1c6   : > { %1113 = vst.msk [vmem:[#allocation3 + $0x30] sm:$0xff] %vm1106_vm12, %v1071_v28 }
 0x1c7   : > { %v1063_v33 = vpop.permute.xlu0 %1062 }
 0x1c8   : > { %1109 = vst.msk [vmem:[#allocation3 + $0x10] sm:$0xff] %vm1106_vm12, %v1063_v33 }
 0x1c9   : > { %v1089_v43 = vpop.permute.xlu2 %1088 }
 0x1cd   : > { %v1081_v29 = vpop.permute.xlu1 %1080  ;;  %v1129_v40 = vld [vmem:[#allocation3 + $0x30] sm:$0xff] }
 0x1ce   : > { %1118 = vst.msk [vmem:[#allocation3 + $0x58] sm:$0xff] %vm1106_vm12, %v1081_v29  ;;  %1534 = vmatmul.msk.f32.gmra.mxu1 %vm1144_vm13, %v1129_v40 }
 0x1cf   : > { %v1019_v12 = vpop.permute.xlu0 %1018  ;;  %v1125_v34 = vld [vmem:[#allocation3 + $0x10] sm:$0xff] }
 0x1d0   : > { %1052 = vst.msk [vmem:[#allocation3 + $0x78] sm:$0xff] %vm1036_vm11, %v1019_v12  ;;  %1530 = vmatmul.msk.f32.gmra.mxu0 %vm1144_vm13, %v1125_v34 }
 0x1d1   : > { %v2476_v13 = vpop.f32.mrf.mxu3  ;;  %1122 = vst.msk [vmem:[#allocation3 + $0x78] sm:$0xff] %vm1106_vm12, %v1089_v43  ;;  %v924_v61 = vpop.permute.xlu2 %923 }
 0x1d2   : > { %1274 = vst [vmem:[%s2472_s14 + $0x60] sm:$0xff] %v2476_v13 }
 0x1d3   : > { %v2481_v6 = vpop.f32.mrf.mxu2 }
 0x1d4   : > { %1270 = vst [vmem:[%s2472_s14 + $0x40] sm:$0xff] %v2481_v6 }
 0x1d5   : > { %v865_v37 = vpop.permute.xlu1 %864  ;;  %v1134_v63 = vld [vmem:[#allocation3 + $0x58] sm:$0xff] }
 0x1d6   : > { %906 = vst.msk [vmem:[#allocation3 + $0x38] sm:$0xff] %vm898_vm9, %v865_v37  ;;  %1539 = vmatmul.msk.f32.gmra.mxu2 %vm1144_vm13, %v1134_v63 }
 0x1d7   : > { %v857_v8 = vpop.permute.xlu0 %856 }
 0x1d8   : > { %902 = vst.msk [vmem:[#allocation3 + $0x18] sm:$0xff] %vm898_vm9, %v857_v8  ;;  %v1138_v35 = vld [vmem:[#allocation3 + $0x78] sm:$0xff] }
 0x1d9   : > { %969 = vst.msk [vmem:[#allocation3 + $0x18] sm:$0xff] %vm965_vm10, %v924_v61  ;;  %1543 = vmatmul.msk.f32.gmra.mxu3 %vm1144_vm13, %v1138_v35  ;;  %v1003_v52 = vpop.permute.xlu2 %1002 }
 0x1dd   : > { %v995_v56 = vpop.permute.xlu1 %994 }
 0x1de   : > { %1040 = vst.msk [vmem:[#allocation3 + $0x18] sm:$0xff] %vm1036_vm11, %v995_v56 }
 0x1df   : > { %v932_v32 = vpop.permute.xlu0 %931 }
 0x1e0   : > { %973 = vst.msk [vmem:[#allocation3 + $0x38] sm:$0xff] %vm965_vm10, %v932_v32 }
 0x1e1   : > { %1044 = vst.msk [vmem:[#allocation3 + $0x38] sm:$0xff] %vm1036_vm11, %v1003_v52 }
 0x1e5   : > { %v1073_v48 = vpop.permute.xlu1 %1072 }
 0x1e6   : > { %1114 = vst.msk [vmem:[#allocation3 + $0x38] sm:$0xff] %vm1106_vm12, %v1073_v48 }
 0x1e7   : > { %v1065_v31 = vpop.permute.xlu0 %1064  ;;  %v1226_v19 = vpop.f32.mrf.mxu1 }
 0x1e8   : > { %1110 = vst.msk [vmem:[#allocation3 + $0x18] sm:$0xff] %vm1106_vm12, %v1065_v31 }
 0x1e9   : > { %1266 = vst [vmem:[%s2472_s14 + $0x20] sm:$0xff] %v1226_v19 }
 0x1eb   : > { %v1214_v62 = vpop.f32.mrf.mxu0 }
 0x1ec   : > { %1262 = vst [vmem:[%s2472_s14] sm:$0xff] %v1214_v62 }
 0x1ed   : > { %v1130_v39 = vld [vmem:[#allocation3 + $0x38] sm:$0xff] }
 0x1ee   : > { %1535 = vmatmul.msk.f32.gmra.mxu1 %vm1144_vm13, %v1130_v39 }
 0x1ef   : > { %v1126_v9 = vld [vmem:[#allocation3 + $0x18] sm:$0xff] }
 0x1f0   : > { %1531 = vmatmul.msk.f32.gmra.mxu0 %vm1144_vm13, %v1126_v9 }
 0x1fc   : > { %v1241_v54 = vpop.f32.mrf.mxu2 }
 0x1fd   : > { %1271 = vst [vmem:[%s2472_s14 + $0x48] sm:$0xff] %v1241_v54 }
 0x203   : > { %v2500_v20 = vpop.f32.mrf.mxu3 }
 0x204   : > { %1275 = vst [vmem:[%s2472_s14 + $0x68] sm:$0xff] %v2500_v20 }
 0x21b   : > { %v1229_v49 = vpop.f32.mrf.mxu1 }
 0x21c   : > { %1267 = vst [vmem:[%s2472_s14 + $0x28] sm:$0xff] %v1229_v49 }
 0x21d   : > { %v1217_v14 = vpop.f32.mrf.mxu0 }
 0x21e   : > { %1263 = vst [vmem:[%s2472_s14 + $0x8] sm:$0xff] %v1217_v14 }
 0x229   : > { %v1244_v42 = vpop.f32.mrf.mxu2 }
 0x22a   : > { %1272 = vst [vmem:[%s2472_s14 + $0x50] sm:$0xff] %v1244_v42 }
 0x22c   : > { %v1256_v38 = vpop.f32.mrf.mxu3 }
 0x22d   : > { %1276 = vst [vmem:[%s2472_s14 + $0x70] sm:$0xff] %v1256_v38 }
 0x24b   : > { %v1232_v45 = vpop.f32.mrf.mxu1 }
 0x24c   : > { %1268 = vst [vmem:[%s2472_s14 + $0x30] sm:$0xff] %v1232_v45 }
 0x24d   : > { %v1220_v51 = vpop.f32.mrf.mxu0 }
 0x24e   : > { %1264 = vst [vmem:[%s2472_s14 + $0x10] sm:$0xff] %v1220_v51 }
 0x259   : > { %v1247_v53 = vpop.f32.mrf.mxu2 }
 0x25a   : > { %1273 = vst [vmem:[%s2472_s14 + $0x58] sm:$0xff] %v1247_v53 }
 0x25c   : > { %v1259_v18 = vpop.f32.mrf.mxu3 }
 0x25d   : > { %1277 = vst [vmem:[%s2472_s14 + $0x78] sm:$0xff] %v1259_v18 }
 0x26a   : > { %1281 = sbr.rel (%p1544_p9) target bundleno = 626 (0x272), region = 36 }
 0x26b   : > { %v1235_v23 = vpop.f32.mrf.mxu1 }
 0x26c   : > { %1269 = vst [vmem:[%s2472_s14 + $0x38] sm:$0xff] %v1235_v23 }
 0x26d   : > { %v1223_v26 = vpop.f32.mrf.mxu0 }
 0x26e   : > { %1265 = vst [vmem:[%s2472_s14 + $0x18] sm:$0xff] %v1223_v26 }
 0x26f   : > { %v1671_v24 = vmov 0.0  }
 0x270   : > { %1282 = vst [vmem:[%s1742_s30] sm:$0x1] %v1671_v24 }
 0x271   : > { %1283 = vst [vmem:[%s1748_s9] sm:$0x1] %v1671_v24 }
 0x272 PF: > { %v1285_v15 = vadd.f32 %v1217_v14, %v1214_v62  ;;  %v1309_v57 = vmul.f32 %v1214_v62, %v1214_v62  ;;  %v1310_v58 = vmul.f32 %v1217_v14, %v1217_v14  ;;  %v1311_v36 = vmul.f32 %v1220_v51, %v1220_v51 }
 0x273   : > { %v1312_v41 = vmul.f32 %v1223_v26, %v1223_v26  ;;  %v1313_v17 = vmul.f32 %v1226_v19, %v1226_v19  ;;  %v1314_v30 = vmul.f32 %v1229_v49, %v1229_v49  ;;  %v1315_v3 = vmul.f32 %v1232_v45, %v1232_v45 }
 0x274   : > { %v1286_v16 = vadd.f32 %v1285_v15, %v1220_v51  ;;  %v1325_v59 = vadd.f32 %v1310_v58, %v1309_v57  ;;  %v1316_v21 = vmul.f32 %v1235_v23, %v1235_v23  ;;  %v1317_v25 = vmul.f32 %v2481_v6, %v2481_v6 }
 0x275   : > { %v1318_v22 = vmul.f32 %v1241_v54, %v1241_v54  ;;  %v1319_v27 = vmul.f32 %v1244_v42, %v1244_v42  ;;  %v1320_v43 = vmul.f32 %v1247_v53, %v1247_v53  ;;  %v1321_v12 = vmul.f32 %v2476_v13, %v2476_v13 }
 0x276   : > { %v1287_v0 = vadd.f32 %v1286_v16, %v1223_v26  ;;  %v1326_v1 = vadd.f32 %v1325_v59, %v1311_v36  ;;  %v1323_v8 = vmul.f32 %v1256_v38, %v1256_v38  ;;  %v1324_v52 = vmul.f32 %v1259_v18, %v1259_v18 }
 0x277   : > { %v1284_v14 = vld [vmem:[%s1742_s30] sm:$0x1] }
 0x278   : > { %v1288_v60 = vadd.f32 %v1287_v0, %v1226_v19  ;;  %v1327_v50 = vadd.f32 %v1326_v1, %v1312_v41 }
 0x27a   : > { %v1289_v46 = vadd.f32 %v1288_v60, %v1229_v49  ;;  %v1328_v5 = vadd.f32 %v1327_v50, %v1313_v17 }
 0x27c   : > { %v1290_v10 = vadd.f32 %v1289_v46, %v1232_v45  ;;  %v1329_v44 = vadd.f32 %v1328_v5, %v1314_v30 }
 0x27e   : > { %v1291_v11 = vadd.f32 %v1290_v10, %v1235_v23  ;;  %v1330_v55 = vadd.f32 %v1329_v44, %v1315_v3 }
 0x280   : > { %v1292_v7 = vadd.f32 %v1291_v11, %v2481_v6  ;;  %v1331_v4 = vadd.f32 %v1330_v55, %v1316_v21  ;;  %v1322_v6 = vmul.f32 %v2500_v20, %v2500_v20 }
 0x282   : > { %v1293_v2 = vadd.f32 %v1292_v7, %v1241_v54  ;;  %v1332_v28 = vadd.f32 %v1331_v4, %v1317_v25 }
 0x284   : > { %v1294_v47 = vadd.f32 %v1293_v2, %v1244_v42  ;;  %v1333_v29 = vadd.f32 %v1332_v28, %v1318_v22 }
 0x286   : > { %v1295_v33 = vadd.f32 %v1294_v47, %v1247_v53  ;;  %v1334_v34 = vadd.f32 %v1333_v29, %v1319_v27  ;;  %v1308_v53 = vld [vmem:[%s1748_s9] sm:$0x1] }
 0x288   : > { %v1296_v40 = vadd.f32 %v1295_v33, %v2476_v13  ;;  %v1335_v37 = vadd.f32 %v1334_v34, %v1320_v43 }
 0x28a   : > { %v1297_v61 = vadd.f32 %v1296_v40, %v2500_v20  ;;  %v1336_v35 = vadd.f32 %v1335_v37, %v1321_v12 }
 0x28c   : > { %v1298_v63 = vadd.f32 %v1297_v61, %v1256_v38  ;;  %v1337_v32 = vadd.f32 %v1336_v35, %v1322_v6 }
 0x28e   : > { %v1299_v56 = vadd.f32 %v1298_v63, %v1259_v18  ;;  %v1338_v31 = vadd.f32 %v1337_v32, %v1323_v8 }
 0x290   : > { %v1300_v48 = vrot.slane %v1299_v56, 4  ;;  %v1339_v13 = vadd.f32 %v1338_v31, %v1324_v52 }
 0x292   : > { %v1301_v19 = vadd.f32 %v1300_v48, %v1299_v56  ;;  %v1340_v39 = vrot.slane %v1339_v13, 4 }
 0x294   : > { %v1302_v62 = vrot.slane %v1301_v19, 2  ;;  %v1341_v54 = vadd.f32 %v1340_v39, %v1339_v13 }
 0x296   : > { %v1303_v9 = vadd.f32 %v1302_v62, %v1301_v19  ;;  %v1342_v49 = vrot.slane %v1341_v54, 2 }
 0x298   : > { %v1304_v20 = vrot.slane %v1303_v9, 1  ;;  %v1343_v38 = vadd.f32 %v1342_v49, %v1341_v54 }
 0x29a   : > { %v1305_v42 = vadd.f32 %v1304_v20, %v1303_v9  ;;  %v1344_v51 = vrot.slane %v1343_v38, 1 }
 0x29c   : > { %v1306_v45 = vadd.f32 %v1305_v42, %v1284_v14  ;;  %v1345_v18 = vadd.f32 %v1344_v51, %v1343_v38 }
 0x29e   : > { %1307 = vst [vmem:[%s1742_s30] sm:$0x1] %v1306_v45  ;;  %v1346_v23 = vadd.f32 %v1345_v18, %v1308_v53 }
 0x2a0   : > { %1347 = vst [vmem:[%s1748_s9] sm:$0x1] %v1346_v23 }
 0x2a1 PF: > { %s16_s22 = sadd.s32 1, %s1661_s22   ;;  %s2551_s18 = smov %s1653_s20 }
 0x2a2   : > { %p13_p10 = scmp.ge.s32.totalorder %s16_s22, 6   ;;  %s2552_s19 = smov %s1657_s21 }
 0x2a3   : > { %s2553_s20 = smov %s2556_s23  ;;  %s2554_s21 = smov %s2560_s24 }
 0x2a4   :  { %15 = sbr.rel (!%p13_p10) target bundleno = 3 (0x3), region = 94 }

// kernel: d_conv_layer_forward.6
= control target key start
LH: loop header
LB: loop body
LE: loop exit
PB: predicated region body
PF: predicated region fallthrough
CT: control target
= control target key end

     0   :  { %s2094_s18 = smov 0   ;;  %s2096_s19 = smov 0   ;;  %s3165_s0 = inlined_call_operand.vmem [shape: f32[2,18,18,128], index: 0, kind: input, shape index: {}, may-alias: {0,1}]   ;;  %s3166_s1 = inlined_call_operand.vmem [shape: f32[2,18,18,128], index: 1, kind: input, shape index: {}, may-alias: {0,1}]   ;;  %s3167_s2 = inlined_call_operand.vmem [shape: f32[1152,128], index: 2, kind: input, shape index: {}]   ;;  %s3168_s3 = inlined_call_operand.vmem [shape: f32[2,256,128], index: 3, kind: output, shape index: {0}]   ;;  %s3169_s4 = inlined_call_operand.vmem [shape: f32[2,1,128], index: 4, kind: output, shape index: {1}]   ;;  %s3170_s5 = inlined_call_operand.vmem [shape: f32[2,1,128], index: 5, kind: output, shape index: {2}]  }
   0x1   :  { %s2098_s20 = smov 0   ;;  %s2100_s21 = smov 0  }
   0x2   :  { %s2102_s22 = smov 0  }
   0x3 LB: > { %s25_s23 = sadd.s32 1, %s2053_s20  ;;  %s28_s24 = sadd.s32 1, %s2057_s21  ;;  %s2061_s22 = sphi %s2102_s22, %s16_s22   ;;  %s2057_s21 = sphi %s2100_s21, %s3174_s21   ;;  %s2053_s20 = sphi %s2098_s20, %s3173_s20   ;;  %s2049_s19 = sphi %s2096_s19, %s3172_s19   ;;  %s2045_s18 = sphi %s2094_s18, %s3171_s18  }
   0x4   : > { %p26_p0 = scmp.ge.s32.totalorder %s25_s23, 2  ;;  %p1898_p1 = scmp.ge.s32.totalorder %s2061_s22, 1 }
   0x5   : > { %p250_p2 = scmp.lt.s32.totalorder %s2061_s22, 5 }
   0x6   : > { %s3176_s23 = smov (%p26_p0, %s25_s23), 0  ;;  %s3178_s24 = smov (!%p26_p0, %s28_s24), %s2057_s21 }
   0x7   : > { %p251_p3 = pnand %p1898_p1, %p250_p2  ;;  %p30_p4 = scmp.ge.s32.totalorder %s3178_s24, 2 }
   0x8   : > { %s2133_s29 = sshll.u32 (!%p251_p3), %s2045_s18, 3  ;;  %p316_p5 = scmp.lt.s32.totalorder (!%p251_p3), %s2049_s19, 1 }
   0x9   : > { %s3180_s24 = smov (%p30_p4, %s3178_s24), 0  ;;  %254 = sbr.rel (%p251_p3) target bundleno = 521 (0x209), region = 32 }
   0xa   : > { %p318_p6 = scmp.lt.s32.totalorder (!%p251_p3), %s2133_s29, 17  ;;  %s1918_s25 = sadd.s32 (!%p251_p3), 8, %s2133_s29 }
   0xb   : > { %p336_p7 = scmp.lt.s32.totalorder (!%p251_p3), %s1918_s25, 17  ;;  %p1907_p9 = scmp.ne.s32.totalorder (!%p251_p3), %s2045_s18, 0 }
   0xe   : > { %v928_v0 = vld [vmem:[%s3167_s2 + $0x78] sm:$0xff]  ;;  %v927_v1 = vld [vmem:[%s3167_s2 + $0x70] sm:$0xff]  ;;  %v926_v2 = vld [vmem:[%s3167_s2 + $0x68] sm:$0xff]  ;;  %s3182_s19 = smov (!%p316_p5, %s2049_s19), 1  ;;  %s3184_s25 = smov (!%p336_p7, %s1918_s25), 17  ;;  %vm566_vm0 = vcmask 1045504  }
   0xf   : > { %1919 = vmatpush.msra.mxu1 %v928_v0  ;;  %1920 = vmatpush.msra.mxu2 %v928_v0  ;;  %s319_s7 = scalar_select %p318_p6, %s2133_s29, 17  ;;  %v925_v3 = vld [vmem:[%s3167_s2 + $0x60] sm:$0xff]  ;;  %v924_v4 = vld [vmem:[%s3167_s2 + $0x58] sm:$0xff]  ;;  %v923_v5 = vld [vmem:[%s3167_s2 + $0x50] sm:$0xff]  ;;  %vm493_vm1 = vcmask 1046528  }
  0x10   : > { %1921 = vmatpush.msra.mxu3 %v928_v0  ;;  %1057 = vmatpush.msra.mxu0 %v928_v0  ;;  %s1968_s10 = smul.u32 54, %s3182_s19  ;;  %s2150_s13 = scalar_lea.vmem %s3169_s4, %s3182_s19  ;;  %v922_v6 = vld [vmem:[%s3167_s2 + $0x48] sm:$0xff]  ;;  %v921_v9 = vld [vmem:[%s3167_s2 + $0x40] sm:$0xff]  ;;  %v920_v12 = vld [vmem:[%s3167_s2 + $0x38] sm:$0xff] }
  0x11   : > { %1922 = vmatpush.msra.mxu1 %v927_v1  ;;  %1923 = vmatpush.msra.mxu2 %v927_v1  ;;  %s1967_s14 = smul.u32 3, %s319_s7  ;;  %s2156_s17 = scalar_lea.vmem %s3170_s5, %s3182_s19  ;;  %v919_v15 = vld [vmem:[%s3167_s2 + $0x30] sm:$0xff]  ;;  %v918_v18 = vld [vmem:[%s3167_s2 + $0x28] sm:$0xff]  ;;  %v917_v20 = vld [vmem:[%s3167_s2 + $0x20] sm:$0xff] }
  0x12   : > { %1924 = vmatpush.msra.mxu3 %v927_v1  ;;  %1058 = vmatpush.msra.mxu0 %v927_v1  ;;  %v916_v23 = vld [vmem:[%s3167_s2 + $0x18] sm:$0xff]  ;;  %v915_v24 = vld [vmem:[%s3167_s2 + $0x10] sm:$0xff]  ;;  %v914_v25 = vld [vmem:[%s3167_s2 + $0x8] sm:$0xff]  ;;  %s1969_s16 = smul.u32 3, %s3184_s25 }
  0x13   : > { %1925 = vmatpush.msra.mxu1 %v926_v2  ;;  %1926 = vmatpush.msra.mxu2 %v926_v2  ;;  %s322_s27 = sadd.s32 %s1968_s10, %s1967_s14  ;;  %v913_v27 = vld [vmem:[%s3167_s2] sm:$0xff]  ;;  %v960_v29 = vld [vmem:[%s3167_s2 + $0x178] sm:$0xff]  ;;  %v959_v33 = vld [vmem:[%s3167_s2 + $0x170] sm:$0xff] }
  0x14   : > { %1927 = vmatpush.msra.mxu3 %v926_v2  ;;  %1059 = vmatpush.msra.mxu0 %v926_v2  ;;  %s1900_s6 = sshll.u32 %s322_s27, 3  ;;  %v944_v31 = vld [vmem:[%s3167_s2 + $0xf8] sm:$0xff]  ;;  %v943_v35 = vld [vmem:[%s3167_s2 + $0xf0] sm:$0xff]  ;;  %v958_v36 = vld [vmem:[%s3167_s2 + $0x168] sm:$0xff]  ;;  %s2381_s25 = sadd.s32 %s1969_s16, %s1968_s10 }
  0x15   : > { %1928 = vmatpush.msra.mxu1 %v925_v3  ;;  %1929 = vmatpush.msra.mxu2 %v925_v3  ;;  %s2169_s9 = scalar_lea.vmem %s3165_s0, %s1900_s6  ;;  %v976_v34 = vld [vmem:[%s3167_s2 + $0x1f8] sm:$0xff]  ;;  %v975_v37 = vld [vmem:[%s3167_s2 + $0x1f0] sm:$0xff]  ;;  %v942_v39 = vld [vmem:[%s3167_s2 + $0xe8] sm:$0xff]  ;;  %s1903_s8 = sshll.u32 %s2381_s25, 3 }
  0x16   : > { %1930 = vmatpush.msra.mxu3 %v925_v3  ;;  %1060 = vmatpush.msra.mxu0 %v925_v3  ;;  %v2175_v7 = vld [vmem:[%s2169_s9 + $0x30] sm:$0xff]  ;;  %v2179_v8 = vld [vmem:[%s2169_s9 + $0x60] sm:$0xff]  ;;  %v2190_v11 = vld [vmem:[%s2169_s9 + $0x38] sm:$0xff]  ;;  %s2760_s14 = scalar_lea.vmem %s3166_s1, %s1903_s8  ;;  %s1905_s27 = sshll.u32 %s3182_s19, 5 }
  0x17   : > { %1931 = vmatpush.msra.mxu1 %v924_v4  ;;  %1932 = vmatpush.msra.mxu2 %v924_v4  ;;  %392 = vst [vmem:[#allocation2 + $0x30] sm:$0xff] %v2175_v7  ;;  %v2186_v10 = vld [vmem:[%s2169_s9 + $0x90] sm:$0xff]  ;;  %v2197_v13 = vld [vmem:[%s2169_s9 + $0x68] sm:$0xff]  ;;  %v2201_v14 = vld [vmem:[%s2169_s9] sm:$0xff] }
  0x18   : > { %1933 = vmatpush.msra.mxu3 %v924_v4  ;;  %1061 = vmatpush.msra.mxu0 %v924_v4  ;;  %398 = vst [vmem:[#allocation2 + $0x60] sm:$0xff] %v2179_v8  ;;  %v2207_v16 = vld [vmem:[%s2169_s9 + $0x98] sm:$0xff]  ;;  %v2211_v17 = vld [vmem:[%s2169_s9 + $0x48] sm:$0xff]  ;;  %v2241_v26 = vld [vmem:[%s2169_s9 + $0x50] sm:$0xff] }
  0x19   : > { %1934 = vmatpush.msra.mxu1 %v923_v5  ;;  %1935 = vmatpush.msra.mxu2 %v923_v5  ;;  %404 = vst [vmem:[#allocation2 + $0xc0] sm:$0xff] %v2186_v10  ;;  %v2218_v19 = vld [vmem:[%s2169_s9 + $0x78] sm:$0xff]  ;;  %v2225_v21 = vld [vmem:[%s2169_s9 + $0x8] sm:$0xff]  ;;  %v2248_v28 = vld [vmem:[%s2169_s9 + $0x80] sm:$0xff] }
  0x1a   : > { %1936 = vmatpush.msra.mxu3 %v923_v5  ;;  %1062 = vmatpush.msra.mxu0 %v923_v5  ;;  %393 = vst [vmem:[#allocation2 + $0x48] sm:$0xff] %v2190_v11  ;;  %v2228_v22 = vld [vmem:[%s2169_s9 + $0xa8] sm:$0xff]  ;;  %v2255_v30 = vld [vmem:[%s2169_s9 + $0x18] sm:$0xff]  ;;  %v2261_v32 = vld [vmem:[%s2169_s9 + $0xb0] sm:$0xff] }
  0x1b   : > { %1937 = vmatpush.msra.mxu1 %v922_v6  ;;  %1938 = vmatpush.msra.mxu2 %v922_v6  ;;  %399 = vst [vmem:[#allocation2 + $0xa8] sm:$0xff] %v2197_v13  ;;  %v364_v38 = vld [vmem:[%s2169_s9 + $0x10] sm:$0x3]  ;;  %v957_v40 = vld [vmem:[%s3167_s2 + $0x160] sm:$0xff]  ;;  %v974_v41 = vld [vmem:[%s3167_s2 + $0x1e8] sm:$0xff] }
  0x1c   : > { %1939 = vmatpush.msra.mxu3 %v922_v6  ;;  %1063 = vmatpush.msra.mxu0 %v922_v6  ;;  %405 = vst [vmem:[#allocation2 + $0x10] sm:$0xff] %v2207_v16  ;;  %v941_v42 = vld [vmem:[%s3167_s2 + $0xe0] sm:$0xff]  ;;  %v956_v43 = vld [vmem:[%s3167_s2 + $0x158] sm:$0xff]  ;;  %v955_v47 = vld [vmem:[%s3167_s2 + $0x150] sm:$0xff] }
  0x1d   : > { %1940 = vmatpush.msra.mxu1 %v921_v9  ;;  %1941 = vmatpush.msra.mxu2 %v921_v9  ;;  %395 = vst [vmem:[#allocation2 + $0x88] sm:$0xff] %v2211_v17  ;;  %v973_v44 = vld [vmem:[%s3167_s2 + $0x1e0] sm:$0xff]  ;;  %v940_v45 = vld [vmem:[%s3167_s2 + $0xd8] sm:$0xff]  ;;  %v939_v50 = vld [vmem:[%s3167_s2 + $0xd0] sm:$0xff] }
  0x1e   : > { %1942 = vmatpush.msra.mxu3 %v921_v9  ;;  %1064 = vmatpush.msra.mxu0 %v921_v9  ;;  %401 = vst [vmem:[#allocation2 + $0x40] sm:$0xff] %v2218_v19  ;;  %v2306_v46 = vld [vmem:[%s2169_s9 + $0x20] sm:$0xff]  ;;  %v972_v48 = vld [vmem:[%s3167_s2 + $0x1d8] sm:$0xff]  ;;  %v954_v51 = vld [vmem:[%s3167_s2 + $0x148] sm:$0xff] }
  0x1f   : > { %1943 = vmatpush.msra.mxu1 %v920_v12  ;;  %1944 = vmatpush.msra.mxu2 %v920_v12  ;;  %407 = vst [vmem:[#allocation2 + $0x28] sm:$0xff] %v2228_v22  ;;  %v992_v49 = vld [vmem:[%s3167_s2 + $0x278] sm:$0xff]  ;;  %v971_v52 = vld [vmem:[%s3167_s2 + $0x1d0] sm:$0xff]  ;;  %v938_v54 = vld [vmem:[%s3167_s2 + $0xc8] sm:$0xff] }
  0x20   : > { %1945 = vmatpush.msra.mxu3 %v920_v12  ;;  %1065 = vmatpush.msra.mxu0 %v920_v12  ;;  %396 = vst [vmem:[#allocation2 + $0xe8] sm:$0xff] %v2241_v26  ;;  %v991_v53 = vld [vmem:[%s3167_s2 + $0x270] sm:$0xff]  ;;  %v953_v55 = vld [vmem:[%s3167_s2 + $0x140] sm:$0xff]  ;;  %v367_v56 = vld [vmem:[%s2169_s9 + $0x28] sm:$0x3] }
  0x21   : > { %1946 = vmatpush.msra.mxu1 %v919_v15  ;;  %1947 = vmatpush.msra.mxu2 %v919_v15  ;;  %402 = vst [vmem:[#allocation2 + $0x8] sm:$0xff] %v2248_v28  ;;  %v970_v57 = vld [vmem:[%s3167_s2 + $0x1c8] sm:$0xff]  ;;  %v937_v59 = vld [vmem:[%s3167_s2 + $0xc0] sm:$0xff]  ;;  %v952_v60 = vld [vmem:[%s3167_s2 + $0x138] sm:$0xff] }
  0x22   : > { %1948 = vmatpush.msra.mxu3 %v919_v15  ;;  %1066 = vmatpush.msra.mxu0 %v919_v15  ;;  %408 = vst [vmem:[#allocation2 + $0x90] sm:$0xff] %v2261_v32  ;;  %v990_v58 = vld [vmem:[%s3167_s2 + $0x268] sm:$0xff]  ;;  %v969_v61 = vld [vmem:[%s3167_s2 + $0x1c0] sm:$0xff]  ;;  %v936_v63 = vld [vmem:[%s3167_s2 + $0xb8] sm:$0xff] }
  0x23   : > { %1949 = vmatpush.msra.mxu1 %v918_v18  ;;  %1950 = vmatpush.msra.mxu2 %v918_v18  ;;  %388 = vst [vmem:[#allocation2 + $0xd8] sm:$0x3] %v364_v38  ;;  %v989_v62 = vld [vmem:[%s3167_s2 + $0x260] sm:$0xff]  ;;  %v951_v0 = vld [vmem:[%s3167_s2 + $0x130] sm:$0xff]  ;;  %v968_v1 = vld [vmem:[%s3167_s2 + $0x1b8] sm:$0xff] }
  0x24   : > { %1951 = vmatpush.msra.mxu3 %v918_v18  ;;  %1067 = vmatpush.msra.mxu0 %v918_v18  ;;  %391 = vst [vmem:[#allocation2 + $0x68] sm:$0x3] %v367_v56  ;;  %v988_v2 = vld [vmem:[%s3167_s2 + $0x258] sm:$0xff]  ;;  %v935_v3 = vld [vmem:[%s3167_s2 + $0xb0] sm:$0xff]  ;;  %v950_v4 = vld [vmem:[%s3167_s2 + $0x128] sm:$0xff] }
  0x25   : > { %1952 = vmatpush.msra.mxu1 %v917_v20  ;;  %1953 = vmatpush.msra.mxu2 %v917_v20  ;;  %v967_v5 = vld [vmem:[%s3167_s2 + $0x1b0] sm:$0xff]  ;;  %v934_v9 = vld [vmem:[%s3167_s2 + $0xa8] sm:$0xff]  ;;  %v949_v12 = vld [vmem:[%s3167_s2 + $0x120] sm:$0xff] }
  0x26   : > { %1954 = vmatpush.msra.mxu3 %v917_v20  ;;  %1068 = vmatpush.msra.mxu0 %v917_v20  ;;  %v987_v6 = vld [vmem:[%s3167_s2 + $0x250] sm:$0xff]  ;;  %v966_v15 = vld [vmem:[%s3167_s2 + $0x1a8] sm:$0xff]  ;;  %v933_v20 = vld [vmem:[%s3167_s2 + $0xa0] sm:$0xff] }
  0x27   : > { %1955 = vmatpush.msra.mxu1 %v916_v23  ;;  %1956 = vmatpush.msra.mxu2 %v916_v23  ;;  %v986_v18 = vld [vmem:[%s3167_s2 + $0x248] sm:$0xff]  ;;  %v1008_v56 = vld [vmem:[%s3167_s2 + $0x2f8] sm:$0xff] }
  0x28   : > { %1957 = vmatpush.msra.mxu3 %v916_v23  ;;  %1069 = vmatpush.msra.mxu0 %v916_v23  ;;  %v948_v23 = vld [vmem:[%s3167_s2 + $0x118] sm:$0xff]  ;;  %v946_v38 = vld [vmem:[%s3167_s2 + $0x108] sm:$0xff] }
  0x29   : > { %1958 = vmatpush.msra.mxu1 %v915_v24  ;;  %1959 = vmatpush.msra.mxu2 %v915_v24 }
  0x2a   : > { %1960 = vmatpush.msra.mxu3 %v915_v24  ;;  %1070 = vmatpush.msra.mxu0 %v915_v24  ;;  %v965_v24 = vld [vmem:[%s3167_s2 + $0x1a0] sm:$0xff] }
  0x2b   : > { %1961 = vmatpush.msra.mxu1 %v914_v25  ;;  %1962 = vmatpush.msra.mxu2 %v914_v25 }
  0x2c   : > { %1963 = vmatpush.msra.mxu3 %v914_v25  ;;  %1071 = vmatpush.msra.mxu0 %v914_v25  ;;  %v985_v25 = vld [vmem:[%s3167_s2 + $0x240] sm:$0xff] }
  0x2d   : > { %1964 = vmatpush.msra.mxu1 %v913_v27  ;;  %1965 = vmatpush.msra.mxu2 %v913_v27 }
  0x2e   : > { %1085 = vmatmul.f32.vlgmr.msra.gmra.mxu1 %v2175_v7  ;;  %1097 = vmatmul.f32.vlgmr.msra.gmra.mxu2 %v2179_v8 }
  0x2f   : > { %1187 = vmatpush.msrb.mxu2 %v960_v29  ;;  %1966 = vmatpush.msra.mxu3 %v913_v27  ;;  %v947_v29 = vld [vmem:[%s3167_s2 + $0x110] sm:$0xff] }
  0x30   : > { %1122 = vmatpush.msrb.mxu1 %v944_v31  ;;  %1109 = vmatmul.f32.vlgmr.msra.gmra.mxu3 %v2186_v10  ;;  %v370_v31 = vld [vmem:[%s2169_s9 + $0x40] sm:$0x3] }
  0x31   : > { %1188 = vmatpush.msrb.mxu2 %v959_v33  ;;  %1252 = vmatpush.msrb.mxu3 %v976_v34  ;;  %v964_v33 = vld [vmem:[%s3167_s2 + $0x198] sm:$0xff]  ;;  %394 = vst [vmem:[#allocation2 + $0x80] sm:$0x3] %v370_v31 }
  0x32   : > { %1123 = vmatpush.msrb.mxu1 %v943_v35  ;;  %1072 = vmatpush.msra.mxu0 %v913_v27  ;;  %v932_v27 = vld [vmem:[%s3167_s2 + $0x98] sm:$0xff]  ;;  %v567_v35 = vrot.slane %v2201_v14, 2 }
  0x33   : > { %1189 = vmatpush.msrb.mxu2 %v958_v36  ;;  %1253 = vmatpush.msrb.mxu3 %v975_v37  ;;  %v984_v34 = vld [vmem:[%s3167_s2 + $0x238] sm:$0xff]  ;;  %v568_v36 = vrot.slane %v2225_v21, 2  ;;  %v931_v37 = vld [vmem:[%s3167_s2 + $0x90] sm:$0xff] }
  0x34   : > { %1124 = vmatpush.msrb.mxu1 %v942_v39  ;;  %1073 = vmatmul.f32.vlgmr.msra.gmra.mxu0 %v2201_v14  ;;  %v494_v39 = vrot.slane %v2201_v14, 1  ;;  %v930_v14 = vld [vmem:[%s3167_s2 + $0x88] sm:$0xff] }
  0x35   : > { %1190 = vmatpush.msrb.mxu2 %v957_v40  ;;  %1254 = vmatpush.msrb.mxu3 %v974_v41  ;;  %v495_v40 = vrot.slane %v2225_v21, 1  ;;  %v963_v41 = vld [vmem:[%s3167_s2 + $0x190] sm:$0xff] }
  0x36   : > { %1125 = vmatpush.msrb.mxu1 %v941_v42  ;;  %1100 = vmatmul.f32.gmra.mxu2 %v2197_v13  ;;  %v983_v42 = vld [vmem:[%s3167_s2 + $0x230] sm:$0xff] }
  0x37   : > { %1088 = vmatmul.f32.gmra.mxu1 %v2190_v11  ;;  %1191 = vmatpush.msrb.mxu2 %v956_v43  ;;  %v962_v43 = vld [vmem:[%s3167_s2 + $0x188] sm:$0xff] }
  0x38   : > { %1255 = vmatpush.msrb.mxu3 %v973_v44  ;;  %1126 = vmatpush.msrb.mxu1 %v940_v45  ;;  %v982_v44 = vld [vmem:[%s3167_s2 + $0x228] sm:$0xff]  ;;  %v929_v45 = vld [vmem:[%s3167_s2 + $0x80] sm:$0xff] }
  0x39   : > { %1112 = vmatmul.f32.gmra.mxu3 %v2207_v16  ;;  %1192 = vmatpush.msrb.mxu2 %v955_v47  ;;  %v569_v47 = vsel %vm566_vm0, %v567_v35, %v568_v36  ;;  %v1054_v35 = vld [vmem:[%s3167_s2 + $0x468] sm:$0xff] }
  0x3a   : > { %1256 = vmatpush.msrb.mxu3 %v972_v48  ;;  %1317 = vmatpush.msrb.mxu0 %v992_v49  ;;  %v496_v48 = vsel %vm493_vm1, %v494_v39, %v495_v40  ;;  %v961_v49 = vld [vmem:[%s3167_s2 + $0x180] sm:$0xff] }
  0x3b   : > { %1127 = vmatpush.msrb.mxu1 %v939_v50  ;;  %1193 = vmatpush.msrb.mxu2 %v954_v51  ;;  %v425_v50 = vld [vmem:[#allocation2 + $0xd8] sm:$0x3]  ;;  %v981_v51 = vld [vmem:[%s3167_s2 + $0x220] sm:$0xff] }
  0x3c   : > { %1257 = vmatpush.msrb.mxu3 %v971_v52  ;;  %1318 = vmatpush.msrb.mxu0 %v991_v53  ;;  %v1024_v52 = vld [vmem:[%s3167_s2 + $0x378] sm:$0xff] }
  0x3d   : > { %1128 = vmatpush.msrb.mxu1 %v938_v54  ;;  %1194 = vmatpush.msrb.mxu2 %v953_v55  ;;  %v980_v53 = vld [vmem:[%s3167_s2 + $0x218] sm:$0xff]  ;;  %v570_v55 = vrot.slane %v425_v50, 2 }
  0x3e   : > { %1258 = vmatpush.msrb.mxu3 %v970_v57  ;;  %1319 = vmatpush.msrb.mxu0 %v990_v58  ;;  %v1040_v54 = vld [vmem:[%s3167_s2 + $0x3f8] sm:$0xff]  ;;  %v497_v57 = vrot.slane %v425_v50, 1  ;;  %v1023_v58 = vld [vmem:[%s3167_s2 + $0x370] sm:$0xff] }
  0x3f   : > { %1129 = vmatpush.msrb.mxu1 %v937_v59  ;;  %1103 = vmatmul.f32.gmra.mxu2 %v2218_v19  ;;  %v979_v59 = vld [vmem:[%s3167_s2 + $0x210] sm:$0xff] }
  0x40   : > { %1091 = vmatmul.f32.gmra.mxu1 %v2211_v17  ;;  %1195 = vmatpush.msrb.mxu2 %v952_v60  ;;  %v1039_v60 = vld [vmem:[%s3167_s2 + $0x3f0] sm:$0xff] }
  0x41   : > { %1259 = vmatpush.msrb.mxu3 %v969_v61  ;;  %1320 = vmatpush.msrb.mxu0 %v989_v62  ;;  %v499_v61 = vrot.slane %v2255_v30, 1  ;;  %v500_v62 = vrot.slane %v2306_v46, 1 }
  0x42   : > { %1130 = vmatpush.msrb.mxu1 %v936_v63  ;;  %1076 = vmatmul.f32.gmra.mxu0 %v2225_v21  ;;  %v945_v21 = vld [vmem:[%s3167_s2 + $0x100] sm:$0xff]  ;;  %v1007_v63 = vld [vmem:[%s3167_s2 + $0x2f0] sm:$0xff] }
  0x43   : > { %1115 = vmatmul.f32.gmra.mxu3 %v2228_v22  ;;  %1196 = vmatpush.msrb.mxu2 %v951_v0  ;;  %v1022_v0 = vld [vmem:[%s3167_s2 + $0x368] sm:$0xff] }
  0x44   : > { %1260 = vmatpush.msrb.mxu3 %v968_v1  ;;  %1321 = vmatpush.msrb.mxu0 %v988_v2  ;;  %v978_v1 = vld [vmem:[%s3167_s2 + $0x208] sm:$0xff]  ;;  %v571_v2 = vsel %vm566_vm0, %v568_v36, %v570_v55  ;;  %v1019_v36 = vld [vmem:[%s3167_s2 + $0x350] sm:$0xff]  ;;  %v1033_v55 = vld [vmem:[%s3167_s2 + $0x3c0] sm:$0xff] }
  0x45   : > { %1131 = vmatpush.msrb.mxu1 %v935_v3  ;;  %1197 = vmatpush.msrb.mxu2 %v950_v4  ;;  %v498_v3 = vsel %vm493_vm1, %v495_v40, %v497_v57  ;;  %v1038_v4 = vld [vmem:[%s3167_s2 + $0x3e8] sm:$0xff] }
  0x46   : > { %1261 = vmatpush.msrb.mxu3 %v967_v5  ;;  %1322 = vmatpush.msrb.mxu0 %v987_v6  ;;  %v977_v5 = vld [vmem:[%s3167_s2 + $0x200] sm:$0xff]  ;;  %v1006_v6 = vld [vmem:[%s3167_s2 + $0x2e8] sm:$0xff] }
  0x47   : > { %1132 = vmatpush.msrb.mxu1 %v934_v9  ;;  %1198 = vmatpush.msrb.mxu2 %v949_v12  ;;  %v373_v9 = vld [vmem:[%s2169_s9 + $0x58] sm:$0x3]  ;;  %v501_v12 = vsel %vm493_vm1, %v499_v61, %v500_v62 }
  0x48   : > { %1262 = vmatpush.msrb.mxu3 %v966_v15  ;;  %1323 = vmatpush.msrb.mxu0 %v986_v18  ;;  %397 = vst [vmem:[#allocation2 + $0xb8] sm:$0x3] %v373_v9  ;;  %v1056_v15 = vld [vmem:[%s3167_s2 + $0x478] sm:$0xff]  ;;  %v572_v18 = vrot.slane %v2255_v30, 2 }
  0x49   : > { %1133 = vmatpush.msrb.mxu1 %v933_v20  ;;  %1106 = vmatmul.f32.gmra.mxu2 %v2248_v28  ;;  %v573_v20 = vrot.slane %v2306_v46, 2  ;;  %v1032_v61 = vld [vmem:[%s3167_s2 + $0x3b8] sm:$0xff] }
  0x4a   : > { %1094 = vmatmul.f32.gmra.mxu1 %v2241_v26  ;;  %1199 = vmatpush.msrb.mxu2 %v948_v23  ;;  %v428_v23 = vld [vmem:[#allocation2 + $0x68] sm:$0x3] }
  0x4b   : > { %1263 = vmatpush.msrb.mxu3 %v965_v24  ;;  %1324 = vmatpush.msrb.mxu0 %v985_v25  ;;  %v1021_v24 = vld [vmem:[%s3167_s2 + $0x360] sm:$0xff]  ;;  %v502_v31 = vrot.slane %v428_v23, 1  ;;  %v575_v40 = vrot.slane %v428_v23, 2 }
  0x4c   : > { %1134 = vmatpush.msrb.mxu1 %v932_v27  ;;  %1079 = vmatmul.f32.gmra.mxu0 %v2255_v30  ;;  %v1037_v25 = vld [vmem:[%s3167_s2 + $0x3e0] sm:$0xff] }
  0x4d   : > { %1118 = vmatmul.f32.gmra.mxu3 %v2261_v32  ;;  %1200 = vmatpush.msrb.mxu2 %v947_v29  ;;  %v1005_v27 = vld [vmem:[%s3167_s2 + $0x2e0] sm:$0xff]  ;;  %v1020_v29 = vld [vmem:[%s3167_s2 + $0x358] sm:$0xff]  ;;  %v503_v39 = vsel %vm493_vm1, %v500_v62, %v502_v31  ;;  %v514_v31 = vrot.slane %v2179_v8, 1 }
  0x4e   : > { %1264 = vmatpush.msrb.mxu3 %v964_v33  ;;  %1325 = vmatpush.msrb.mxu0 %v984_v34  ;;  %v1036_v33 = vld [vmem:[%s3167_s2 + $0x3d8] sm:$0xff]  ;;  %v2545_v34 = vsel %vm566_vm0, %v572_v18, %v573_v20  ;;  %v1049_v62 = vld [vmem:[%s3167_s2 + $0x440] sm:$0xff]  ;;  %v999_v18 = vld [vmem:[%s3167_s2 + $0x2b0] sm:$0xff] }
  0x4f   : > { %1135 = vmatpush.msrb.mxu1 %v931_v37  ;;  %1201 = vmatpush.msrb.mxu2 %v946_v38  ;;  %v1053_v37 = vld [vmem:[%s3167_s2 + $0x460] sm:$0xff]  ;;  %v1035_v38 = vld [vmem:[%s3167_s2 + $0x3d0] sm:$0xff]  ;;  %v434_v9 = vld [vmem:[#allocation2 + $0xb8] sm:$0x3] }
  0x50   : > { %1265 = vmatpush.msrb.mxu3 %v963_v41  ;;  %1326 = vmatpush.msrb.mxu0 %v983_v42  ;;  %v1052_v41 = vld [vmem:[%s3167_s2 + $0x458] sm:$0xff]  ;;  %v1003_v42 = vld [vmem:[%s3167_s2 + $0x2d0] sm:$0xff] }
  0x51   : > { %1136 = vmatpush.msrb.mxu1 %v930_v14  ;;  %1202 = vmatpush.msrb.mxu2 %v945_v21  ;;  %v1018_v14 = vld [vmem:[%s3167_s2 + $0x348] sm:$0xff] }
  0x52   : > { %1266 = vmatpush.msrb.mxu3 %v962_v43  ;;  %1327 = vmatpush.msrb.mxu0 %v982_v44  ;;  %v1034_v21 = vld [vmem:[%s3167_s2 + $0x3c8] sm:$0xff]  ;;  %v1051_v43 = vld [vmem:[%s3167_s2 + $0x450] sm:$0xff] }
  0x53   : > { %1137 = vmatpush.msrb.mxu1 %v929_v45  ;;  %1203 = vmatmul.f32.vlgmr.msrb.gmra.mxu2 %v569_v47  ;;  %v1002_v44 = vld [vmem:[%s3167_s2 + $0x2c8] sm:$0xff]  ;;  %v504_v45 = vrot.slane %v2175_v7, 1  ;;  %v505_v47 = vrot.slane %v2190_v11, 1 }
  0x54   : > { %1138 = vmatmul.f32.vlgmr.msrb.gmra.mxu1 %v496_v48  ;;  %1267 = vmatpush.msrb.mxu3 %v961_v49  ;;  %v2583_v48 = vsel %vm566_vm0, %v573_v20, %v575_v40  ;;  %v376_v49 = vld [vmem:[%s2169_s9 + $0x70] sm:$0x3]  ;;  %v512_v20 = vrot.slane %v434_v9, 1  ;;  %v1013_v40 = vld [vmem:[%s3167_s2 + $0x320] sm:$0xff] }
  0x55   : > { %1328 = vmatpush.msrb.mxu0 %v981_v51  ;;  %1447 = vmatpush.msra.mxu2 %v1024_v52  ;;  %v2588_v50 = vsel %vm493_vm1, %v504_v45, %v505_v47  ;;  %400 = vst [vmem:[#allocation2 + $0x70] sm:$0x3] %v376_v49  ;;  %v577_v51 = vrot.slane %v2175_v7, 2  ;;  %v578_v52 = vrot.slane %v2190_v11, 2  ;;  %v1028_v45 = vld [vmem:[%s3167_s2 + $0x398] sm:$0xff] }
  0x56   : > { %1082 = vmatmul.f32.gmra.mxu0 %v2306_v46  ;;  %1268 = vmatmul.f32.vlgmr.msrb.gmra.mxu3 %v2255_v30  ;;  %v1055_v30 = vld [vmem:[%s3167_s2 + $0x470] sm:$0xff]  ;;  %v996_v49 = vld [vmem:[%s3167_s2 + $0x298] sm:$0xff] }
  0x57   : > { %1329 = vmatpush.msrb.mxu0 %v980_v53  ;;  %1512 = vmatpush.msra.mxu3 %v1040_v54  ;;  %v431_v53 = vld [vmem:[#allocation2 + $0x80] sm:$0x3] }
  0x58   : > { %1382 = vmatpush.msra.mxu1 %v1008_v56  ;;  %1448 = vmatpush.msra.mxu2 %v1023_v58  ;;  %v1017_v54 = vld [vmem:[%s3167_s2 + $0x340] sm:$0xff]  ;;  %v507_v57 = vrot.slane %v431_v53, 1  ;;  %v2607_v58 = vsel %vm566_vm0, %v577_v51, %v578_v52  ;;  %v519_v51 = vrot.slane %v2218_v19, 1 }
  0x59   : > { %1330 = vmatpush.msrb.mxu0 %v979_v59  ;;  %1513 = vmatpush.msra.mxu3 %v1039_v60  ;;  %v1001_v56 = vld [vmem:[%s3167_s2 + $0x2c0] sm:$0xff]  ;;  %v580_v59 = vrot.slane %v431_v53, 2  ;;  %v1016_v60 = vld [vmem:[%s3167_s2 + $0x338] sm:$0xff] }
  0x5a   : > { %1383 = vmatpush.msra.mxu1 %v1007_v63  ;;  %1449 = vmatpush.msra.mxu2 %v1022_v0  ;;  %v1000_v63 = vld [vmem:[%s3167_s2 + $0x2b8] sm:$0xff]  ;;  %v509_v0 = vrot.slane %v2211_v17, 1 }
  0x5b   : > { %1331 = vmatpush.msrb.mxu0 %v978_v1  ;;  %1206 = vmatmul.f32.gmra.mxu2 %v571_v2  ;;  %v510_v1 = vrot.slane %v2241_v26, 1  ;;  %v2631_v2 = vsel %vm566_vm0, %v578_v52, %v580_v59  ;;  %v520_v52 = vrot.slane %v2248_v28, 1  ;;  %v1011_v59 = vld [vmem:[%s3167_s2 + $0x310] sm:$0xff] }
  0x5c   : > { %1141 = vmatmul.f32.gmra.mxu1 %v498_v3  ;;  %1514 = vmatpush.msra.mxu3 %v1038_v4  ;;  %v379_v3 = vld [vmem:[%s2169_s9 + $0x88] sm:$0x3] }
  0x5d   : > { %1332 = vmatpush.msrb.mxu0 %v977_v5  ;;  %1384 = vmatpush.msra.mxu1 %v1006_v6  ;;  %v2636_v4 = vsel %vm493_vm1, %v509_v0, %v510_v1  ;;  %403 = vst [vmem:[#allocation2 + $0x78] sm:$0x3] %v379_v3  ;;  %v582_v5 = vrot.slane %v2211_v17, 2  ;;  %v583_v6 = vrot.slane %v2241_v26, 2  ;;  %v2771_v3 = vld [vmem:[%s2760_s14] sm:$0xff] }
  0x5e   : > { %1271 = vmatmul.f32.gmra.mxu3 %v2306_v46  ;;  %1333 = vmatmul.f32.vlgmr.msrb.gmra.mxu0 %v501_v12  ;;  %v1004_v46 = vld [vmem:[%s3167_s2 + $0x2d8] sm:$0xff] }
  0x5f   : > { %1577 = vmatpush.msra.mxu0 %v1056_v15  ;;  %1450 = vmatpush.msra.mxu2 %v1021_v24  ;;  %v1031_v15 = vld [vmem:[%s3167_s2 + $0x3b0] sm:$0xff]  ;;  %v2656_v23 = vsel %vm566_vm0, %v582_v5, %v583_v6  ;;  %v585_v24 = vrot.slane %v434_v9, 2  ;;  %v1026_v5 = vld [vmem:[%s3167_s2 + $0x388] sm:$0xff] }
  0x60   : > { %1515 = vmatpush.msra.mxu3 %v1037_v25  ;;  %1385 = vmatpush.msra.mxu1 %v1005_v27  ;;  %v1014_v25 = vld [vmem:[%s3167_s2 + $0x328] sm:$0xff] }
  0x61   : > { %1578 = vmatpush.msra.mxu0 %v1055_v30  ;;  %1451 = vmatpush.msra.mxu2 %v1020_v29  ;;  %v1030_v27 = vld [vmem:[%s3167_s2 + $0x3a8] sm:$0xff]  ;;  %v1047_v30 = vld [vmem:[%s3167_s2 + $0x430] sm:$0xff] }
  0x62   : > { %1516 = vmatpush.msra.mxu3 %v1036_v33  ;;  %1386 = vmatpush.msra.mxu1 %v1004_v46  ;;  %v998_v29 = vld [vmem:[%s3167_s2 + $0x2a8] sm:$0xff]  ;;  %v515_v33 = vrot.slane %v2197_v13, 1  ;;  %v2680_v46 = vsel %vm566_vm0, %v583_v6, %v585_v24  ;;  %v1043_v6 = vld [vmem:[%s3167_s2 + $0x410] sm:$0xff] }
  0x63   : > { %1209 = vmatmul.f32.gmra.mxu2 %v2545_v34  ;;  %1579 = vmatpush.msra.mxu0 %v1054_v35  ;;  %v382_v35 = vld [vmem:[%s2169_s9 + $0xa0] sm:$0x3]  ;;  %v994_v9 = vld [vmem:[%s3167_s2 + $0x288] sm:$0xff] }
  0x64   : > { %1144 = vmatmul.f32.gmra.mxu1 %v501_v12  ;;  %1452 = vmatpush.msra.mxu2 %v1019_v36  ;;  %v1015_v12 = vld [vmem:[%s3167_s2 + $0x330] sm:$0xff]  ;;  %v2685_v36 = vsel %vm493_vm1, %v514_v31, %v515_v33  ;;  %406 = vst [vmem:[#allocation2 + $0x38] sm:$0x3] %v382_v35  ;;  %v1009_v31 = vld [vmem:[%s3167_s2 + $0x300] sm:$0xff] }
  0x65   : > { %1580 = vmatpush.msra.mxu0 %v1053_v37  ;;  %1517 = vmatpush.msra.mxu3 %v1035_v38  ;;  %v587_v37 = vrot.slane %v2179_v8, 2  ;;  %v588_v38 = vrot.slane %v2197_v13, 2  ;;  %v993_v35 = vld [vmem:[%s3167_s2 + $0x280] sm:$0xff] }
  0x66   : > { %1274 = vmatmul.f32.gmra.mxu3 %v2175_v7  ;;  %1336 = vmatmul.f32.gmra.mxu0 %v503_v39  ;;  %v1050_v7 = vld [vmem:[%s3167_s2 + $0x448] sm:$0xff] }
  0x67   : > { %1581 = vmatpush.msra.mxu0 %v1052_v41  ;;  %1387 = vmatpush.msra.mxu1 %v1003_v42  ;;  %v1029_v41 = vld [vmem:[%s3167_s2 + $0x3a0] sm:$0xff] }
  0x68   : > { %1453 = vmatpush.msra.mxu2 %v1018_v14  ;;  %1518 = vmatpush.msra.mxu3 %v1034_v21  ;;  %v997_v42 = vld [vmem:[%s3167_s2 + $0x2a0] sm:$0xff]  ;;  %v2705_v21 = vsel %vm566_vm0, %v587_v37, %v588_v38 }
  0x69   : > { %1582 = vmatpush.msra.mxu0 %v1051_v43  ;;  %1388 = vmatpush.msra.mxu1 %v1002_v44  ;;  %v1012_v44 = vld [vmem:[%s3167_s2 + $0x318] sm:$0xff] }
  0x6a   : > { %1454 = vmatpush.msra.mxu2 %v1017_v54  ;;  %1519 = vmatpush.msra.mxu3 %v1033_v55  ;;  %v385_v54 = vld [vmem:[%s2169_s9 + $0xb8] sm:$0x3]  ;;  %v2734_v55 = vsel %vm493_vm1, %v519_v51, %v520_v52 }
  0x6b   : > { %1212 = vmatmul.f32.gmra.mxu2 %v2583_v48  ;;  %1583 = vmatpush.msra.mxu0 %v1050_v7  ;;  %409 = vst [vmem:[#allocation2 + $0xa0] sm:$0x3] %v385_v54  ;;  %v592_v7 = vrot.slane %v2218_v19, 2  ;;  %v603_v54 = vrot.slane %v2261_v32, 2 }
  0x6c   : > { %1147 = vmatmul.f32.gmra.mxu1 %v503_v39  ;;  %1455 = vmatpush.msra.mxu2 %v1016_v60  ;;  %v437_v39 = vld [vmem:[#allocation2 + $0x70] sm:$0x3] }
  0x6d   : > { %1389 = vmatpush.msra.mxu1 %v1001_v56  ;;  %1520 = vmatpush.msra.mxu3 %v1032_v61  ;;  %v517_v14 = vrot.slane %v437_v39, 1  ;;  %v590_v43 = vrot.slane %v437_v39, 2  ;;  %v593_v56 = vrot.slane %v2248_v28, 2  ;;  %v1027_v60 = vld [vmem:[%s3167_s2 + $0x390] sm:$0xff] }
  0x6e   : > { %1277 = vmatmul.f32.gmra.mxu3 %v2190_v11  ;;  %1339 = vmatmul.f32.gmra.mxu0 %v2588_v50  ;;  %v2611_v11 = vsel %vm493_vm1, %v505_v47, %v507_v57  ;;  %v1045_v47 = vld [vmem:[%s3167_s2 + $0x420] sm:$0xff]  ;;  %v440_v57 = vld [vmem:[#allocation2 + $0x78] sm:$0x3]  ;;  %v995_v61 = vld [vmem:[%s3167_s2 + $0x290] sm:$0xff] }
  0x6f   : > { %1584 = vmatpush.msra.mxu0 %v1049_v62  ;;  %1390 = vmatpush.msra.mxu1 %v1000_v63  ;;  %v2729_v53 = vsel %vm566_vm0, %v588_v38, %v590_v43  ;;  %v522_v62 = vrot.slane %v440_v57, 1  ;;  %v595_v0 = vrot.slane %v440_v57, 2  ;;  %v529_v43 = vrot.slane %v2228_v22, 1 }
  0x70   : > { %1456 = vmatpush.msra.mxu2 %v1015_v12  ;;  %1521 = vmatpush.msra.mxu3 %v1031_v15  ;;  %v524_v12 = vrot.slane %v2186_v10, 1  ;;  %v525_v15 = vrot.slane %v2207_v16, 1 }
  0x71   : > { %1391 = vmatpush.msra.mxu1 %v999_v18  ;;  %v2764_v63 = vsel %vm493_vm1, %v520_v52, %v522_v62  ;;  %v2790_v18 = vld [vmem:[%s2760_s14 + $0x8] sm:$0xff]  ;;  %v602_v52 = vrot.slane %v2228_v22, 2 }
  0x72   : > { %1457 = vmatpush.msra.mxu2 %v1014_v25  ;;  %1522 = vmatpush.msra.mxu3 %v1030_v27  ;;  %v2795_v24 = vsel %vm493_vm1, %v524_v12, %v525_v15  ;;  %v597_v27 = vrot.slane %v2186_v10, 2 }
  0x73   : > { %1215 = vmatmul.f32.gmra.mxu2 %v2607_v58  ;;  %1392 = vmatpush.msra.mxu1 %v998_v29  ;;  %v443_v29 = vld [vmem:[#allocation2 + $0x38] sm:$0x3] }
  0x74   : > { %1150 = vmatmul.f32.gmra.mxu1 %v2588_v50  ;;  %1458 = vmatpush.msra.mxu2 %v1013_v40  ;;  %v527_v37 = vrot.slane %v443_v29, 1 }
  0x75   : > { %1523 = vmatpush.msra.mxu3 %v1029_v41  ;;  %1393 = vmatpush.msra.mxu1 %v997_v42 }
  0x76   : > { %1280 = vmatmul.f32.gmra.mxu3 %v2211_v17  ;;  %1342 = vmatmul.f32.gmra.mxu0 %v2611_v11  ;;  %v1048_v17 = vld [vmem:[%s3167_s2 + $0x438] sm:$0xff]  ;;  %v2823_v39 = vsel %vm493_vm1, %v525_v15, %v527_v37 }
  0x77   : > { %1585 = vmatpush.msra.mxu0 %v1048_v17  ;;  %1459 = vmatpush.msra.mxu2 %v1012_v44  ;;  %v2787_v17 = vsel %vm566_vm0, %v593_v56, %v595_v0  ;;  %v530_v44 = vrot.slane %v2261_v32, 1  ;;  %v658_v0 = vrot.slane %v2771_v3, 1 }
  0x78   : > { %1524 = vmatpush.msra.mxu3 %v1028_v45  ;;  %1394 = vmatpush.msra.mxu1 %v996_v49 }
  0x79   : > { %1586 = vmatpush.msra.mxu0 %v1047_v30  ;;  %1460 = vmatpush.msra.mxu2 %v1011_v59  ;;  %v598_v30 = vrot.slane %v2207_v16, 2  ;;  %v2844_v49 = vsel %vm493_vm1, %v529_v43, %v530_v44 }
  0x7a   : > { %1525 = vmatpush.msra.mxu3 %v1027_v60  ;;  %1395 = vmatpush.msra.mxu1 %v995_v61  ;;  %v2856_v60 = vsel %vm566_vm0, %v602_v52, %v603_v54  ;;  %v2012_v52 = vld [vmem:[#allocation2 + $0x48] sm:$0xff] }
  0x7b   : > { %1218 = vmatmul.f32.gmra.mxu2 %v2631_v2  ;;  %v2817_v38 = vsel %vm566_vm0, %v597_v27, %v598_v30 }
  0x7c   : > { %1153 = vmatmul.f32.gmra.mxu1 %v2611_v11  ;;  %1526 = vmatpush.msra.mxu3 %v1026_v5 }
  0x7d   : > { %1396 = vmatpush.msra.mxu1 %v994_v9 }
  0x7e   : > { %1283 = vmatmul.f32.gmra.mxu3 %v2241_v26  ;;  %1345 = vmatmul.f32.gmra.mxu0 %v2636_v4  ;;  %v2660_v26 = vsel %vm493_vm1, %v510_v1, %v512_v20  ;;  %v1010_v1 = vld [vmem:[%s3167_s2 + $0x308] sm:$0xff]  ;;  %v412_v20 = vld [vmem:[%s2760_s14 + $0x10] sm:$0x3] }
  0x7f   : > { %1461 = vmatpush.msra.mxu2 %v1010_v1  ;;  %419 = vst [vmem:[#allocation2 + $0x98] sm:$0x3] %v412_v20  ;;  %1397 = vmatpush.msra.mxu1 %v993_v35  ;;  %v659_v1 = vrot.slane %v2790_v18, 1 }
  0x81   : > { %1462 = vmatpush.msra.mxu2 %v1009_v31  ;;  %v2878_v9 = vsel %vm493_vm1, %v658_v0, %v659_v1  ;;  %v2011_v31 = vld [vmem:[#allocation2 + $0x30] sm:$0xff]  ;;  %v2013_v0 = vld [vmem:[#allocation2 + $0x88] sm:$0xff] }
  0x83   : > { %1221 = vmatmul.f32.gmra.mxu2 %v2656_v23 }
  0x84   : > { %1156 = vmatmul.f32.gmra.mxu1 %v2636_v4 }
  0x86   : > { %1286 = vmatmul.f32.gmra.mxu3 %v2179_v8  ;;  %1348 = vmatmul.f32.gmra.mxu0 %v2660_v26  ;;  %v1046_v8 = vld [vmem:[%s3167_s2 + $0x428] sm:$0xff]  ;;  %v2883_v15 = vld [vmem:[#allocation2 + $0x98] sm:$0x3] }
  0x87   : > { %1587 = vmatpush.msra.mxu0 %v1046_v8  ;;  %v600_v8 = vrot.slane %v443_v29, 2  ;;  %v661_v20 = vrot.slane %v2883_v15, 1 }
  0x89   : > { %1588 = vmatpush.msra.mxu0 %v1045_v47  ;;  %v2838_v45 = vsel %vm566_vm0, %v598_v30, %v600_v8 }
  0x8b   : > { %1224 = vmatmul.f32.gmra.mxu2 %v2680_v46 }
  0x8c   : > { %1159 = vmatmul.f32.gmra.mxu1 %v2660_v26 }
  0x8e   : > { %1289 = vmatmul.f32.gmra.mxu3 %v2197_v13  ;;  %1351 = vmatmul.f32.gmra.mxu0 %v2685_v36  ;;  %v2709_v13 = vsel %vm493_vm1, %v515_v33, %v517_v14  ;;  %v1025_v33 = vld [vmem:[%s3167_s2 + $0x380] sm:$0xff] }
  0x8f   : > { %1527 = vmatpush.msra.mxu3 %v1025_v33  ;;  %v1041_v14 = vld [vmem:[%s3167_s2 + $0x400] sm:$0xff]  ;;  %v2891_v33 = vsel %vm493_vm1, %v659_v1, %v661_v20 }
  0x93   : > { %1227 = vmatmul.f32.gmra.mxu2 %v2705_v21 }
  0x94   : > { %1162 = vmatmul.f32.gmra.mxu1 %v2685_v36 }
  0x96   : > { %1292 = vmatmul.f32.gmra.mxu3 %v2218_v19  ;;  %1354 = vmatmul.f32.gmra.mxu0 %v2709_v13  ;;  %v1044_v19 = vld [vmem:[%s3167_s2 + $0x418] sm:$0xff] }
  0x97   : > { %1589 = vmatpush.msra.mxu0 %v1044_v19 }
  0x99   : > { %1590 = vmatpush.msra.mxu0 %v1043_v6 }
  0x9b   : > { %1230 = vmatmul.f32.gmra.mxu2 %v2729_v53 }
  0x9c   : > { %1165 = vmatmul.f32.gmra.mxu1 %v2709_v13 }
  0x9e   : > { %1295 = vmatmul.f32.gmra.mxu3 %v2248_v28  ;;  %1357 = vmatmul.f32.gmra.mxu0 %v2734_v55  ;;  %v2755_v28 = vsel %vm566_vm0, %v592_v7, %v593_v56  ;;  %v446_v7 = vld [vmem:[#allocation2 + $0xa0] sm:$0x3] }
  0x9f   : > { %v532_v59 = vrot.slane %v446_v7, 1  ;;  %v605_v61 = vrot.slane %v446_v7, 2 }
  0xa1   : > { %v2874_v5 = vsel %vm566_vm0, %v603_v54, %v605_v61 }
  0xa3   : > { %1233 = vmatmul.f32.gmra.mxu2 %v2755_v28 }
  0xa4   : > { %1168 = vmatmul.f32.gmra.mxu1 %v2734_v55 }
  0xa6   : > { %1298 = vmatmul.f32.gmra.mxu3 %v2186_v10  ;;  %1360 = vmatmul.f32.gmra.mxu0 %v2764_v63  ;;  %v1042_v10 = vld [vmem:[%s3167_s2 + $0x408] sm:$0xff] }
  0xa7   : > { %1591 = vmatpush.msra.mxu0 %v1042_v10 }
  0xa9   : > { %1592 = vmatpush.msra.mxu0 %v1041_v14 }
  0xab   : > { %1236 = vmatmul.f32.gmra.mxu2 %v2787_v17  ;;  %v2797_v25 = vpop.f32.mrf.mxu1 }
  0xac   : > { %1171 = vmatmul.f32.gmra.mxu1 %v2764_v63 }
  0xae   : > { %1301 = vmatmul.f32.gmra.mxu3 %v2207_v16  ;;  %1363 = vmatmul.f32.gmra.mxu0 %v2795_v24 }
  0xb1   : > { %v2819_v16 = vpop.f32.mrf.mxu2  ;;  %v1074_v42 = vpop.f32.mrf.mxu0 }
  0xb3   : > { %1239 = vmatmul.f32.gmra.mxu2 %v2817_v38  ;;  %v2825_v40 = vpop.f32.mrf.mxu3 }
  0xb4   : > { %1174 = vmatmul.f32.gmra.mxu1 %v2795_v24  ;;  %v2828_v41 = vpop.f32.mrf.mxu1 }
  0xb6   : > { %1304 = vmatmul.f32.gmra.mxu3 %v2228_v22  ;;  %1366 = vmatmul.f32.gmra.mxu0 %v2823_v39  ;;  %v2862_v22 = vsel %vm493_vm1, %v530_v44, %v532_v59 }
  0xb9   : > { %v2840_v47 = vpop.f32.mrf.mxu2 }
  0xbb   : > { %1242 = vmatmul.f32.gmra.mxu2 %v2838_v45 }
  0xbc   : > { %1177 = vmatmul.f32.gmra.mxu1 %v2823_v39  ;;  %v2847_v51 = vpop.f32.mrf.mxu3 }
  0xbd   : > { %v2851_v56 = vpop.f32.mrf.mxu1 }
  0xbe   : > { %1307 = vmatmul.f32.gmra.mxu3 %v2261_v32  ;;  %1369 = vmatmul.f32.gmra.mxu0 %v2844_v49 }
  0xbf   : > { %v1077_v57 = vpop.f32.mrf.mxu0 }
  0xc2   : > { %v2858_v19 = vpop.f32.mrf.mxu2 }
  0xc3   : > { %1245 = vmatmul.f32.gmra.mxu2 %v2856_v60 }
  0xc4   : > { %1180 = vmatmul.f32.gmra.mxu1 %v2844_v49 }
  0xc6   : > { %1310 = vmatmul.f32.gmra.mxu3 %v2771_v3  ;;  %1372 = vmatmul.f32.gmra.mxu0 %v2862_v22  ;;  %v2867_v32 = vpop.f32.mrf.mxu3 }
  0xc7   : > { %v2869_v62 = vpop.f32.mrf.mxu1 }
  0xc9   : > { %v1080_v6 = vpop.f32.mrf.mxu0 }
  0xcb   : > { %1248 = vmatmul.f32.gmra.mxu2 %v2874_v5 }
  0xcc   : > { %1183 = vmatmul.f32.gmra.mxu1 %v2862_v22  ;;  %v2881_v12 = vpop.f32.mrf.mxu2 }
  0xce   : > { %1313 = vmatmul.f32.gmra.mxu3 %v2790_v18  ;;  %1375 = vmatmul.f32.gmra.mxu0 %v2878_v9 }
  0xd0   : > { %v2888_v27 = vpop.f32.mrf.mxu3 }
  0xd1   : > { %v1139_v30 = vpop.f32.mrf.mxu1 }
  0xd2   : > { %v1140_v10 = vadd.f32 %v1139_v30, %v1074_v42 }
  0xd3   : > { %v1083_v29 = vpop.f32.mrf.mxu0  ;;  %1463 = vmatmul.f32.vlgmr.msra.gmra.mxu2 %v2011_v31 }
  0xd4   : > { %1398 = vmatmul.f32.vlgmr.msra.gmra.mxu1 %v2545_v34 }
  0xd6   : > { %1378 = vmatmul.f32.gmra.mxu0 %v2891_v33  ;;  %1528 = vmatmul.f32.vlgmr.msra.gmra.mxu3 %v2588_v50  ;;  %v1204_v35 = vpop.f32.mrf.mxu2 }
  0xd7   : > { %v1205_v37 = vadd.f32 %v1204_v35, %v1140_v10  ;;  %v2014_v10 = vld [vmem:[#allocation2 + $0xe8] sm:$0xff] }
  0xd9   : > { %v1142_v8 = vpop.f32.mrf.mxu1  ;;  %v1269_v14 = vpop.f32.mrf.mxu3 }
  0xda   : > { %v2896_v43 = vadd.f32 %v1269_v14, %v1205_v37  ;;  %v1143_v54 = vadd.f32 %v1142_v8, %v1077_v57 }
  0xdb   : > { %v2898_v44 = vpop.f32.mrf.mxu0  ;;  %1466 = vmatmul.f32.gmra.mxu2 %v2012_v52  ;;  %v2015_v52 = vld [vmem:[#allocation2 + $0x60] sm:$0xff] }
  0xdc   : > { %1401 = vmatmul.f32.gmra.mxu1 %v2583_v48 }
  0xde   : > { %1531 = vmatmul.f32.gmra.mxu3 %v2611_v11  ;;  %1593 = vmatmul.f32.vlgmr.msra.gmra.mxu0 %v2607_v58  ;;  %v1207_v34 = vpop.f32.mrf.mxu2 }
  0xdf   : > { %v1208_v42 = vadd.f32 %v1207_v34, %v1143_v54 }
  0xe1   : > { %v1145_v50 = vpop.f32.mrf.mxu1  ;;  %v1272_v7 = vpop.f32.mrf.mxu3 }
  0xe2   : > { %v2903_v59 = vadd.f32 %v1272_v7, %v1208_v42  ;;  %v1146_v1 = vadd.f32 %v1145_v50, %v1080_v6  ;;  %v2016_v7 = vld [vmem:[#allocation2 + $0xa8] sm:$0xff] }
  0xe3   : > { %v2905_v61 = vpop.f32.mrf.mxu0  ;;  %1469 = vmatmul.f32.gmra.mxu2 %v2013_v0 }
  0xe4   : > { %1404 = vmatmul.f32.gmra.mxu1 %v2607_v58 }
  0xe6   : > { %1534 = vmatmul.f32.gmra.mxu3 %v2636_v4  ;;  %1596 = vmatmul.f32.gmra.mxu0 %v2631_v2  ;;  %v1210_v48 = vpop.f32.mrf.mxu2 }
  0xe7   : > { %v1211_v11 = vadd.f32 %v1210_v48, %v1146_v1 }
  0xe9   : > { %v1148_v57 = vpop.f32.mrf.mxu1  ;;  %v1275_v20 = vpop.f32.mrf.mxu3 }
  0xea   : > { %v2910_v30 = vadd.f32 %v1275_v20, %v1211_v11  ;;  %v1149_v35 = vadd.f32 %v1148_v57, %v1083_v29  ;;  %v2017_v57 = vld [vmem:[#allocation2 + $0x40] sm:$0xff] }
  0xeb   : > { %v2912_v31 = vpop.f32.mrf.mxu0  ;;  %1472 = vmatmul.f32.gmra.mxu2 %v2014_v10 }
  0xec   : > { %1407 = vmatmul.f32.gmra.mxu1 %v2631_v2 }
  0xee   : > { %1537 = vmatmul.f32.gmra.mxu3 %v2660_v26  ;;  %1599 = vmatmul.f32.gmra.mxu0 %v2656_v23  ;;  %v1213_v58 = vpop.f32.mrf.mxu2 }
  0xef   : > { %v1214_v4 = vadd.f32 %v1213_v58, %v1149_v35 }
  0xf1   : > { %v1151_v6 = vpop.f32.mrf.mxu1  ;;  %v1278_v37 = vpop.f32.mrf.mxu3 }
  0xf2   : > { %v2917_v8 = vadd.f32 %v1278_v37, %v1214_v4  ;;  %v1152_v54 = vadd.f32 %v1151_v6, %v2797_v25  ;;  %v2018_v4 = vld [vmem:[#allocation2 + $0x8] sm:$0xff] }
  0xf3   : > { %v2919_v14 = vpop.f32.mrf.mxu0  ;;  %1475 = vmatmul.f32.gmra.mxu2 %v2015_v52 }
  0xf4   : > { %1410 = vmatmul.f32.gmra.mxu1 %v2656_v23 }
  0xf6   : > { %1540 = vmatmul.f32.gmra.mxu3 %v2685_v36  ;;  %1602 = vmatmul.f32.gmra.mxu0 %v2680_v46  ;;  %v1216_v2 = vpop.f32.mrf.mxu2 }
  0xf7   : > { %v1217_v26 = vadd.f32 %v1216_v2, %v1152_v54  ;;  %v2019_v2 = vld [vmem:[#allocation2 + $0xc0] sm:$0xff] }
  0xf9   : > { %v1154_v29 = vpop.f32.mrf.mxu1  ;;  %v1281_v34 = vpop.f32.mrf.mxu3 }
  0xfa   : > { %v2925_v42 = vadd.f32 %v1281_v34, %v1217_v26  ;;  %v1155_v23 = vadd.f32 %v1154_v29, %v2828_v41 }
  0xfb   : > { %v2927_v50 = vpop.f32.mrf.mxu0  ;;  %1478 = vmatmul.f32.gmra.mxu2 %v2016_v7 }
  0xfc   : > { %1413 = vmatmul.f32.gmra.mxu1 %v2680_v46 }
  0xfe   : > { %1543 = vmatmul.f32.gmra.mxu3 %v2709_v13  ;;  %1605 = vmatmul.f32.gmra.mxu0 %v2705_v21  ;;  %v1219_v36 = vpop.f32.mrf.mxu2 }
  0xff   : > { %v1220_v25 = vadd.f32 %v1219_v36, %v1155_v23  ;;  %v2020_v23 = vld [vmem:[#allocation2 + $0x10] sm:$0xff] }
 0x101   : > { %v1157_v0 = vpop.f32.mrf.mxu1  ;;  %v1284_v1 = vpop.f32.mrf.mxu3 }
 0x102   : > { %v2933_v48 = vadd.f32 %v1284_v1, %v1220_v25  ;;  %v1158_v46 = vadd.f32 %v1157_v0, %v2851_v56 }
 0x103   : > { %v2935_v11 = vpop.f32.mrf.mxu0  ;;  %1481 = vmatmul.f32.gmra.mxu2 %v2017_v57  ;;  %v2964_v57 = vld [vmem:[%s2760_s14 + $0x18] sm:$0xff] }
 0x104   : > { %1416 = vmatmul.f32.gmra.mxu1 %v2705_v21 }
 0x106   : > { %1546 = vmatmul.f32.gmra.mxu3 %v2734_v55  ;;  %1608 = vmatmul.f32.gmra.mxu0 %v2729_v53  ;;  %v1222_v13 = vpop.f32.mrf.mxu2 }
 0x107   : > { %v1223_v41 = vadd.f32 %v1222_v13, %v1158_v46  ;;  %v415_v46 = vld [vmem:[%s2760_s14 + $0x28] sm:$0x3] }
 0x108   : > { %422 = vst [vmem:[#allocation2 + $0x20] sm:$0x3] %v415_v46 }
 0x109   : > { %v1160_v20 = vpop.f32.mrf.mxu1  ;;  %v1287_v10 = vpop.f32.mrf.mxu3 }
 0x10a   : > { %v2941_v35 = vadd.f32 %v1287_v10, %v1223_v41  ;;  %v1161_v21 = vadd.f32 %v1160_v20, %v2869_v62  ;;  %v2021_v41 = vld [vmem:[#allocation2 + $0x28] sm:$0xff]  ;;  %v2968_v20 = vld [vmem:[%s2760_s14 + $0x20] sm:$0xff]  ;;  %s1904_s14 = sshll.u32 %s2045_s18, 4 }
 0x10b   : > { %v2943_v58 = vpop.f32.mrf.mxu0  ;;  %1484 = vmatmul.f32.gmra.mxu2 %v2018_v4  ;;  %p349_p8 = scmp.lt.s32.totalorder %s1904_s14, 31 }
 0x10c   : > { %1419 = vmatmul.f32.gmra.mxu1 %v2729_v53 }
 0x10d   : > { %s3186_s14 = smov (!%p349_p8, %s1904_s14), 31 }
 0x10e   : > { %1549 = vmatmul.f32.gmra.mxu3 %v2764_v63  ;;  %1611 = vmatmul.f32.gmra.mxu0 %v2755_v28  ;;  %v1225_v55 = vpop.f32.mrf.mxu2  ;;  %s352_s28 = sadd.s32 %s1905_s27, %s3186_s14 }
 0x10f   : > { %v1226_v56 = vadd.f32 %v1225_v55, %v1161_v21  ;;  %s1906_s10 = sshll.u32 %s352_s28, 3 }
 0x110   : > { %s3027_s16 = scalar_lea.vmem %s3168_s3, %s1906_s10 }
 0x111   : > { %v1163_v6 = vpop.f32.mrf.mxu1  ;;  %v1290_v37 = vpop.f32.mrf.mxu3 }
 0x112   : > { %v2949_v52 = vadd.f32 %v1290_v37, %v1226_v56  ;;  %v1164_v53 = vadd.f32 %v1163_v6, %v2819_v16  ;;  %v2022_v6 = vld [vmem:[#allocation2 + $0x90] sm:$0xff] }
 0x113   : > { %v2951_v54 = vpop.f32.mrf.mxu0  ;;  %1487 = vmatmul.f32.gmra.mxu2 %v2019_v2 }
 0x114   : > { %1422 = vmatmul.f32.gmra.mxu1 %v2755_v28 }
 0x116   : > { %1552 = vmatmul.f32.gmra.mxu3 %v2795_v24  ;;  %1614 = vmatmul.f32.gmra.mxu0 %v2787_v17  ;;  %v1228_v63 = vpop.f32.mrf.mxu2 }
 0x117   : > { %v1229_v62 = vadd.f32 %v1228_v63, %v1164_v53 }
 0x119   : > { %v1166_v26 = vpop.f32.mrf.mxu1  ;;  %v1293_v29 = vpop.f32.mrf.mxu3 }
 0x11a   : > { %v1294_v34 = vadd.f32 %v1293_v29, %v1229_v62  ;;  %v1167_v28 = vadd.f32 %v1166_v26, %v2840_v47  ;;  %v681_v29 = vrot.slane %v2771_v3, 2 }
 0x11b   : > { %v1358_v7 = vpop.f32.mrf.mxu0  ;;  %1490 = vmatmul.f32.gmra.mxu2 %v2020_v23 }
 0x11c   : > { %v2957_v36 = vadd.f32 %v1358_v7, %v1294_v34  ;;  %1425 = vmatmul.f32.gmra.mxu1 %v2787_v17  ;;  %v682_v34 = vrot.slane %v2790_v18, 2 }
 0x11e   : > { %1555 = vmatmul.f32.gmra.mxu3 %v2823_v39  ;;  %1617 = vmatmul.f32.gmra.mxu0 %v2817_v38  ;;  %v1231_v24 = vpop.f32.mrf.mxu2 }
 0x11f   : > { %v1232_v16 = vadd.f32 %v1231_v24, %v1167_v28 }
 0x121   : > { %v1169_v25 = vpop.f32.mrf.mxu1  ;;  %v1296_v0 = vpop.f32.mrf.mxu3 }
 0x122   : > { %v1297_v1 = vadd.f32 %v1296_v0, %v1232_v16  ;;  %v1170_v39 = vadd.f32 %v1169_v25, %v2858_v19  ;;  %v723_v25 = vrot.slane %v2964_v57, 1  ;;  %v724_v0 = vrot.slane %v2968_v20, 1 }
 0x123   : > { %v1361_v13 = vpop.f32.mrf.mxu0  ;;  %1493 = vmatmul.f32.gmra.mxu2 %v2021_v41 }
 0x124   : > { %v2970_v17 = vadd.f32 %v1361_v13, %v1297_v1  ;;  %1428 = vmatmul.f32.gmra.mxu1 %v2817_v38  ;;  %v684_v1 = vrot.slane %v2883_v15, 2 }
 0x126   : > { %1558 = vmatmul.f32.gmra.mxu3 %v2844_v49  ;;  %1620 = vmatmul.f32.gmra.mxu0 %v2838_v45  ;;  %v1234_v47 = vpop.f32.mrf.mxu2 }
 0x127   : > { %v1235_v10 = vadd.f32 %v1234_v47, %v1170_v39  ;;  %v452_v39 = vld [vmem:[#allocation2 + $0x20] sm:$0x3] }
 0x129   : > { %v1172_v4 = vpop.f32.mrf.mxu1  ;;  %v1299_v21 = vpop.f32.mrf.mxu3 }
 0x12a   : > { %v1300_v55 = vadd.f32 %v1299_v21, %v1235_v10  ;;  %v1173_v38 = vadd.f32 %v1172_v4, %v2881_v12  ;;  %v746_v10 = vrot.slane %v2964_v57, 2  ;;  %v726_v21 = vrot.slane %v452_v39, 1 }
 0x12b   : > { %v1364_v56 = vpop.f32.mrf.mxu0  ;;  %1496 = vmatmul.f32.gmra.mxu2 %v2022_v6 }
 0x12c   : > { %v2976_v37 = vadd.f32 %v1364_v56, %v1300_v55  ;;  %1431 = vmatmul.f32.gmra.mxu1 %v2838_v45  ;;  %v747_v55 = vrot.slane %v2968_v20, 2 }
 0x12e   : > { %1561 = vmatmul.f32.gmra.mxu3 %v2862_v22  ;;  %1623 = vmatmul.f32.gmra.mxu0 %v2856_v60  ;;  %v1237_v49 = vpop.f32.mrf.mxu2 }
 0x12f   : > { %v1238_v19 = vadd.f32 %v1237_v49, %v1173_v38 }
 0x131   : > { %v1175_v2 = vpop.f32.mrf.mxu1  ;;  %v1302_v53 = vpop.f32.mrf.mxu3 }
 0x132   : > { %v1303_v63 = vadd.f32 %v1302_v53, %v1238_v19  ;;  %v1176_v45 = vadd.f32 %v1175_v2, %v2825_v40  ;;  %v727_v19 = vsel %vm493_vm1, %v724_v0, %v726_v21 }
 0x133   : > { %v1367_v62 = vpop.f32.mrf.mxu0  ;;  %1499 = vmatmul.f32.gmra.mxu2 %v2771_v3 }
 0x134   : > { %v2983_v26 = vadd.f32 %v1367_v62, %v1303_v63  ;;  %1434 = vmatmul.f32.gmra.mxu1 %v2856_v60  ;;  %v683_v60 = vsel %vm566_vm0, %v681_v29, %v682_v34  ;;  %v749_v62 = vrot.slane %v452_v39, 2 }
 0x136   : > { %1564 = vmatmul.f32.gmra.mxu3 %v2878_v9  ;;  %1626 = vmatmul.f32.gmra.mxu0 %v2874_v5  ;;  %v1240_v22 = vpop.f32.mrf.mxu2 }
 0x137   : > { %v1241_v12 = vadd.f32 %v1240_v22, %v1176_v45 }
 0x139   : > { %v1178_v7 = vpop.f32.mrf.mxu1  ;;  %v1305_v23 = vpop.f32.mrf.mxu3 }
 0x13a   : > { %v1306_v28 = vadd.f32 %v1305_v23, %v1241_v12  ;;  %v1179_v40 = vadd.f32 %v1178_v7, %v2847_v51  ;;  %v685_v51 = vsel %vm566_vm0, %v682_v34, %v684_v1  ;;  %v1335_v12 = vadd.f32 %v2898_v44, %v2896_v43 }
 0x13b   : > { %v1370_v24 = vpop.f32.mrf.mxu0  ;;  %1502 = vmatmul.f32.gmra.mxu2 %v2790_v18  ;;  %v750_v34 = vsel %vm566_vm0, %v747_v55, %v749_v62 }
 0x13c   : > { %v2993_v16 = vadd.f32 %v1370_v24, %v1306_v28  ;;  %1437 = vmatmul.f32.gmra.mxu1 %v2874_v5  ;;  %v725_v5 = vsel %vm493_vm1, %v723_v25, %v724_v0 }
 0x13e   : > { %1567 = vmatmul.f32.gmra.mxu3 %v2891_v33  ;;  %1629 = vmatmul.f32.gmra.mxu0 %v683_v60  ;;  %v1243_v3 = vpop.f32.mrf.mxu2 }
 0x13f   : > { %v1244_v9 = vadd.f32 %v1243_v3, %v1179_v40  ;;  %v1338_v3 = vadd.f32 %v2905_v61, %v2903_v59  ;;  %v1341_v59 = vadd.f32 %v2912_v31, %v2910_v30 }
 0x141   : > { %v1181_v18 = vpop.f32.mrf.mxu1  ;;  %v1308_v46 = vpop.f32.mrf.mxu3 }
 0x142   : > { %v1309_v13 = vadd.f32 %v1308_v46, %v1244_v9  ;;  %v1182_v47 = vadd.f32 %v1181_v18, %v2867_v32  ;;  %v748_v32 = vsel %vm566_vm0, %v746_v10, %v747_v55  ;;  %v1344_v10 = vadd.f32 %v2919_v14, %v2917_v8 }
 0x143   : > { %v1373_v41 = vpop.f32.mrf.mxu0  ;;  %1505 = vmatmul.f32.gmra.mxu2 %v2964_v57 }
 0x144   : > { %v3004_v33 = vadd.f32 %v1373_v41, %v1309_v13  ;;  %1440 = vmatmul.f32.gmra.mxu1 %v683_v60 }
 0x146   : > { %1570 = vmatmul.f32.gmra.mxu3 %v725_v5  ;;  %1632 = vmatmul.f32.gmra.mxu0 %v685_v51  ;;  %v1246_v15 = vpop.f32.mrf.mxu2 }
 0x147   : > { %v1247_v4 = vadd.f32 %v1246_v15, %v1182_v47 }
 0x149   : > { %v1184_v56 = vpop.f32.mrf.mxu1  ;;  %v1311_v6 = vpop.f32.mrf.mxu3 }
 0x14a   : > { %v1312_v38 = vadd.f32 %v1311_v6, %v1247_v4  ;;  %v1185_v57 = vadd.f32 %v1184_v56, %v2888_v27 }
 0x14b   : > { %v1376_v49 = vpop.f32.mrf.mxu0  ;;  %1508 = vmatmul.f32.gmra.mxu2 %v2968_v20 }
 0x14c   : > { %v3013_v2 = vadd.f32 %v1376_v49, %v1312_v38  ;;  %1443 = vmatmul.f32.gmra.mxu1 %v685_v51  ;;  %v1347_v49 = vadd.f32 %v2927_v50, %v2925_v42 }
 0x14e   : > { %1573 = vmatmul.f32.gmra.mxu3 %v727_v19  ;;  %1635 = vmatmul.f32.gmra.mxu0 %v748_v32  ;;  %v1249_v53 = vpop.f32.mrf.mxu2 }
 0x14f   : > { %v1250_v63 = vadd.f32 %v1249_v53, %v1185_v57 }
 0x151   : > { %v1314_v45 = vpop.f32.mrf.mxu3  ;;  %v1399_v22 = vpop.f32.mrf.mxu1 }
 0x152   : > { %v1315_v20 = vadd.f32 %v1314_v45, %v1250_v63  ;;  %v1400_v27 = vadd.f32 %v1399_v22, %v1335_v12  ;;  %v1350_v45 = vadd.f32 %v2935_v11, %v2933_v48 }
 0x153   : > { %v1379_v29 = vpop.f32.mrf.mxu0 }
 0x154   : > { %v3020_v7 = vadd.f32 %v1379_v29, %v1315_v20 }
 0x156   : > { %1638 = vmatmul.f32.gmra.mxu0 %v750_v34  ;;  %v1464_v23 = vpop.f32.mrf.mxu2 }
 0x157   : > { %v1465_v28 = vadd.f32 %v1464_v23, %v1400_v27  ;;  %v1353_v23 = vadd.f32 %v2943_v58, %v2941_v35 }
 0x159   : > { %v1402_v24 = vpop.f32.mrf.mxu1  ;;  %v1529_v60 = vpop.f32.mrf.mxu3 }
 0x15a   : > { %v1530_v40 = vadd.f32 %v1529_v60, %v1465_v28  ;;  %v1403_v9 = vadd.f32 %v1402_v24, %v1338_v3 }
 0x15b   : > { %v1594_v43 = vpop.f32.mrf.mxu0 }
 0x15c   : > { %v3029_v44 = vadd.f32 %v1594_v43, %v1530_v40 }
 0x15e   : > { %1642 = vst [vmem:[%s3027_s16] sm:$0xff] %v3029_v44  ;;  %v1467_v25 = vpop.f32.mrf.mxu2 }
 0x15f   : > { %v1468_v0 = vadd.f32 %v1467_v25, %v1403_v9  ;;  %v1356_v9 = vadd.f32 %v2951_v54, %v2949_v52 }
 0x161   : > { %v1405_v1 = vpop.f32.mrf.mxu1  ;;  %v1532_v18 = vpop.f32.mrf.mxu3 }
 0x162   : > { %v1533_v46 = vadd.f32 %v1532_v18, %v1468_v0  ;;  %v1406_v41 = vadd.f32 %v1405_v1, %v1341_v59 }
 0x163   : > { %v1597_v61 = vpop.f32.mrf.mxu0 }
 0x164   : > { %v3035_v13 = vadd.f32 %v1597_v61, %v1533_v46 }
 0x166   : > { %1643 = vst [vmem:[%s3027_s16 + $0x8] sm:$0xff] %v3035_v13  ;;  %v1470_v5 = vpop.f32.mrf.mxu2 }
 0x167   : > { %v1471_v51 = vadd.f32 %v1470_v5, %v1406_v41 }
 0x169   : > { %v1408_v39 = vpop.f32.mrf.mxu1  ;;  %v1535_v47 = vpop.f32.mrf.mxu3 }
 0x16a   : > { %v1536_v15 = vadd.f32 %v1535_v47, %v1471_v51  ;;  %v1409_v55 = vadd.f32 %v1408_v39, %v1344_v10 }
 0x16b   : > { %v1600_v4 = vpop.f32.mrf.mxu0 }
 0x16c   : > { %v3041_v21 = vadd.f32 %v1600_v4, %v1536_v15 }
 0x16e   : > { %1644 = vst [vmem:[%s3027_s16 + $0x10] sm:$0xff] %v3041_v21  ;;  %v1473_v30 = vpop.f32.mrf.mxu2 }
 0x16f   : > { %v1474_v31 = vadd.f32 %v1473_v30, %v1409_v55 }
 0x171   : > { %v1411_v56 = vpop.f32.mrf.mxu1  ;;  %v1538_v6 = vpop.f32.mrf.mxu3 }
 0x172   : > { %v1539_v38 = vadd.f32 %v1538_v6, %v1474_v31  ;;  %v1412_v57 = vadd.f32 %v1411_v56, %v1347_v49 }
 0x173   : > { %v1603_v19 = vpop.f32.mrf.mxu0 }
 0x174   : > { %v3047_v32 = vadd.f32 %v1603_v19, %v1539_v38 }
 0x176   : > { %1645 = vst [vmem:[%s3027_s16 + $0x18] sm:$0xff] %v3047_v32  ;;  %v1476_v8 = vpop.f32.mrf.mxu2 }
 0x177   : > { %v1477_v14 = vadd.f32 %v1476_v8, %v1412_v57 }
 0x179   : > { %v1414_v53 = vpop.f32.mrf.mxu1  ;;  %v1541_v63 = vpop.f32.mrf.mxu3 }
 0x17a   : > { %v1542_v62 = vadd.f32 %v1541_v63, %v1477_v14  ;;  %v1415_v12 = vadd.f32 %v1414_v53, %v1350_v45 }
 0x17b   : > { %v1606_v22 = vpop.f32.mrf.mxu0 }
 0x17c   : > { %v3053_v20 = vadd.f32 %v1606_v22, %v1542_v62 }
 0x17e   : > { %1646 = vst [vmem:[%s3027_s16 + $0x20] sm:$0xff] %v3053_v20  ;;  %v1479_v42 = vpop.f32.mrf.mxu2 }
 0x17f   : > { %v1480_v50 = vadd.f32 %v1479_v42, %v1415_v12 }
 0x181   : > { %v1417_v29 = vpop.f32.mrf.mxu1  ;;  %v1544_v34 = vpop.f32.mrf.mxu3 }
 0x182   : > { %v1545_v27 = vadd.f32 %v1544_v34, %v1480_v50  ;;  %v1418_v60 = vadd.f32 %v1417_v29, %v1353_v23 }
 0x183   : > { %v1609_v28 = vpop.f32.mrf.mxu0 }
 0x184   : > { %v3059_v24 = vadd.f32 %v1609_v28, %v1545_v27 }
 0x186   : > { %1647 = vst [vmem:[%s3027_s16 + $0x28] sm:$0xff] %v3059_v24  ;;  %v1482_v48 = vpop.f32.mrf.mxu2 }
 0x187   : > { %v1483_v11 = vadd.f32 %v1482_v48, %v1418_v60 }
 0x189   : > { %v1420_v40 = vpop.f32.mrf.mxu1  ;;  %v1547_v3 = vpop.f32.mrf.mxu3 }
 0x18a   : > { %v1548_v43 = vadd.f32 %v1547_v3, %v1483_v11  ;;  %v1421_v1 = vadd.f32 %v1420_v40, %v1356_v9 }
 0x18b   : > { %v1612_v25 = vpop.f32.mrf.mxu0 }
 0x18c   : > { %v3065_v0 = vadd.f32 %v1612_v25, %v1548_v43 }
 0x18e   : > { %1648 = vst [vmem:[%s3027_s16 + $0x30] sm:$0xff] %v3065_v0  ;;  %v1485_v35 = vpop.f32.mrf.mxu2 }
 0x18f   : > { %v1486_v58 = vadd.f32 %v1485_v35, %v1421_v1 }
 0x191   : > { %v1423_v18 = vpop.f32.mrf.mxu1  ;;  %v1550_v46 = vpop.f32.mrf.mxu3 }
 0x192   : > { %v1551_v59 = vadd.f32 %v1550_v46, %v1486_v58  ;;  %v1424_v5 = vadd.f32 %v1423_v18, %v2957_v36 }
 0x193   : > { %v1615_v61 = vpop.f32.mrf.mxu0 }
 0x194   : > { %v3069_v41 = vadd.f32 %v1615_v61, %v1551_v59 }
 0x196   : > { %1649 = vst [vmem:[%s3027_s16 + $0x38] sm:$0xff] %v3069_v41  ;;  %v1488_v52 = vpop.f32.mrf.mxu2 }
 0x197   : > { %v1489_v54 = vadd.f32 %v1488_v52, %v1424_v5 }
 0x199   : > { %v1426_v51 = vpop.f32.mrf.mxu1  ;;  %v1553_v39 = vpop.f32.mrf.mxu3 }
 0x19a   : > { %v1554_v47 = vadd.f32 %v1553_v39, %v1489_v54  ;;  %v1427_v4 = vadd.f32 %v1426_v51, %v2970_v17 }
 0x19b   : > { %v1618_v15 = vpop.f32.mrf.mxu0 }
 0x19c   : > { %v3074_v10 = vadd.f32 %v1618_v15, %v1554_v47 }
 0x19e   : > { %1650 = vst [vmem:[%s3027_s16 + $0x40] sm:$0xff] %v3074_v10  ;;  %v1491_v55 = vpop.f32.mrf.mxu2 }
 0x19f   : > { %v1492_v30 = vadd.f32 %v1491_v55, %v1427_v4 }
 0x1a1   : > { %v1429_v31 = vpop.f32.mrf.mxu1  ;;  %v1556_v36 = vpop.f32.mrf.mxu3 }
 0x1a2   : > { %v1557_v56 = vadd.f32 %v1556_v36, %v1492_v30  ;;  %v1430_v49 = vadd.f32 %v1429_v31, %v2976_v37 }
 0x1a3   : > { %v1621_v6 = vpop.f32.mrf.mxu0 }
 0x1a4   : > { %v3079_v38 = vadd.f32 %v1621_v6, %v1557_v56 }
 0x1a6   : > { %1651 = vst [vmem:[%s3027_s16 + $0x48] sm:$0xff] %v3079_v38  ;;  %v1494_v19 = vpop.f32.mrf.mxu2 }
 0x1a7   : > { %v1495_v57 = vadd.f32 %v1494_v19, %v1430_v49 }
 0x1a9   : > { %v1432_v8 = vpop.f32.mrf.mxu1  ;;  %v1559_v17 = vpop.f32.mrf.mxu3 }
 0x1aa   : > { %v1560_v14 = vadd.f32 %v1559_v17, %v1495_v57  ;;  %v1433_v62 = vadd.f32 %v1432_v8, %v2983_v26 }
 0x1ab   : > { %v1624_v53 = vpop.f32.mrf.mxu0 }
 0x1ac   : > { %v3084_v63 = vadd.f32 %v1624_v53, %v1560_v14 }
 0x1ae   : > { %1652 = vst [vmem:[%s3027_s16 + $0x50] sm:$0xff] %v3084_v63  ;;  %v1497_v45 = vpop.f32.mrf.mxu2 }
 0x1af   : > { %v1498_v22 = vadd.f32 %v1497_v45, %v1433_v62 }
 0x1b1   : > { %v1435_v12 = vpop.f32.mrf.mxu1  ;;  %v1562_v37 = vpop.f32.mrf.mxu3 }
 0x1b2   : > { %v1563_v42 = vadd.f32 %v1562_v37, %v1498_v22  ;;  %v1436_v34 = vadd.f32 %v1435_v12, %v2993_v16 }
 0x1b3   : > { %v1627_v50 = vpop.f32.mrf.mxu0 }
 0x1b4   : > { %v3089_v29 = vadd.f32 %v1627_v50, %v1563_v42 }
 0x1b6   : > { %1653 = vst [vmem:[%s3027_s16 + $0x58] sm:$0xff] %v3089_v29  ;;  %v1500_v27 = vpop.f32.mrf.mxu2 }
 0x1b7   : > { %v1501_v23 = vadd.f32 %v1500_v27, %v1436_v34 }
 0x1b9   : > { %v1438_v28 = vpop.f32.mrf.mxu1  ;;  %v1565_v26 = vpop.f32.mrf.mxu3 }
 0x1ba   : > { %v1566_v60 = vadd.f32 %v1565_v26, %v1501_v23  ;;  %v1439_v40 = vadd.f32 %v1438_v28, %v3004_v33 }
 0x1bb   : > { %v1630_v48 = vpop.f32.mrf.mxu0 }
 0x1bc   : > { %v3094_v11 = vadd.f32 %v1630_v48, %v1566_v60 }
 0x1be   : > { %1654 = vst [vmem:[%s3027_s16 + $0x60] sm:$0xff] %v3094_v11  ;;  %v1503_v3 = vpop.f32.mrf.mxu2 }
 0x1bf   : > { %v1504_v43 = vadd.f32 %v1503_v3, %v1439_v40 }
 0x1c1   : > { %v1441_v9 = vpop.f32.mrf.mxu1  ;;  %v1568_v16 = vpop.f32.mrf.mxu3 }
 0x1c2   : > { %v1569_v25 = vadd.f32 %v1568_v16, %v1504_v43  ;;  %v1442_v58 = vadd.f32 %v1441_v9, %v3013_v2 }
 0x1c3   : > { %v1633_v1 = vpop.f32.mrf.mxu0 }
 0x1c4   : > { %v1634_v35 = vadd.f32 %v1633_v1, %v1569_v25 }
 0x1c6   : > { %1655 = vst [vmem:[%s3027_s16 + $0x68] sm:$0xff] %v1634_v35  ;;  %v1506_v18 = vpop.f32.mrf.mxu2 }
 0x1c7   : > { %v1507_v46 = vadd.f32 %v1506_v18, %v1442_v58 }
 0x1c9   : > { %v1571_v59 = vpop.f32.mrf.mxu3  ;;  %v1444_v61 = vpop.f32.mrf.mxu1 }
 0x1ca   : > { %v1572_v5 = vadd.f32 %v1571_v59, %v1507_v46  ;;  %v1445_v54 = vadd.f32 %v1444_v61, %v3020_v7 }
 0x1cb   : > { %v1636_v33 = vpop.f32.mrf.mxu0 }
 0x1cc   : > { %v1637_v52 = vadd.f32 %v1636_v33, %v1572_v5 }
 0x1ce   : > { %1656 = vst [vmem:[%s3027_s16 + $0x70] sm:$0xff] %v1637_v52  ;;  %v1509_v51 = vpop.f32.mrf.mxu2 }
 0x1cf   : > { %v1510_v39 = vadd.f32 %v1509_v51, %v1445_v54 }
 0x1d1   : > { %v1574_v47 = vpop.f32.mrf.mxu3 }
 0x1d2   : > { %v1575_v15 = vadd.f32 %v1574_v47, %v1510_v39  ;;  %1661 = sbr.rel (%p1907_p9) target bundleno = 474 (0x1da), region = 36 }
 0x1d3   : > { %v1639_v4 = vpop.f32.mrf.mxu0 }
 0x1d4   : > { %v1640_v55 = vadd.f32 %v1639_v4, %v1575_v15 }
 0x1d6   : > { %1657 = vst [vmem:[%s3027_s16 + $0x78] sm:$0xff] %v1640_v55 }
 0x1d7   : > { %v2063_v2 = vmov 0.0  }
 0x1d8   : > { %1662 = vst [vmem:[%s2150_s13] sm:$0x1] %v2063_v2 }
 0x1d9   : > { %1663 = vst [vmem:[%s2156_s17] sm:$0x1] %v2063_v2 }
 0x1da PF: > { %v1665_v7 = vadd.f32 %v3035_v13, %v3029_v44  ;;  %v1689_v30 = vmul.f32 %v3029_v44, %v3029_v44  ;;  %v1690_v31 = vmul.f32 %v3035_v13, %v3035_v13  ;;  %v1691_v56 = vmul.f32 %v3041_v21, %v3041_v21 }
 0x1db   : > { %v1692_v49 = vmul.f32 %v3047_v32, %v3047_v32  ;;  %v1693_v8 = vmul.f32 %v3053_v20, %v3053_v20  ;;  %v1694_v13 = vmul.f32 %v3059_v24, %v3059_v24  ;;  %v1695_v53 = vmul.f32 %v3065_v0, %v3065_v0 }
 0x1dc   : > { %v1666_v36 = vadd.f32 %v1665_v7, %v3041_v21  ;;  %v1705_v19 = vadd.f32 %v1690_v31, %v1689_v30  ;;  %v1696_v45 = vmul.f32 %v3069_v41, %v3069_v41  ;;  %v1697_v12 = vmul.f32 %v3074_v10, %v3074_v10 }
 0x1dd   : > { %v1698_v42 = vmul.f32 %v3079_v38, %v3079_v38  ;;  %v1699_v34 = vmul.f32 %v3084_v63, %v3084_v63  ;;  %v1700_v23 = vmul.f32 %v3089_v29, %v3089_v29  ;;  %v1701_v26 = vmul.f32 %v3094_v11, %v3094_v11 }
 0x1de   : > { %v1667_v6 = vadd.f32 %v1666_v36, %v3047_v32  ;;  %v1706_v44 = vadd.f32 %v1705_v19, %v1691_v56  ;;  %v1702_v48 = vmul.f32 %v1634_v35, %v1634_v35  ;;  %v1703_v43 = vmul.f32 %v1637_v52, %v1637_v52 }
 0x1df   : > { %v1704_v16 = vmul.f32 %v1640_v55, %v1640_v55  ;;  %v1664_v33 = vld [vmem:[%s2150_s13] sm:$0x1] }
 0x1e0   : > { %v1668_v57 = vadd.f32 %v1667_v6, %v3053_v20  ;;  %v1707_v14 = vadd.f32 %v1706_v44, %v1692_v49  ;;  %v1688_v47 = vld [vmem:[%s2156_s17] sm:$0x1] }
 0x1e2   : > { %v1669_v17 = vadd.f32 %v1668_v57, %v3059_v24  ;;  %v1708_v62 = vadd.f32 %v1707_v14, %v1693_v8 }
 0x1e4   : > { %v1670_v21 = vadd.f32 %v1669_v17, %v3065_v0  ;;  %v1709_v22 = vadd.f32 %v1708_v62, %v1694_v13 }
 0x1e6   : > { %v1671_v32 = vadd.f32 %v1670_v21, %v3069_v41  ;;  %v1710_v37 = vadd.f32 %v1709_v22, %v1695_v53 }
 0x1e8   : > { %v1672_v20 = vadd.f32 %v1671_v32, %v3074_v10  ;;  %v1711_v50 = vadd.f32 %v1710_v37, %v1696_v45 }
 0x1ea   : > { %v1673_v24 = vadd.f32 %v1672_v20, %v3079_v38  ;;  %v1712_v27 = vadd.f32 %v1711_v50, %v1697_v12 }
 0x1ec   : > { %v1674_v0 = vadd.f32 %v1673_v24, %v3084_v63  ;;  %v1713_v28 = vadd.f32 %v1712_v27, %v1698_v42 }
 0x1ee   : > { %v1675_v41 = vadd.f32 %v1674_v0, %v3089_v29  ;;  %v1714_v60 = vadd.f32 %v1713_v28, %v1699_v34 }
 0x1f0   : > { %v1676_v10 = vadd.f32 %v1675_v41, %v3094_v11  ;;  %v1715_v40 = vadd.f32 %v1714_v60, %v1700_v23 }
 0x1f2   : > { %v1677_v38 = vadd.f32 %v1676_v10, %v1634_v35  ;;  %v1716_v63 = vadd.f32 %v1715_v40, %v1701_v26 }
 0x1f4   : > { %v1678_v3 = vadd.f32 %v1677_v38, %v1637_v52  ;;  %v1717_v25 = vadd.f32 %v1716_v63, %v1702_v48 }
 0x1f6   : > { %v1679_v9 = vadd.f32 %v1678_v3, %v1640_v55  ;;  %v1718_v29 = vadd.f32 %v1717_v25, %v1703_v43 }
 0x1f8   : > { %v1680_v1 = vrot.slane %v1679_v9, 4  ;;  %v1719_v18 = vadd.f32 %v1718_v29, %v1704_v16 }
 0x1fa   : > { %v1681_v58 = vadd.f32 %v1680_v1, %v1679_v9  ;;  %v1720_v11 = vrot.slane %v1719_v18, 4 }
 0x1fc   : > { %v1682_v46 = vrot.slane %v1681_v58, 2  ;;  %v1721_v61 = vadd.f32 %v1720_v11, %v1719_v18 }
 0x1fe   : > { %v1683_v59 = vadd.f32 %v1682_v46, %v1681_v58  ;;  %v1722_v5 = vrot.slane %v1721_v61, 2 }
 0x200   : > { %v1684_v35 = vrot.slane %v1683_v59, 1  ;;  %v1723_v52 = vadd.f32 %v1722_v5, %v1721_v61 }
 0x202   : > { %v1685_v54 = vadd.f32 %v1684_v35, %v1683_v59  ;;  %v1724_v39 = vrot.slane %v1723_v52, 1 }
 0x204   : > { %v1686_v51 = vadd.f32 %v1685_v54, %v1664_v33  ;;  %v1725_v15 = vadd.f32 %v1724_v39, %v1723_v52 }
 0x206   : > { %1687 = vst [vmem:[%s2150_s13] sm:$0x1] %v1686_v51  ;;  %v1726_v4 = vadd.f32 %v1725_v15, %v1688_v47 }
 0x208   : > { %1727 = vst [vmem:[%s2156_s17] sm:$0x1] %v1726_v4 }
 0x209 PF: > { %s16_s22 = sadd.s32 1, %s2061_s22   ;;  %s3171_s18 = smov %s2053_s20 }
 0x20a   : > { %p13_p10 = scmp.ge.s32.totalorder %s16_s22, 6   ;;  %s3172_s19 = smov %s2057_s21 }
 0x20b   : > { %s3173_s20 = smov %s3176_s23  ;;  %s3174_s21 = smov %s3180_s24 }
 0x20c   :  { %15 = sbr.rel (!%p13_p10) target bundleno = 3 (0x3), region = 94 }

</bundles_post_ra>
